<compile_context>
chip_gen: v7x
topology: tpu7x:2x2x1
jax: 0.10.0
libtpu: 0.0.40
codegen_flags: <defaults>
</compile_context>

<pallas_src>
import functools

import jax
import jax.numpy as jnp
from jax.experimental import pallas as pl
from jax.experimental.pallas import tpu as pltpu


def _round_up(n, m):
    return ((n + m - 1) // m) * m


def _pick_tile(n, candidates):
    """Largest candidate tile dividing n (n is always a multiple of 128 here)."""
    for t in candidates:
        if n % t == 0:
            return t
    return n


# ---------------------------------------------------------------------------
# Kernel 1: fused pairwise distance + top-k neighbor selection.
#     d[i, j] = 2 <x_i, x_j> - ||x_i||^2 - ||x_j||^2      (larger == closer)
# Each grid step owns a (TM, N) distance stripe kept in VMEM and performs k
# iterations of (row-max, index-of-max, mask) to emit the k largest column
# indices per row, in descending-distance order (matching torch.topk).
# ---------------------------------------------------------------------------
def _knn_kernel(xr_ref, xall_ref, xxr_ref, xxc_ref, idx_ref, *, k):
    xr = xr_ref[0]                        # (TM, C)  row points, f32
    xa = xall_ref[0]                      # (N,  C)  all points, f32
    # Gram stripe on the MXU; contract the last dim of BOTH operands (no .T).
    g = jax.lax.dot_general(xr, xa, (((1,), (1,)), ((), ())),
                            preferred_element_type=jnp.float32)     # (TM, N)
    d = 2.0 * g - xxr_ref[0] - xxc_ref[0]                           # (TM, N)

    tm = d.shape[0]
    col = jax.lax.broadcasted_iota(jnp.int32, d.shape, 1).astype(jnp.float32)
    out_lane = jax.lax.broadcasted_iota(jnp.int32, (tm, k), 1)
    big = jnp.float32(3.0e38)
    neg_inf = jnp.float32(-jnp.inf)

    topi = jnp.zeros((tm, k), jnp.float32)
    for s in range(k):                    # static unroll; k is 6 or 9
        m = jnp.max(d, axis=-1, keepdims=True)                          # (TM, 1)
        am = jnp.min(jnp.where(d == m, col, big), axis=-1, keepdims=True)
        topi = jnp.where(out_lane == s, am, topi)                       # slot s
        d = jnp.where(col == am, neg_inf, d)                            # mask it
    idx_ref[0] = topi.astype(jnp.int32)


def knn_pallas(xt_pad, knn_num, n_valid, *, row_tiles=(256, 128)):
    """xt_pad: (B, Np, C) f32 with Np a multiple of 128. Returns (B, Np, k) i32."""
    B, Np, C = xt_pad.shape
    tm = _pick_tile(Np, row_tiles)
    xx = jnp.sum(xt_pad * xt_pad, axis=-1)                  # (B, Np)
    xx_row = xx[:, :, None]                                 # (B, Np, 1)
    # Padded columns get a huge squared norm -> distance ~ -1e30 -> never picked.
    col_valid = jnp.arange(Np) < n_valid
    xx_col = jnp.where(col_valid[None, :], xx, jnp.float32(1e30))[:, None, :]
    kernel = functools.partial(_knn_kernel, k=knn_num)
    return pl.pallas_call(
        kernel,
        out_shape=jax.ShapeDtypeStruct((B, Np, knn_num), jnp.int32),
        grid=(B, Np // tm),
        in_specs=[
            pl.BlockSpec((1, tm, C), lambda b, i: (b, i, 0)),
            pl.BlockSpec((1, Np, C), lambda b, i: (b, 0, 0)),
            pl.BlockSpec((1, tm, 1), lambda b, i: (b, i, 0)),
            pl.BlockSpec((1, 1, Np), lambda b, i: (b, 0, 0)),
        ],
        out_specs=pl.BlockSpec((1, tm, knn_num), lambda b, i: (b, i, 0)),
        compiler_params=pltpu.CompilerParams(
            dimension_semantics=("parallel", "parallel")),
    )(xt_pad, xt_pad, xx_row, xx_col)


# ---------------------------------------------------------------------------
# Kernel 2: fused  Conv2d(2C->C,(1,3),stride(1,3)) + BN + ReLU
#                  Conv2d(C->C,(1,w))              + BN + ReLU
# Center points x (TN, C) and gathered neighbor features nb (TN, k*C) come in
# bf16; the center half of the DGCNN edge feature is reconstructed in-kernel
# with one (TN,C)@(C,C) matmul (conv1's center taps pre-summed at fold time).
# Conv2 is accumulated per tap in f32 with the output computed TRANSPOSED on
# the MXU, so the stored tile is lane-dense (C, TN) -> (B, C, N) output.
# ---------------------------------------------------------------------------
def _gc_conv_kernel(x_ref, nb_ref, wc_ref, wd_ref, w2t_ref, t1_ref, t2_ref,
                    o_ref, *, w, C):
    x = x_ref[0]                          # (TN, C)  bf16 center points
    # Center contribution of conv1 (identical for every output position j);
    # conv bias + BN1 shift folded into t1, BN1 scale folded into the weights.
    h0 = jnp.dot(x, wc_ref[...], preferred_element_type=jnp.float32) + t1_ref[...]
    acc = None
    for j in range(w):                    # static unroll; w is 2 or 3
        grp = nb_ref[0, :, j * 3 * C:(j + 1) * 3 * C]        # (TN, 3C) bf16
        d = jnp.dot(grp, wd_ref[...], preferred_element_type=jnp.float32)
        h = jnp.maximum(h0 - d, 0.0)                         # BN1 + ReLU, f32
        # conv2 tap j, transposed on the MXU: contract C of both -> (C, TN).
        c = jax.lax.dot_general(w2t_ref[j], h, (((1,), (1,)), ((), ())),
                                preferred_element_type=jnp.float32)
        acc = c if acc is None else acc + c
    o_ref[0] = jnp.maximum(acc + t2_ref[...], 0.0)           # BN2 + ReLU, (C, TN)


def gc_conv_call(x_bf, nb_bf, kp, knn_num, *,
                 tile_candidates=(1024, 512, 256, 128)):
    B, Np, C = x_bf.shape
    w = knn_num // 3
    tn = _pick_tile(Np, tile_candidates)
    kernel = functools.partial(_gc_conv_kernel, w=w, C=C)
    return pl.pallas_call(
        kernel,
        out_shape=jax.ShapeDtypeStruct((B, C, Np), jnp.float32),
        grid=(B, Np // tn),
        in_specs=[
            pl.BlockSpec((1, tn, C), lambda b, n: (b, n, 0)),
            pl.BlockSpec((1, tn, knn_num * C), lambda b, n: (b, n, 0)),
            pl.BlockSpec((C, C), lambda b, n: (0, 0)),
            pl.BlockSpec((3 * C, C), lambda b, n: (0, 0)),
            pl.BlockSpec((w, C, C), lambda b, n: (0, 0, 0)),
            pl.BlockSpec((1, C), lambda b, n: (0, 0)),
            pl.BlockSpec((C, 1), lambda b, n: (0, 0)),
        ],
        out_specs=pl.BlockSpec((1, C, tn), lambda b, n: (b, 0, n)),
        compiler_params=pltpu.CompilerParams(
            dimension_semantics=("parallel", "parallel")),
    )(x_bf, nb_bf, kp["Wc"], kp["Wd"], kp["W2T"], kp["t1"], kp["t2"])


# ---------------------------------------------------------------------------
# Parameter construction (deterministic, shapes from GCBlock.__init__)
# ---------------------------------------------------------------------------
def init_params(key, C, knn_num):
    w = knn_num // 3                      # second-conv kernel width: 3 or 2
    ks = jax.random.split(key, 8)
    return {
        "W1": 0.1 * jax.random.normal(ks[0], (C, 2 * C, 1, 3), jnp.float32),
        "b1": 0.05 * jax.random.normal(ks[1], (C,), jnp.float32),
        "g1": 1.0 + 0.1 * jax.random.normal(ks[2], (C,), jnp.float32),
        "be1": 0.05 * jax.random.normal(ks[3], (C,), jnp.float32),
        "rm1": jnp.zeros((C,), jnp.float32),   # BN running stats as at init
        "rv1": jnp.ones((C,), jnp.float32),
        "W2": 0.1 * jax.random.normal(ks[4], (C, C, 1, w), jnp.float32),
        "b2": 0.05 * jax.random.normal(ks[5], (C,), jnp.float32),
        "g2": 1.0 + 0.1 * jax.random.normal(ks[6], (C,), jnp.float32),
        "be2": 0.05 * jax.random.normal(ks[7], (C,), jnp.float32),
        "rm2": jnp.zeros((C,), jnp.float32),
        "rv2": jnp.ones((C,), jnp.float32),
    }


def fold_params(p, C, knn_num, eps=1e-5):
    """Fold conv bias + eval-mode BN into matmul weights / shift vectors."""
    s1 = p["g1"] / jnp.sqrt(p["rv1"] + eps)                   # (C,)
    s2 = p["g2"] / jnp.sqrt(p["rv2"] + eps)
    t1 = p["be1"] + s1 * (p["b1"] - p["rm1"])
    t2 = p["be2"] + s2 * (p["b2"] - p["rm2"])
    W1 = p["W1"][:, :, 0, :]                                  # (Co, 2C, 3)
    W1c = W1[:, :C, :]                                        # acts on center x
    W1d = W1[:, C:, :]                                        # acts on (x - nb)
    # x @ Wc reproduces the full center contribution of conv1 for every output
    # position (center is identical across taps): Wc[ci,co] = sum_t(ctr+diff).
    Wc = jnp.transpose(jnp.sum(W1c + W1d, axis=-1), (1, 0))   # (Ci, Co)
    # Neighbor (diff) weights, 3 taps stacked along rows: rows = t*C + ci.
    Wd = jnp.transpose(W1d, (2, 1, 0)).reshape(3 * C, C)      # (3C, Co)
    # Conv2 weights per output position, stored transposed: (j, Co, Ci), f32.
    W2T = jnp.transpose(p["W2"][:, :, 0, :], (2, 0, 1)) * s2[None, :, None]
    return dict(
        Wc=(Wc * s1[None, :]).astype(jnp.bfloat16),
        Wd=(Wd * s1[None, :]).astype(jnp.bfloat16),
        W2T=W2T.astype(jnp.float32),
        t1=t1.reshape(1, C).astype(jnp.float32),
        t2=t2.reshape(C, 1).astype(jnp.float32),
    )


# ---------------------------------------------------------------------------
# Full GCBlock forward (Pallas path)
# ---------------------------------------------------------------------------
def gc_block_forward(features, kparams, knn_num):
    # features: (B, C, N, 1)   (PyTorch NCHW)
    B, C, N, _ = features.shape
    assert N >= knn_num
    x = features.reshape(B, C, N)                              # view(B, -1, N)
    xt = jnp.transpose(x, (0, 2, 1)).astype(jnp.float32)       # (B, N, C)

    # Pad the point axis to a multiple of 128: every block divides cleanly
    # (no full-extent fallback -> no (N,N) VMEM hazard).  Padded columns are
    # excluded from the kNN inside knn_pallas; padded rows are sliced off.
    Np = _round_up(N, 128)
    if Np != N:
        xt = jnp.pad(xt, ((0, 0), (0, Np - N), (0, 0)))

    # --- fused kNN (Pallas): only the (B, Np, k) index tensor hits HBM ---
    idx = knn_pallas(xt, knn_num, N)                           # (B, Np, k) i32

    # --- neighbor gather (plain JAX), bf16 to halve the HBM round trip ---
    x_bf = xt.astype(jnp.bfloat16)
    nb = jax.vmap(lambda xb, ib: xb[ib])(x_bf, idx)            # (B, Np, k, C)
    nb = nb.reshape(B, Np, knn_num * C)                        # order-preserving

    # --- fused conv/BN/ReLU stack (Pallas), lane-dense (B, C, Np) output ---
    y = gc_conv_call(x_bf, nb, kparams, knn_num)               # (B, C, Np) f32
    out = y[:, :, :N][..., None]                               # (B, C, N, 1)
    return out, idx[:, :N, :]


# ---------------------------------------------------------------------------
# Pure-JAX reference (same eval-mode BN semantics), for correctness checks
# ---------------------------------------------------------------------------
def reference_dist(features):
    B, C, N, _ = features.shape
    xt = jnp.transpose(features.reshape(B, C, N), (0, 2, 1))
    g = jnp.einsum("bic,bjc->bij", xt, xt, precision=jax.lax.Precision.HIGHEST)
    xx = jnp.sum(xt * xt, axis=-1)
    return 2.0 * g - xx[:, :, None] - xx[:, None, :]


def reference_forward(features, p, idx, knn_num, eps=1e-5):
    HI = jax.lax.Precision.HIGHEST
    B, C, N, _ = features.shape
    xt = jnp.transpose(features.reshape(B, C, N), (0, 2, 1))
    nb = jax.vmap(lambda xb, ib: xb[ib])(xt, idx)
    ctr = jnp.broadcast_to(xt[:, :, None, :], nb.shape)
    edge = jnp.concatenate([ctr, ctr - nb], axis=-1)           # (B, N, k, 2C)
    w = knn_num // 3
    e = edge.reshape(B, N, w, 3, 2 * C)
    h = jnp.einsum("bnjti,oit->bnjo", e, p["W1"][:, :, 0, :], precision=HI) + p["b1"]
    h = (h - p["rm1"]) / jnp.sqrt(p["rv1"] + eps) * p["g1"] + p["be1"]
    h = jnp.maximum(h, 0.0)
    y = jnp.einsum("bnji,oij->bno", h, p["W2"][:, :, 0, :], precision=HI) + p["b2"]
    y = (y - p["rm2"]) / jnp.sqrt(p["rv2"] + eps) * p["g2"] + p["be2"]
    y = jnp.maximum(y, 0.0)
    return jnp.transpose(y, (0, 2, 1))[..., None]


def _run_and_check(features, params, kparams, knn_num, out_tol):
    fwd = jax.jit(gc_block_forward, static_argnames="knn_num")
    out, idx = fwd(features, kparams, knn_num=knn_num)
    out = jax.block_until_ready(out)
    B, C, N, _ = features.shape
    assert out.shape == (B, C, N, 1)
    assert idx.shape == (B, N, knn_num)
    assert bool(jnp.all(jnp.isfinite(out)))
    assert bool(jnp.all((idx >= 0) & (idx < N)))
    # kNN check: selected neighbors carry (near-)top-k distances under the
    # exact-precision reference metric (near-ties may legitimately reorder).
    ref_d = reference_dist(features)
    ref_topv = jax.lax.top_k(ref_d, knn_num)[0]                # sorted desc
    sel = jnp.take_along_axis(ref_d, idx, axis=-1)
    sel = -jnp.sort(-sel, axis=-1)
    assert bool(jnp.allclose(sel, ref_topv, atol=1e-3, rtol=1e-3))
    # Conv/BN/ReLU stack vs. pure-JAX reference re-using the kernel's idx.
    # bf16 MXU inputs (f32 accumulation) -> bf16-level tolerance.
    ref_o = reference_forward(features, params, idx, knn_num)
    assert bool(jnp.allclose(out, ref_o, atol=out_tol, rtol=out_tol))


if __name__ == "__main__":
    key = jax.random.PRNGKey(0)
    kf, kw, kf2, kw2 = jax.random.split(key, 4)

    # Small shapes (exercises the padding path: N=16 -> 128), knn=9 / w=3.
    B, C, N, knn_num = 2, 8, 16, 9
    features = jax.random.normal(kf, (B, C, N, 1), jnp.float32)
    params = init_params(kw, C, knn_num)
    kparams = fold_params(params, C, knn_num)
    _run_and_check(features, params, kparams, knn_num, out_tol=3e-2)

    # Multi-tile smoke test (kNN grid 2x4, conv grid 2x1), knn=6 / w=2 branch.
    B2, C2, N2, knn2 = 2, 8, 1024, 6
    features2 = jax.random.normal(kf2, (B2, C2, N2, 1), jnp.float32)
    params2 = init_params(kw2, C2, knn2)
    kparams2 = fold_params(params2, C2, knn2)
    _run_and_check(features2, params2, kparams2, knn2, out_tol=3e-2)

    print("KERNEL_OK")
</pallas_src>

<mosaic_0001>
module attributes {stable_mosaic.version = 11 : i64} {
  func.func @_knn_kernel(%arg0: i32, %arg1: i32, %arg2: memref<1x128x8xf32, #tpu.memory_space<vmem>>, %arg3: memref<1x128x8xf32, #tpu.memory_space<vmem>>, %arg4: memref<1x128x1xf32, #tpu.memory_space<vmem>>, %arg5: memref<1x1x128xf32, #tpu.memory_space<vmem>>, %arg6: memref<1x128x9xi32, #tpu.memory_space<vmem>>) attributes {dimension_semantics = [#tpu.dimension_semantics<parallel>, #tpu.dimension_semantics<parallel>], iteration_bounds = array<i64: 2, 1>, scalar_prefetch = 0 : i64, scratch_operands = 0 : i64, tpu.core_type = #tpu.core_type<tc>, window_params = [{transform_indices = @transform_0, window_bounds = array<i64: 1, 128, 8>}, {transform_indices = @transform_1, window_bounds = array<i64: 1, 128, 8>}, {transform_indices = @transform_2, window_bounds = array<i64: 1, 128, 1>}, {transform_indices = @transform_3, window_bounds = array<i64: 1, 1, 128>}, {transform_indices = @transform_4, window_bounds = array<i64: 1, 128, 9>}]} {
    %c0 = arith.constant 0 : index
    %c0_0 = arith.constant 0 : index
    %c0_1 = arith.constant 0 : index
    %0 = vector.load %arg2[%c0, %c0_0, %c0_1] : memref<1x128x8xf32, #tpu.memory_space<vmem>>, vector<1x128x8xf32>
    %1 = vector.shape_cast %0 : vector<1x128x8xf32> to vector<128x8xf32>
    %c0_2 = arith.constant 0 : index
    %c0_3 = arith.constant 0 : index
    %c0_4 = arith.constant 0 : index
    %2 = vector.load %arg3[%c0_2, %c0_3, %c0_4] : memref<1x128x8xf32, #tpu.memory_space<vmem>>, vector<1x128x8xf32>
    %3 = vector.shape_cast %2 : vector<1x128x8xf32> to vector<128x8xf32>
    %cst = arith.constant dense<0.000000e+00> : vector<128x128xf32>
    %4 = tpu.matmul %1, %3, %cst {dimension_numbers = #tpu.dot_dimension_numbers<[1], [1], [0], [0], [0, 0, 1, 0], [], []>} : vector<128x8xf32>, vector<128x8xf32>, vector<128x128xf32> -> vector<128x128xf32>
    %cst_5 = arith.constant 2.000000e+00 : f32
    %5 = vector.broadcast %cst_5 : f32 to vector<128x128xf32>
    %6 = arith.mulf %5, %4 : vector<128x128xf32>
    %c0_6 = arith.constant 0 : index
    %c0_7 = arith.constant 0 : index
    %c0_8 = arith.constant 0 : index
    %7 = vector.load %arg4[%c0_6, %c0_7, %c0_8] : memref<1x128x1xf32, #tpu.memory_space<vmem>>, vector<1x128x1xf32>
    %8 = vector.shape_cast %7 : vector<1x128x1xf32> to vector<128x1xf32>
    %9 = vector.broadcast %8 : vector<128x1xf32> to vector<128x128xf32>
    %10 = arith.subf %6, %9 : vector<128x128xf32>
    %c0_9 = arith.constant 0 : index
    %c0_10 = arith.constant 0 : index
    %c0_11 = arith.constant 0 : index
    %11 = vector.load %arg5[%c0_9, %c0_10, %c0_11] : memref<1x1x128xf32, #tpu.memory_space<vmem>>, vector<1x1x128xf32>
    %12 = vector.shape_cast %11 : vector<1x1x128xf32> to vector<1x128xf32>
    %13 = vector.broadcast %12 : vector<1x128xf32> to vector<128x128xf32>
    %14 = arith.subf %10, %13 : vector<128x128xf32>
    %15 = tpu.iota {dimensions = array<i32: 1>} : vector<128x128xi32>
    %16 = arith.sitofp %15 : vector<128x128xi32> to vector<128x128xf32>
    %17 = tpu.iota {dimensions = array<i32: 1>} : vector<128x9xi32>
    %cst_12 = arith.constant 0.000000e+00 : f32
    %18 = vector.broadcast %cst_12 : f32 to vector<128x9xf32>
    %cst_13 = arith.constant dense<0xFF800000> : vector<128xf32>
    %19 = vector.multi_reduction <maximumf>, %14, %cst_13 [1] : vector<128x128xf32> to vector<128xf32>
    %20 = vector.shape_cast %19 : vector<128xf32> to vector<128x1xf32>
    %21 = vector.broadcast %20 : vector<128x1xf32> to vector<128x128xf32>
    %22 = arith.cmpf oeq, %14, %21 : vector<128x128xf32>
    %cst_14 = arith.constant 3.000000e+38 : f32
    %23 = vector.broadcast %cst_14 : f32 to vector<128x128xf32>
    %24 = arith.select %22, %16, %23 : vector<128x128xi1>, vector<128x128xf32>
    %cst_15 = arith.constant dense<0x7F800000> : vector<128xf32>
    %25 = vector.multi_reduction <minimumf>, %24, %cst_15 [1] : vector<128x128xf32> to vector<128xf32>
    %26 = vector.shape_cast %25 : vector<128xf32> to vector<128x1xf32>
    %c0_i32 = arith.constant 0 : i32
    %27 = vector.broadcast %c0_i32 : i32 to vector<128x9xi32>
    %28 = arith.cmpi eq, %17, %27 : vector<128x9xi32>
    %29 = vector.shape_cast %26 : vector<128x1xf32> to vector<128x1xf32>
    %30 = vector.broadcast %29 : vector<128x1xf32> to vector<128x9xf32>
    %31 = arith.select %28, %30, %18 : vector<128x9xi1>, vector<128x9xf32>
    %32 = vector.broadcast %26 : vector<128x1xf32> to vector<128x128xf32>
    %33 = arith.cmpf oeq, %16, %32 : vector<128x128xf32>
    %cst_16 = arith.constant 0xFF800000 : f32
    %34 = vector.broadcast %cst_16 : f32 to vector<128x128xf32>
    %35 = arith.select %33, %34, %14 : vector<128x128xi1>, vector<128x128xf32>
    %cst_17 = arith.constant dense<0xFF800000> : vector<128xf32>
    %36 = vector.multi_reduction <maximumf>, %35, %cst_17 [1] : vector<128x128xf32> to vector<128xf32>
    %37 = vector.shape_cast %36 : vector<128xf32> to vector<128x1xf32>
    %38 = vector.broadcast %37 : vector<128x1xf32> to vector<128x128xf32>
    %39 = arith.cmpf oeq, %35, %38 : vector<128x128xf32>
    %cst_18 = arith.constant 3.000000e+38 : f32
    %40 = vector.broadcast %cst_18 : f32 to vector<128x128xf32>
    %41 = arith.select %39, %16, %40 : vector<128x128xi1>, vector<128x128xf32>
    %cst_19 = arith.constant dense<0x7F800000> : vector<128xf32>
    %42 = vector.multi_reduction <minimumf>, %41, %cst_19 [1] : vector<128x128xf32> to vector<128xf32>
    %43 = vector.shape_cast %42 : vector<128xf32> to vector<128x1xf32>
    %c1_i32 = arith.constant 1 : i32
    %44 = vector.broadcast %c1_i32 : i32 to vector<128x9xi32>
    %45 = arith.cmpi eq, %17, %44 : vector<128x9xi32>
    %46 = vector.shape_cast %43 : vector<128x1xf32> to vector<128x1xf32>
    %47 = vector.broadcast %46 : vector<128x1xf32> to vector<128x9xf32>
    %48 = arith.select %45, %47, %31 : vector<128x9xi1>, vector<128x9xf32>
    %49 = vector.broadcast %43 : vector<128x1xf32> to vector<128x128xf32>
    %50 = arith.cmpf oeq, %16, %49 : vector<128x128xf32>
    %cst_20 = arith.constant 0xFF800000 : f32
    %51 = vector.broadcast %cst_20 : f32 to vector<128x128xf32>
    %52 = arith.select %50, %51, %35 : vector<128x128xi1>, vector<128x128xf32>
    %cst_21 = arith.constant dense<0xFF800000> : vector<128xf32>
    %53 = vector.multi_reduction <maximumf>, %52, %cst_21 [1] : vector<128x128xf32> to vector<128xf32>
    %54 = vector.shape_cast %53 : vector<128xf32> to vector<128x1xf32>
    %55 = vector.broadcast %54 : vector<128x1xf32> to vector<128x128xf32>
    %56 = arith.cmpf oeq, %52, %55 : vector<128x128xf32>
    %cst_22 = arith.constant 3.000000e+38 : f32
    %57 = vector.broadcast %cst_22 : f32 to vector<128x128xf32>
    %58 = arith.select %56, %16, %57 : vector<128x128xi1>, vector<128x128xf32>
    %cst_23 = arith.constant dense<0x7F800000> : vector<128xf32>
    %59 = vector.multi_reduction <minimumf>, %58, %cst_23 [1] : vector<128x128xf32> to vector<128xf32>
    %60 = vector.shape_cast %59 : vector<128xf32> to vector<128x1xf32>
    %c2_i32 = arith.constant 2 : i32
    %61 = vector.broadcast %c2_i32 : i32 to vector<128x9xi32>
    %62 = arith.cmpi eq, %17, %61 : vector<128x9xi32>
    %63 = vector.shape_cast %60 : vector<128x1xf32> to vector<128x1xf32>
    %64 = vector.broadcast %63 : vector<128x1xf32> to vector<128x9xf32>
    %65 = arith.select %62, %64, %48 : vector<128x9xi1>, vector<128x9xf32>
    %66 = vector.broadcast %60 : vector<128x1xf32> to vector<128x128xf32>
    %67 = arith.cmpf oeq, %16, %66 : vector<128x128xf32>
    %cst_24 = arith.constant 0xFF800000 : f32
    %68 = vector.broadcast %cst_24 : f32 to vector<128x128xf32>
    %69 = arith.select %67, %68, %52 : vector<128x128xi1>, vector<128x128xf32>
    %cst_25 = arith.constant dense<0xFF800000> : vector<128xf32>
    %70 = vector.multi_reduction <maximumf>, %69, %cst_25 [1] : vector<128x128xf32> to vector<128xf32>
    %71 = vector.shape_cast %70 : vector<128xf32> to vector<128x1xf32>
    %72 = vector.broadcast %71 : vector<128x1xf32> to vector<128x128xf32>
    %73 = arith.cmpf oeq, %69, %72 : vector<128x128xf32>
    %cst_26 = arith.constant 3.000000e+38 : f32
    %74 = vector.broadcast %cst_26 : f32 to vector<128x128xf32>
    %75 = arith.select %73, %16, %74 : vector<128x128xi1>, vector<128x128xf32>
    %cst_27 = arith.constant dense<0x7F800000> : vector<128xf32>
    %76 = vector.multi_reduction <minimumf>, %75, %cst_27 [1] : vector<128x128xf32> to vector<128xf32>
    %77 = vector.shape_cast %76 : vector<128xf32> to vector<128x1xf32>
    %c3_i32 = arith.constant 3 : i32
    %78 = vector.broadcast %c3_i32 : i32 to vector<128x9xi32>
    %79 = arith.cmpi eq, %17, %78 : vector<128x9xi32>
    %80 = vector.shape_cast %77 : vector<128x1xf32> to vector<128x1xf32>
    %81 = vector.broadcast %80 : vector<128x1xf32> to vector<128x9xf32>
    %82 = arith.select %79, %81, %65 : vector<128x9xi1>, vector<128x9xf32>
    %83 = vector.broadcast %77 : vector<128x1xf32> to vector<128x128xf32>
    %84 = arith.cmpf oeq, %16, %83 : vector<128x128xf32>
    %cst_28 = arith.constant 0xFF800000 : f32
    %85 = vector.broadcast %cst_28 : f32 to vector<128x128xf32>
    %86 = arith.select %84, %85, %69 : vector<128x128xi1>, vector<128x128xf32>
    %cst_29 = arith.constant dense<0xFF800000> : vector<128xf32>
    %87 = vector.multi_reduction <maximumf>, %86, %cst_29 [1] : vector<128x128xf32> to vector<128xf32>
    %88 = vector.shape_cast %87 : vector<128xf32> to vector<128x1xf32>
    %89 = vector.broadcast %88 : vector<128x1xf32> to vector<128x128xf32>
    %90 = arith.cmpf oeq, %86, %89 : vector<128x128xf32>
    %cst_30 = arith.constant 3.000000e+38 : f32
    %91 = vector.broadcast %cst_30 : f32 to vector<128x128xf32>
    %92 = arith.select %90, %16, %91 : vector<128x128xi1>, vector<128x128xf32>
    %cst_31 = arith.constant dense<0x7F800000> : vector<128xf32>
    %93 = vector.multi_reduction <minimumf>, %92, %cst_31 [1] : vector<128x128xf32> to vector<128xf32>
    %94 = vector.shape_cast %93 : vector<128xf32> to vector<128x1xf32>
    %c4_i32 = arith.constant 4 : i32
    %95 = vector.broadcast %c4_i32 : i32 to vector<128x9xi32>
    %96 = arith.cmpi eq, %17, %95 : vector<128x9xi32>
    %97 = vector.shape_cast %94 : vector<128x1xf32> to vector<128x1xf32>
    %98 = vector.broadcast %97 : vector<128x1xf32> to vector<128x9xf32>
    %99 = arith.select %96, %98, %82 : vector<128x9xi1>, vector<128x9xf32>
    %100 = vector.broadcast %94 : vector<128x1xf32> to vector<128x128xf32>
    %101 = arith.cmpf oeq, %16, %100 : vector<128x128xf32>
    %cst_32 = arith.constant 0xFF800000 : f32
    %102 = vector.broadcast %cst_32 : f32 to vector<128x128xf32>
    %103 = arith.select %101, %102, %86 : vector<128x128xi1>, vector<128x128xf32>
    %cst_33 = arith.constant dense<0xFF800000> : vector<128xf32>
    %104 = vector.multi_reduction <maximumf>, %103, %cst_33 [1] : vector<128x128xf32> to vector<128xf32>
    %105 = vector.shape_cast %104 : vector<128xf32> to vector<128x1xf32>
    %106 = vector.broadcast %105 : vector<128x1xf32> to vector<128x128xf32>
    %107 = arith.cmpf oeq, %103, %106 : vector<128x128xf32>
    %cst_34 = arith.constant 3.000000e+38 : f32
    %108 = vector.broadcast %cst_34 : f32 to vector<128x128xf32>
    %109 = arith.select %107, %16, %108 : vector<128x128xi1>, vector<128x128xf32>
    %cst_35 = arith.constant dense<0x7F800000> : vector<128xf32>
    %110 = vector.multi_reduction <minimumf>, %109, %cst_35 [1] : vector<128x128xf32> to vector<128xf32>
    %111 = vector.shape_cast %110 : vector<128xf32> to vector<128x1xf32>
    %c5_i32 = arith.constant 5 : i32
    %112 = vector.broadcast %c5_i32 : i32 to vector<128x9xi32>
    %113 = arith.cmpi eq, %17, %112 : vector<128x9xi32>
    %114 = vector.shape_cast %111 : vector<128x1xf32> to vector<128x1xf32>
    %115 = vector.broadcast %114 : vector<128x1xf32> to vector<128x9xf32>
    %116 = arith.select %113, %115, %99 : vector<128x9xi1>, vector<128x9xf32>
    %117 = vector.broadcast %111 : vector<128x1xf32> to vector<128x128xf32>
    %118 = arith.cmpf oeq, %16, %117 : vector<128x128xf32>
    %cst_36 = arith.constant 0xFF800000 : f32
    %119 = vector.broadcast %cst_36 : f32 to vector<128x128xf32>
    %120 = arith.select %118, %119, %103 : vector<128x128xi1>, vector<128x128xf32>
    %cst_37 = arith.constant dense<0xFF800000> : vector<128xf32>
    %121 = vector.multi_reduction <maximumf>, %120, %cst_37 [1] : vector<128x128xf32> to vector<128xf32>
    %122 = vector.shape_cast %121 : vector<128xf32> to vector<128x1xf32>
    %123 = vector.broadcast %122 : vector<128x1xf32> to vector<128x128xf32>
    %124 = arith.cmpf oeq, %120, %123 : vector<128x128xf32>
    %cst_38 = arith.constant 3.000000e+38 : f32
    %125 = vector.broadcast %cst_38 : f32 to vector<128x128xf32>
    %126 = arith.select %124, %16, %125 : vector<128x128xi1>, vector<128x128xf32>
    %cst_39 = arith.constant dense<0x7F800000> : vector<128xf32>
    %127 = vector.multi_reduction <minimumf>, %126, %cst_39 [1] : vector<128x128xf32> to vector<128xf32>
    %128 = vector.shape_cast %127 : vector<128xf32> to vector<128x1xf32>
    %c6_i32 = arith.constant 6 : i32
    %129 = vector.broadcast %c6_i32 : i32 to vector<128x9xi32>
    %130 = arith.cmpi eq, %17, %129 : vector<128x9xi32>
    %131 = vector.shape_cast %128 : vector<128x1xf32> to vector<128x1xf32>
    %132 = vector.broadcast %131 : vector<128x1xf32> to vector<128x9xf32>
    %133 = arith.select %130, %132, %116 : vector<128x9xi1>, vector<128x9xf32>
    %134 = vector.broadcast %128 : vector<128x1xf32> to vector<128x128xf32>
    %135 = arith.cmpf oeq, %16, %134 : vector<128x128xf32>
    %cst_40 = arith.constant 0xFF800000 : f32
    %136 = vector.broadcast %cst_40 : f32 to vector<128x128xf32>
    %137 = arith.select %135, %136, %120 : vector<128x128xi1>, vector<128x128xf32>
    %cst_41 = arith.constant dense<0xFF800000> : vector<128xf32>
    %138 = vector.multi_reduction <maximumf>, %137, %cst_41 [1] : vector<128x128xf32> to vector<128xf32>
    %139 = vector.shape_cast %138 : vector<128xf32> to vector<128x1xf32>
    %140 = vector.broadcast %139 : vector<128x1xf32> to vector<128x128xf32>
    %141 = arith.cmpf oeq, %137, %140 : vector<128x128xf32>
    %cst_42 = arith.constant 3.000000e+38 : f32
    %142 = vector.broadcast %cst_42 : f32 to vector<128x128xf32>
    %143 = arith.select %141, %16, %142 : vector<128x128xi1>, vector<128x128xf32>
    %cst_43 = arith.constant dense<0x7F800000> : vector<128xf32>
    %144 = vector.multi_reduction <minimumf>, %143, %cst_43 [1] : vector<128x128xf32> to vector<128xf32>
    %145 = vector.shape_cast %144 : vector<128xf32> to vector<128x1xf32>
    %c7_i32 = arith.constant 7 : i32
    %146 = vector.broadcast %c7_i32 : i32 to vector<128x9xi32>
    %147 = arith.cmpi eq, %17, %146 : vector<128x9xi32>
    %148 = vector.shape_cast %145 : vector<128x1xf32> to vector<128x1xf32>
    %149 = vector.broadcast %148 : vector<128x1xf32> to vector<128x9xf32>
    %150 = arith.select %147, %149, %133 : vector<128x9xi1>, vector<128x9xf32>
    %151 = vector.broadcast %145 : vector<128x1xf32> to vector<128x128xf32>
    %152 = arith.cmpf oeq, %16, %151 : vector<128x128xf32>
    %cst_44 = arith.constant 0xFF800000 : f32
    %153 = vector.broadcast %cst_44 : f32 to vector<128x128xf32>
    %154 = arith.select %152, %153, %137 : vector<128x128xi1>, vector<128x128xf32>
    %cst_45 = arith.constant dense<0xFF800000> : vector<128xf32>
    %155 = vector.multi_reduction <maximumf>, %154, %cst_45 [1] : vector<128x128xf32> to vector<128xf32>
    %156 = vector.shape_cast %155 : vector<128xf32> to vector<128x1xf32>
    %157 = vector.broadcast %156 : vector<128x1xf32> to vector<128x128xf32>
    %158 = arith.cmpf oeq, %154, %157 : vector<128x128xf32>
    %cst_46 = arith.constant 3.000000e+38 : f32
    %159 = vector.broadcast %cst_46 : f32 to vector<128x128xf32>
    %160 = arith.select %158, %16, %159 : vector<128x128xi1>, vector<128x128xf32>
    %cst_47 = arith.constant dense<0x7F800000> : vector<128xf32>
    %161 = vector.multi_reduction <minimumf>, %160, %cst_47 [1] : vector<128x128xf32> to vector<128xf32>
    %162 = vector.shape_cast %161 : vector<128xf32> to vector<128x1xf32>
    %c8_i32 = arith.constant 8 : i32
    %163 = vector.broadcast %c8_i32 : i32 to vector<128x9xi32>
    %164 = arith.cmpi eq, %17, %163 : vector<128x9xi32>
    %165 = vector.shape_cast %162 : vector<128x1xf32> to vector<128x1xf32>
    %166 = vector.broadcast %165 : vector<128x1xf32> to vector<128x9xf32>
    %167 = arith.select %164, %166, %150 : vector<128x9xi1>, vector<128x9xf32>
    %168 = arith.fptosi %167 : vector<128x9xf32> to vector<128x9xi32>
    %c0_48 = arith.constant 0 : index
    %c0_49 = arith.constant 0 : index
    %c0_50 = arith.constant 0 : index
    %169 = vector.load %arg6[%c0_48, %c0_49, %c0_50] : memref<1x128x9xi32, #tpu.memory_space<vmem>>, vector<1x128x9xi32>
    %170 = vector.shape_cast %169 : vector<1x128x9xi32> to vector<128x9xi32>
    %171 = vector.shape_cast %168 : vector<128x9xi32> to vector<1x128x9xi32>
    tpu.vector_store %arg6[%c0_48, %c0_49, %c0_50], %171 {strides = array<i32>} : memref<1x128x9xi32, #tpu.memory_space<vmem>>, vector<1x128x9xi32>,
    return
  }
  func.func @transform_0(%arg0: i32, %arg1: i32) -> (i32, i32, i32) {
    %c0_i32 = arith.constant 0 : i32
    %c0_i32_0 = arith.constant 0 : i32
    return %arg0, %arg1, %c0_i32 : i32, i32, i32
  }
  func.func @transform_1(%arg0: i32, %arg1: i32) -> (i32, i32, i32) {
    %c0_i32 = arith.constant 0 : i32
    %c0_i32_0 = arith.constant 0 : i32
    %c0_i32_1 = arith.constant 0 : i32
    return %arg0, %c0_i32, %c0_i32_0 : i32, i32, i32
  }
  func.func @transform_2(%arg0: i32, %arg1: i32) -> (i32, i32, i32) {
    %c0_i32 = arith.constant 0 : i32
    %c0_i32_0 = arith.constant 0 : i32
    return %arg0, %arg1, %c0_i32 : i32, i32, i32
  }
  func.func @transform_3(%arg0: i32, %arg1: i32) -> (i32, i32, i32) {
    %c0_i32 = arith.constant 0 : i32
    %c0_i32_0 = arith.constant 0 : i32
    %c0_i32_1 = arith.constant 0 : i32
    return %arg0, %c0_i32, %c0_i32_0 : i32, i32, i32
  }
  func.func @transform_4(%arg0: i32, %arg1: i32) -> (i32, i32, i32) {
    %c0_i32 = arith.constant 0 : i32
    %c0_i32_0 = arith.constant 0 : i32
    return %arg0, %arg1, %c0_i32 : i32, i32, i32
  }
}

module attributes {stable_mosaic.version = 11 : i64} {
  func.func @_gc_conv_kernel(%arg0: i32, %arg1: i32, %arg2: memref<1x128x8xbf16, #tpu.memory_space<vmem>>, %arg3: memref<1x128x72xbf16, #tpu.memory_space<vmem>>, %arg4: memref<8x8xbf16, #tpu.memory_space<vmem>>, %arg5: memref<24x8xbf16, #tpu.memory_space<vmem>>, %arg6: memref<3x8x8xf32, #tpu.memory_space<vmem>>, %arg7: memref<1x8xf32, #tpu.memory_space<vmem>>, %arg8: memref<8x1xf32, #tpu.memory_space<vmem>>, %arg9: memref<1x8x128xf32, #tpu.memory_space<vmem>>) attributes {dimension_semantics = [#tpu.dimension_semantics<parallel>, #tpu.dimension_semantics<parallel>], iteration_bounds = array<i64: 2, 1>, scalar_prefetch = 0 : i64, scratch_operands = 0 : i64, tpu.core_type = #tpu.core_type<tc>, window_params = [{transform_indices = @transform_0, window_bounds = array<i64: 1, 128, 8>}, {transform_indices = @transform_1, window_bounds = array<i64: 1, 128, 72>}, {pipeline_mode = #tpu.pipeline_mode<synchronous>, transform_indices = @transform_2, window_bounds = array<i64: 8, 8>}, {pipeline_mode = #tpu.pipeline_mode<synchronous>, transform_indices = @transform_3, window_bounds = array<i64: 24, 8>}, {pipeline_mode = #tpu.pipeline_mode<synchronous>, transform_indices = @transform_4, window_bounds = array<i64: 3, 8, 8>}, {pipeline_mode = #tpu.pipeline_mode<synchronous>, transform_indices = @transform_5, window_bounds = array<i64: 1, 8>}, {pipeline_mode = #tpu.pipeline_mode<synchronous>, transform_indices = @transform_6, window_bounds = array<i64: 8, 1>}, {transform_indices = @transform_7, window_bounds = array<i64: 1, 8, 128>}]} {
    %c0 = arith.constant 0 : index
    %c0_0 = arith.constant 0 : index
    %c0_1 = arith.constant 0 : index
    %0 = vector.load %arg2[%c0, %c0_0, %c0_1] : memref<1x128x8xbf16, #tpu.memory_space<vmem>>, vector<1x128x8xbf16>
    %1 = vector.shape_cast %0 : vector<1x128x8xbf16> to vector<128x8xbf16>
    %c0_2 = arith.constant 0 : index
    %c0_3 = arith.constant 0 : index
    %2 = vector.load %arg4[%c0_2, %c0_3] : memref<8x8xbf16, #tpu.memory_space<vmem>>, vector<8x8xbf16>
    %cst = arith.constant dense<0.000000e+00> : vector<128x8xf32>
    %3 = tpu.matmul %1, %2, %cst {dimension_numbers = #tpu.dot_dimension_numbers<[1], [0], [0], [1], [0, 0, 1, 1], [], []>} : vector<128x8xbf16>, vector<8x8xbf16>, vector<128x8xf32> -> vector<128x8xf32>
    %c0_4 = arith.constant 0 : index
    %c0_5 = arith.constant 0 : index
    %4 = vector.load %arg7[%c0_4, %c0_5] : memref<1x8xf32, #tpu.memory_space<vmem>>, vector<1x8xf32>
    %5 = vector.broadcast %4 : vector<1x8xf32> to vector<128x8xf32>
    %6 = arith.addf %3, %5 : vector<128x8xf32>
    %c0_6 = arith.constant 0 : index
    %c0_7 = arith.constant 0 : index
    %c0_8 = arith.constant 0 : index
    %7 = vector.load %arg3[%c0_6, %c0_7, %c0_8] : memref<1x128x72xbf16, #tpu.memory_space<vmem>>, vector<1x128x24xbf16>
    %8 = vector.shape_cast %7 : vector<1x128x24xbf16> to vector<128x24xbf16>
    %c0_9 = arith.constant 0 : index
    %c0_10 = arith.constant 0 : index
    %9 = vector.load %arg5[%c0_9, %c0_10] : memref<24x8xbf16, #tpu.memory_space<vmem>>, vector<24x8xbf16>
    %cst_11 = arith.constant dense<0.000000e+00> : vector<128x8xf32>
    %10 = tpu.matmul %8, %9, %cst_11 {dimension_numbers = #tpu.dot_dimension_numbers<[1], [0], [0], [1], [0, 0, 1, 1], [], []>} : vector<128x24xbf16>, vector<24x8xbf16>, vector<128x8xf32> -> vector<128x8xf32>
    %11 = arith.subf %6, %10 : vector<128x8xf32>
    %cst_12 = arith.constant 0.000000e+00 : f32
    %12 = vector.broadcast %cst_12 : f32 to vector<128x8xf32>
    %13 = arith.maximumf %11, %12 : vector<128x8xf32>
    %c0_13 = arith.constant 0 : index
    %c0_14 = arith.constant 0 : index
    %c0_15 = arith.constant 0 : index
    %14 = vector.load %arg6[%c0_13, %c0_14, %c0_15] : memref<3x8x8xf32, #tpu.memory_space<vmem>>, vector<1x8x8xf32>
    %15 = vector.shape_cast %14 : vector<1x8x8xf32> to vector<8x8xf32>
    %cst_16 = arith.constant dense<0.000000e+00> : vector<8x128xf32>
    %16 = tpu.matmul %15, %13, %cst_16 {dimension_numbers = #tpu.dot_dimension_numbers<[1], [1], [0], [0], [0, 0, 1, 0], [], []>} : vector<8x8xf32>, vector<128x8xf32>, vector<8x128xf32> -> vector<8x128xf32>
    %c0_17 = arith.constant 0 : index
    %c0_18 = arith.constant 0 : index
    %c24 = arith.constant 24 : index
    %17 = vector.load %arg3[%c0_17, %c0_18, %c24] : memref<1x128x72xbf16, #tpu.memory_space<vmem>>, vector<1x128x24xbf16>
    %18 = vector.shape_cast %17 : vector<1x128x24xbf16> to vector<128x24xbf16>
    %c0_19 = arith.constant 0 : index
    %c0_20 = arith.constant 0 : index
    %19 = vector.load %arg5[%c0_19, %c0_20] : memref<24x8xbf16, #tpu.memory_space<vmem>>, vector<24x8xbf16>
    %cst_21 = arith.constant dense<0.000000e+00> : vector<128x8xf32>
    %20 = tpu.matmul %18, %19, %cst_21 {dimension_numbers = #tpu.dot_dimension_numbers<[1], [0], [0], [1], [0, 0, 1, 1], [], []>} : vector<128x24xbf16>, vector<24x8xbf16>, vector<128x8xf32> -> vector<128x8xf32>
    %21 = arith.subf %6, %20 : vector<128x8xf32>
    %cst_22 = arith.constant 0.000000e+00 : f32
    %22 = vector.broadcast %cst_22 : f32 to vector<128x8xf32>
    %23 = arith.maximumf %21, %22 : vector<128x8xf32>
    %c1 = arith.constant 1 : index
    %c0_23 = arith.constant 0 : index
    %c0_24 = arith.constant 0 : index
    %24 = vector.load %arg6[%c1, %c0_23, %c0_24] : memref<3x8x8xf32, #tpu.memory_space<vmem>>, vector<1x8x8xf32>
    %25 = vector.shape_cast %24 : vector<1x8x8xf32> to vector<8x8xf32>
    %cst_25 = arith.constant dense<0.000000e+00> : vector<8x128xf32>
    %26 = tpu.matmul %25, %23, %cst_25 {dimension_numbers = #tpu.dot_dimension_numbers<[1], [1], [0], [0], [0, 0, 1, 0], [], []>} : vector<8x8xf32>, vector<128x8xf32>, vector<8x128xf32> -> vector<8x128xf32>
    %27 = arith.addf %16, %26 : vector<8x128xf32>
    %c0_26 = arith.constant 0 : index
    %c0_27 = arith.constant 0 : index
    %c48 = arith.constant 48 : index
    %28 = vector.load %arg3[%c0_26, %c0_27, %c48] : memref<1x128x72xbf16, #tpu.memory_space<vmem>>, vector<1x128x24xbf16>
    %29 = vector.shape_cast %28 : vector<1x128x24xbf16> to vector<128x24xbf16>
    %c0_28 = arith.constant 0 : index
    %c0_29 = arith.constant 0 : index
    %30 = vector.load %arg5[%c0_28, %c0_29] : memref<24x8xbf16, #tpu.memory_space<vmem>>, vector<24x8xbf16>
    %cst_30 = arith.constant dense<0.000000e+00> : vector<128x8xf32>
    %31 = tpu.matmul %29, %30, %cst_30 {dimension_numbers = #tpu.dot_dimension_numbers<[1], [0], [0], [1], [0, 0, 1, 1], [], []>} : vector<128x24xbf16>, vector<24x8xbf16>, vector<128x8xf32> -> vector<128x8xf32>
    %32 = arith.subf %6, %31 : vector<128x8xf32>
    %cst_31 = arith.constant 0.000000e+00 : f32
    %33 = vector.broadcast %cst_31 : f32 to vector<128x8xf32>
    %34 = arith.maximumf %32, %33 : vector<128x8xf32>
    %c2 = arith.constant 2 : index
    %c0_32 = arith.constant 0 : index
    %c0_33 = arith.constant 0 : index
    %35 = vector.load %arg6[%c2, %c0_32, %c0_33] : memref<3x8x8xf32, #tpu.memory_space<vmem>>, vector<1x8x8xf32>
    %36 = vector.shape_cast %35 : vector<1x8x8xf32> to vector<8x8xf32>
    %cst_34 = arith.constant dense<0.000000e+00> : vector<8x128xf32>
    %37 = tpu.matmul %36, %34, %cst_34 {dimension_numbers = #tpu.dot_dimension_numbers<[1], [1], [0], [0], [0, 0, 1, 0], [], []>} : vector<8x8xf32>, vector<128x8xf32>, vector<8x128xf32> -> vector<8x128xf32>
    %38 = arith.addf %27, %37 : vector<8x128xf32>
    %c0_35 = arith.constant 0 : index
    %c0_36 = arith.constant 0 : index
    %39 = vector.load %arg8[%c0_35, %c0_36] : memref<8x1xf32, #tpu.memory_space<vmem>>, vector<8x1xf32>
    %40 = vector.broadcast %39 : vector<8x1xf32> to vector<8x128xf32>
    %41 = arith.addf %38, %40 : vector<8x128xf32>
    %cst_37 = arith.constant 0.000000e+00 : f32
    %42 = vector.broadcast %cst_37 : f32 to vector<8x128xf32>
    %43 = arith.maximumf %41, %42 : vector<8x128xf32>
    %c0_38 = arith.constant 0 : index
    %c0_39 = arith.constant 0 : index
    %c0_40 = arith.constant 0 : index
    %44 = vector.load %arg9[%c0_38, %c0_39, %c0_40] : memref<1x8x128xf32, #tpu.memory_space<vmem>>, vector<1x8x128xf32>
    %45 = vector.shape_cast %44 : vector<1x8x128xf32> to vector<8x128xf32>
    %46 = vector.shape_cast %43 : vector<8x128xf32> to vector<1x8x128xf32>
    tpu.vector_store %arg9[%c0_38, %c0_39, %c0_40], %46 {strides = array<i32>} : memref<1x8x128xf32, #tpu.memory_space<vmem>>, vector<1x8x128xf32>,
    return
  }
  func.func @transform_0(%arg0: i32, %arg1: i32) -> (i32, i32, i32) {
    %c0_i32 = arith.constant 0 : i32
    %c0_i32_0 = arith.constant 0 : i32
    return %arg0, %arg1, %c0_i32 : i32, i32, i32
  }
  func.func @transform_1(%arg0: i32, %arg1: i32) -> (i32, i32, i32) {
    %c0_i32 = arith.constant 0 : i32
    %c0_i32_0 = arith.constant 0 : i32
    return %arg0, %arg1, %c0_i32 : i32, i32, i32
  }
  func.func @transform_2(%arg0: i32, %arg1: i32) -> (i32, i32) {
    %c0_i32 = arith.constant 0 : i32
    %c0_i32_0 = arith.constant 0 : i32
    %c0_i32_1 = arith.constant 0 : i32
    return %c0_i32, %c0_i32_0 : i32, i32
  }
  func.func @transform_3(%arg0: i32, %arg1: i32) -> (i32, i32) {
    %c0_i32 = arith.constant 0 : i32
    %c0_i32_0 = arith.constant 0 : i32
    %c0_i32_1 = arith.constant 0 : i32
    return %c0_i32, %c0_i32_0 : i32, i32
  }
  func.func @transform_4(%arg0: i32, %arg1: i32) -> (i32, i32, i32) {
    %c0_i32 = arith.constant 0 : i32
    %c0_i32_0 = arith.constant 0 : i32
    %c0_i32_1 = arith.constant 0 : i32
    %c0_i32_2 = arith.constant 0 : i32
    return %c0_i32, %c0_i32_0, %c0_i32_1 : i32, i32, i32
  }
  func.func @transform_5(%arg0: i32, %arg1: i32) -> (i32, i32) {
    %c0_i32 = arith.constant 0 : i32
    %c0_i32_0 = arith.constant 0 : i32
    %c0_i32_1 = arith.constant 0 : i32
    return %c0_i32, %c0_i32_0 : i32, i32
  }
  func.func @transform_6(%arg0: i32, %arg1: i32) -> (i32, i32) {
    %c0_i32 = arith.constant 0 : i32
    %c0_i32_0 = arith.constant 0 : i32
    %c0_i32_1 = arith.constant 0 : i32
    return %c0_i32, %c0_i32_0 : i32, i32
  }
  func.func @transform_7(%arg0: i32, %arg1: i32) -> (i32, i32, i32) {
    %c0_i32 = arith.constant 0 : i32
    %c0_i32_0 = arith.constant 0 : i32
    return %arg0, %c0_i32, %arg1 : i32, i32, i32
  }
}

</mosaic_0001>

<bundles_post_ra>
// kernel: gc_block_forward.2
= control target key start
LH: loop header
LB: loop body
LE: loop exit
PB: predicated region body
PF: predicated region fallthrough
CT: control target
= control target key end

     0   :  { %s2480_s15 = smov 0   ;;  %s2482_s16 = smov 0   ;;  %s4515_s0 = inlined_call_operand.vmem [shape: f32[2,128,8], index: 0, kind: input, shape index: {}, may-alias: {0,1}]   ;;  %s4516_s1 = inlined_call_operand.vmem [shape: f32[2,128,8], index: 1, kind: input, shape index: {}, may-alias: {0,1}]   ;;  %s4517_s2 = inlined_call_operand.vmem [shape: f32[2,128,1], index: 2, kind: input, shape index: {}]   ;;  %s4518_s3 = inlined_call_operand.vmem [shape: f32[2,1,128], index: 3, kind: input, shape index: {}]   ;;  %s4519_s4 = inlined_call_operand.vmem [shape: s32[2,128,9], index: 4, kind: output, shape index: {}]  }
   0x1   :  { %s2484_s17 = smov 0  }
   0x2 LB: > { %s26_s18 = sadd.s32 1, %s2448_s16  ;;  %p2171_p0 = scmp.ge.s32.totalorder %s2452_s17, 1  ;;  %s2452_s17 = sphi %s2484_s17, %s14_s17   ;;  %s2448_s16 = sphi %s2482_s16, %s4745_s16   ;;  %s2444_s15 = sphi %s2480_s15, %s4744_s15  }
   0x3   : > { %p28_p1 = scmp.ge.s32.totalorder %s26_s18, 2  ;;  %p218_p2 = scmp.lt.s32.totalorder %s2452_s17, 3 }
   0x5   : > { %s4747_s18 = smov (%p28_p1, %s26_s18), 0  ;;  %p219_p3 = pnand %p2171_p0, %p218_p2 }
   0x7   : > { %222 = sbr.rel (%p219_p3) target bundleno = 2936 (0xb78), region = 36 }
   0xe   : > { %p270_p4 = scmp.lt.s32.totalorder %s2444_s15, 1  ;;  %v2454_v0 = vmov 0   ;;  %vm339_vm0 = vcmask 64512  }
   0xf   : > { %2429 = vset.pattern.permute.xlu1 %v2454_v0  ;;  %2428 = vset.pattern.permute.xlu0 %v2454_v0  ;;  %vm2511_vm1 = vmpackc.low %vm339_vm0, %vm339_vm0 }
  0x10   : > { %s4749_s15 = smov (!%p270_p4, %s2444_s15), 1 }
  0x11   : > { %s2501_s19 = sshll.u32 %s4749_s15, 7  ;;  %s296_s5 = scalar_lea.vmem %s4518_s3, %s4749_s15 }
  0x12   : > { %s2507_s22 = scalar_lea.vmem %s4516_s1, %s2501_s19  ;;  %s2523_s25 = scalar_lea.vmem %s4515_s0, %s2501_s19 }
  0x13   : > { %v323_v2 = vld [vmem:[%s2507_s22] sm:$0xff]  ;;  %v324_v3 = vld [vmem:[%s2507_s22 + $0x8] sm:$0xff]  ;;  %v325_v4 = vld [vmem:[%s2507_s22 + $0x10] sm:$0xff]  ;;  %s2547_s28 = scalar_lea.vmem %s4517_s2, %s2501_s19  ;;  %s4381_s8 = scalar_lea.vmem %s4519_s4, %s2501_s19 }
  0x14   : > { %v2307_v5 = vpack.c.bf16 %v324_v3, %v323_v2  ;;  %v326_v6 = vld [vmem:[%s2507_s22 + $0x18] sm:$0xff]  ;;  %v307_v8 = vld [vmem:[%s2523_s25] sm:$0xff]  ;;  %v328_v11 = vld [vmem:[%s2507_s22 + $0x28] sm:$0xff] }
  0x15   : > { %v2313_v7 = vpack.c.bf16 %v326_v6, %v325_v4  ;;  %v315_v9 = vld [vmem:[%s2523_s25 + $0x40] sm:$0xff]  ;;  %2283 = vmatprep.mubr.msk.f32.mxu0 %vm339_vm0, %v307_v8  ;;  %v599_v13 = vld [vmem:[%s2547_s28 + $0x10] sm:$0xff]  ;;  %v600_v14 = vld [vmem:[%s2547_s28 + $0x18] sm:$0xff] }
  0x16   : > { %2309 = vmatprep.subr.msk.bf16.mxu0 %vm2511_vm1, %v2307_v5  ;;  %2355 = vmatprep.subr.msk.bf16.mxu1 %vm2511_vm1, %v2307_v5  ;;  %v327_v10 = vld [vmem:[%s2507_s22 + $0x20] sm:$0xff]  ;;  %v329_v16 = vld [vmem:[%s2507_s22 + $0x30] sm:$0xff]  ;;  %v330_v17 = vld [vmem:[%s2507_s22 + $0x38] sm:$0xff] }
  0x17   : > { %2312 = vmatpush3.bf16.xpose.msk.msra.mxu0 %vm2511_vm1, %v2307_v5  ;;  %2363 = vmatpush3.bf16.xpose.msk.msra.mxu1 %vm2511_vm1, %v2307_v5  ;;  %v2319_v12 = vpack.c.bf16 %v328_v11, %v327_v10  ;;  %v597_v15 = vld [vmem:[%s2547_s28] sm:$0xff]  ;;  %v598_v18 = vld [vmem:[%s2547_s28 + $0x8] sm:$0xff]  ;;  %v2325_v20 = vpack.c.bf16 %v330_v17, %v329_v16  ;;  %v604_v22 = vld [vmem:[%s2547_s28 + $0x38] sm:$0xff] }
  0x18   : > { %2315 = vmatprep.subr.msk.bf16.mxu0 %vm2511_vm1, %v2313_v7  ;;  %2356 = vmatprep.subr.msk.bf16.mxu1 %vm2511_vm1, %v2313_v7  ;;  %v602_v19 = vld [vmem:[%s2547_s28 + $0x28] sm:$0xff]  ;;  %v601_v21 = vld [vmem:[%s2547_s28 + $0x20] sm:$0xff]  ;;  %v603_v25 = vld [vmem:[%s2547_s28 + $0x30] sm:$0xff] }
  0x19   : > { %2295 = vmatprep.mubr.msk.f32.mxu1 %vm339_vm0, %v315_v9  ;;  %625 = vperm.xlu1 %2429, %v599_v13   ;;  %v331_v23 = vld [vmem:[%s2507_s22 + $0x40] sm:$0xff]  ;;  %v332_v24 = vld [vmem:[%s2507_s22 + $0x48] sm:$0xff]  ;;  %v608_v29 = vld [vmem:[%s2547_s28 + $0x58] sm:$0xff] }
  0x1a   : > { %615 = vperm.xlu0 %2428, %v597_v15   ;;  %v606_v26 = vld [vmem:[%s2547_s28 + $0x48] sm:$0xff]  ;;  %v2331_v27 = vpack.c.bf16 %v332_v24, %v331_v23  ;;  %v605_v28 = vld [vmem:[%s2547_s28 + $0x40] sm:$0xff]  ;;  %v333_v30 = vld [vmem:[%s2507_s22 + $0x50] sm:$0xff] }
  0x1b   : > { %v334_v31 = vld [vmem:[%s2507_s22 + $0x58] sm:$0xff]  ;;  %v607_v32 = vld [vmem:[%s2547_s28 + $0x50] sm:$0xff]  ;;  %v610_v33 = vld [vmem:[%s2547_s28 + $0x68] sm:$0xff] }
  0x1c   : > { %v2337_v34 = vpack.c.bf16 %v334_v31, %v333_v30  ;;  %v609_v35 = vld [vmem:[%s2547_s28 + $0x60] sm:$0xff]  ;;  %v612_v36 = vld [vmem:[%s2547_s28 + $0x78] sm:$0xff]  ;;  %v336_v38 = vld [vmem:[%s2507_s22 + $0x68] sm:$0xff] }
  0x1d   : > { %630 = vperm.xlu1 %2429, %v600_v14   ;;  %v335_v37 = vld [vmem:[%s2507_s22 + $0x60] sm:$0xff]  ;;  %v611_v39 = vld [vmem:[%s2547_s28 + $0x70] sm:$0xff]  ;;  %v338_v42 = vld [vmem:[%s2507_s22 + $0x78] sm:$0xff] }
  0x1e   : > { %620 = vperm.xlu0 %2428, %v598_v18   ;;  %v2343_v40 = vpack.c.bf16 %v336_v38, %v335_v37  ;;  %v337_v41 = vld [vmem:[%s2507_s22 + $0x70] sm:$0xff]  ;;  %v308_v44 = vld [vmem:[%s2523_s25 + $0x8] sm:$0xff]  ;;  %v310_v48 = vld [vmem:[%s2523_s25 + $0x18] sm:$0xff] }
  0x1f   : > { %2318 = vmatpush3.bf16.xpose.msk.msra.mxu0 %vm2511_vm1, %v2313_v7  ;;  %2364 = vmatpush3.bf16.xpose.msk.msra.mxu1 %vm2511_vm1, %v2313_v7  ;;  %v2349_v43 = vpack.c.bf16 %v338_v42, %v337_v41  ;;  %v316_v45 = vld [vmem:[%s2523_s25 + $0x48] sm:$0xff]  ;;  %v309_v46 = vld [vmem:[%s2523_s25 + $0x10] sm:$0xff]  ;;  %v318_v49 = vld [vmem:[%s2523_s25 + $0x58] sm:$0xff] }
  0x20   : > { %2321 = vmatprep.subr.msk.bf16.mxu0 %vm2511_vm1, %v2319_v12  ;;  %2357 = vmatprep.subr.msk.bf16.mxu1 %vm2511_vm1, %v2319_v12  ;;  %v317_v47 = vld [vmem:[%s2523_s25 + $0x50] sm:$0xff]  ;;  %v311_v50 = vld [vmem:[%s2523_s25 + $0x20] sm:$0xff]  ;;  %v312_v52 = vld [vmem:[%s2523_s25 + $0x28] sm:$0xff] }
  0x21   : > { %640 = vperm.xlu1 %2429, %v602_v19   ;;  %v319_v51 = vld [vmem:[%s2523_s25 + $0x60] sm:$0xff]  ;;  %v320_v53 = vld [vmem:[%s2523_s25 + $0x68] sm:$0xff]  ;;  %v313_v54 = vld [vmem:[%s2523_s25 + $0x30] sm:$0xff] }
  0x22   : > { %635 = vperm.xlu0 %2428, %v601_v21   ;;  %v321_v55 = vld [vmem:[%s2523_s25 + $0x70] sm:$0xff]  ;;  %v314_v56 = vld [vmem:[%s2523_s25 + $0x38] sm:$0xff] }
  0x23   : > { %v322_v57 = vld [vmem:[%s2523_s25 + $0x78] sm:$0xff] }
  0x25   : > { %650 = vperm.xlu1 %2429, %v604_v22  }
  0x26   : > { %645 = vperm.xlu0 %2428, %v603_v25  }
  0x27   : > { %2324 = vmatpush3.bf16.xpose.msk.msra.mxu0 %vm2511_vm1, %v2319_v12  ;;  %2365 = vmatpush3.bf16.xpose.msk.msra.mxu1 %vm2511_vm1, %v2319_v12  ;;  %v2669_v12 = vld [vmem:[%s296_s5] ss:$0 sm:$0xff] }
  0x28   : > { %2327 = vmatprep.subr.msk.bf16.mxu0 %vm2511_vm1, %v2325_v20  ;;  %2358 = vmatprep.subr.msk.bf16.mxu1 %vm2511_vm1, %v2325_v20 }
  0x29   : > { %660 = vperm.xlu1 %2429, %v606_v26  }
  0x2a   : > { %655 = vperm.xlu0 %2428, %v605_v28  }
  0x2d   : > { %670 = vperm.xlu1 %2429, %v608_v29  }
  0x2e   : > { %665 = vperm.xlu0 %2428, %v607_v32  }
  0x2f   : > { %2330 = vmatpush3.bf16.xpose.msk.msra.mxu0 %vm2511_vm1, %v2325_v20  ;;  %2366 = vmatpush3.bf16.xpose.msk.msra.mxu1 %vm2511_vm1, %v2325_v20 }
  0x30   : > { %2333 = vmatprep.subr.msk.bf16.mxu0 %vm2511_vm1, %v2331_v27  ;;  %2359 = vmatprep.subr.msk.bf16.mxu1 %vm2511_vm1, %v2331_v27 }
  0x31   : > { %680 = vperm.xlu1 %2429, %v610_v33  }
  0x32   : > { %675 = vperm.xlu0 %2428, %v609_v35  }
  0x35   : > { %690 = vperm.xlu1 %2429, %v612_v36  }
  0x36   : > { %685 = vperm.xlu0 %2428, %v611_v39  }
  0x37   : > { %2336 = vmatpush3.bf16.xpose.msk.msra.mxu0 %vm2511_vm1, %v2331_v27  ;;  %2367 = vmatpush3.bf16.xpose.msk.msra.mxu1 %vm2511_vm1, %v2331_v27 }
  0x38   : > { %2339 = vmatprep.subr.msk.bf16.mxu0 %vm2511_vm1, %v2337_v34  ;;  %2360 = vmatprep.subr.msk.bf16.mxu1 %vm2511_vm1, %v2337_v34 }
  0x3f   : > { %2342 = vmatpush3.bf16.xpose.msk.msra.mxu0 %vm2511_vm1, %v2337_v34  ;;  %2368 = vmatpush3.bf16.xpose.msk.msra.mxu1 %vm2511_vm1, %v2337_v34 }
  0x40   : > { %2345 = vmatprep.subr.msk.bf16.mxu0 %vm2511_vm1, %v2343_v40  ;;  %2361 = vmatprep.subr.msk.bf16.mxu1 %vm2511_vm1, %v2343_v40 }
  0x47   : > { %2348 = vmatpush3.bf16.xpose.msk.msra.mxu0 %vm2511_vm1, %v2343_v40  ;;  %2369 = vmatpush3.bf16.xpose.msk.msra.mxu1 %vm2511_vm1, %v2343_v40 }
  0x48   : > { %2351 = vmatprep.subr.msk.bf16.mxu0 %vm2511_vm1, %v2349_v43  ;;  %2362 = vmatprep.subr.msk.bf16.mxu1 %vm2511_vm1, %v2349_v43 }
  0x4f   : > { %2354 = vmatpush3.bf16.xpose.msk.msra.mxu0 %vm2511_vm1, %v2349_v43  ;;  %2370 = vmatpush3.bf16.xpose.msk.msra.mxu1 %vm2511_vm1, %v2349_v43 }
  0x56   : > { %2284 = vmatmul.mubr.msk.f32.vlgmr.msra.gmra.mrb[0].mxu0 %vm339_vm0, %v308_v44  ;;  %2296 = vmatmul.mubr.msk.f32.vlgmr.msra.gmra.mrb[0].mxu1 %vm339_vm0, %v316_v45 }
  0x57   : > { %2286 = vmatprep.mubr.msk.f32.mxu0 %vm339_vm0, %v309_v46  ;;  %2298 = vmatprep.mubr.msk.f32.mxu1 %vm339_vm0, %v317_v47 }
  0x5a   : > { %2287 = vmatmul.mubr.msk.f32.gmra.mrb[2].mxu0 %vm339_vm0, %v310_v48  ;;  %2299 = vmatmul.mubr.msk.f32.gmra.mrb[2].mxu1 %vm339_vm0, %v318_v49 }
  0x5b   : > { %2289 = vmatprep.mubr.msk.f32.mxu0 %vm339_vm0, %v311_v50  ;;  %2301 = vmatprep.mubr.msk.f32.mxu1 %vm339_vm0, %v319_v51 }
  0x5e   : > { %2290 = vmatmul.mubr.msk.f32.gmra.mrb[4].mxu0 %vm339_vm0, %v312_v52  ;;  %2302 = vmatmul.mubr.msk.f32.gmra.mrb[4].mxu1 %vm339_vm0, %v320_v53 }
  0x5f   : > { %2292 = vmatprep.mubr.msk.f32.mxu0 %vm339_vm0, %v313_v54  ;;  %2304 = vmatprep.mubr.msk.f32.mxu1 %vm339_vm0, %v321_v55 }
  0x62   : > { %2293 = vmatmul.mubr.msk.f32.gmra.mrb[6].mxu0 %vm339_vm0, %v314_v56  ;;  %2305 = vmatmul.mubr.msk.f32.gmra.mrb[6].mxu1 %vm339_vm0, %v322_v57 }
  0x98   : > { %v2655_v59 = vpop.permute.xlu1 %625 }
  0x99   : > { %v616_v58 = vpop.permute.xlu0 %615 }
  0x9c   : > { %v631_v61 = vpop.permute.xlu1 %630 }
  0x9d   : > { %v621_v60 = vpop.permute.xlu0 %620 }
  0xa0   : > { %v2659_v63 = vpop.permute.xlu1 %640 }
  0xa1   : > { %v2657_v62 = vpop.permute.xlu0 %635 }
  0xa4   : > { %v2663_v1 = vpop.permute.xlu1 %650 }
  0xa5   : > { %v2661_v0 = vpop.permute.xlu0 %645 }
  0xa8   : > { %v661_v9 = vpop.permute.xlu1 %660 }
  0xa9   : > { %v656_v2 = vpop.permute.xlu0 %655 }
  0xac   : > { %v671_v36 = vpop.permute.xlu1 %670 }
  0xad   : > { %v666_v25 = vpop.permute.xlu0 %665 }
  0xb1   : > { %v676_v47 = vpop.permute.xlu0 %675 }
 0x129   : > { %v2285_v3 = vpop.f32.mrb[0].mxu0  ;;  %v2297_v4 = vpop.f32.mrb[0].mxu1 }
 0x12a   : > { %v582_v5 = vmul.f32 2.0, %v2285_v3  ;;  %v590_v6 = vmul.f32 2.0, %v2297_v4  ;;  %v502_v7 = vpop.f32.mrb[1].mxu0  ;;  %v542_v8 = vpop.f32.mrb[1].mxu1 }
 0x12b   : > { %v581_v10 = vmul.f32 2.0, %v502_v7  ;;  %v589_v11 = vmul.f32 2.0, %v542_v8 }
 0x12c   : > { %v694_v13 = vsub.f32 %v582_v5, %v621_v60  ;;  %v702_v14 = vsub.f32 %v590_v6, %v661_v9  ;;  %v681_v60 = vpop.permute.xlu1 %680 }
 0x12d   : > { %v693_v15 = vsub.f32 %v581_v10, %v616_v58  ;;  %v2288_v16 = vpop.f32.mrb[2].mxu0  ;;  %v2300_v17 = vpop.f32.mrb[2].mxu1  ;;  %v701_v18 = vsub.f32 %v589_v11, %v656_v2  ;;  %v732_v11 = vlaneseq }
 0x12e   : > { %v584_v19 = vmul.f32 2.0, %v2288_v16  ;;  %v512_v20 = vpop.f32.mrb[3].mxu0  ;;  %v552_v21 = vpop.f32.mrb[3].mxu1  ;;  %v2672_v22 = vsub.f32 %v702_v14, %v2669_v12  ;;  %v2675_v23 = vsub.f32 %v694_v13, %v2669_v12  ;;  %v592_v26 = vmul.f32 2.0, %v2300_v17 }
 0x12f   : > { %v591_v24 = vmul.f32 2.0, %v552_v21  ;;  %v2680_v33 = vsub.f32 %v701_v18, %v2669_v12  ;;  %v2683_v34 = vsub.f32 %v693_v15, %v2669_v12  ;;  %v583_v38 = vmul.f32 2.0, %v512_v20 }
 0x130   : > { %753 = vmax.xlane.f32.xlu0 %v2672_v22  ;;  %737 = vmax.xlane.f32.xlu1 %v2675_v23  ;;  %v696_v29 = vsub.f32 %v584_v19, %v631_v61  ;;  %v704_v37 = vsub.f32 %v592_v26, %v671_v36  ;;  %v686_v61 = vpop.permute.xlu0 %685  ;;  %v691_v8 = vpop.permute.xlu1 %690  ;;  %v2740_v13 = vand.u32 127, %v732_v11 }
 0x131   : > { %v2291_v27 = vpop.f32.mrb[4].mxu0  ;;  %v2303_v28 = vpop.f32.mrb[4].mxu1  ;;  %v703_v30 = vsub.f32 %v591_v24, %v666_v25  ;;  %v695_v48 = vsub.f32 %v583_v38, %v2655_v59 }
 0x132   : > { %v522_v31 = vpop.f32.mrb[5].mxu0  ;;  %v562_v32 = vpop.f32.mrb[5].mxu1  ;;  %v2692_v46 = vsub.f32 %v696_v29, %v2669_v12  ;;  %v586_v49 = vmul.f32 2.0, %v2291_v27  ;;  %v2698_v52 = vsub.f32 %v704_v37, %v2669_v12  ;;  %v594_v54 = vmul.f32 2.0, %v2303_v28 }
 0x133   : > { %v585_v35 = vmul.f32 2.0, %v522_v31  ;;  %v593_v42 = vmul.f32 2.0, %v562_v32  ;;  %v2689_v45 = vsub.f32 %v703_v30, %v2669_v12  ;;  %v2706_v55 = vsub.f32 %v695_v48, %v2669_v12 }
 0x134   : > { %751 = vmax.xlane.f32.xlu1 %v2680_v33  ;;  %735 = vmax.xlane.f32.xlu0 %v2683_v34  ;;  %v698_v56 = vsub.f32 %v586_v49, %v2659_v63  ;;  %v2743_v14 = vcvt.s32.f32 %v2740_v13 }
 0x135   : > { %v2294_v39 = vpop.f32.mrb[6].mxu0  ;;  %v2306_v40 = vpop.f32.mrb[6].mxu1  ;;  %v697_v41 = vsub.f32 %v585_v35, %v2657_v62  ;;  %v705_v50 = vsub.f32 %v593_v42, %v676_v47  ;;  %v706_v62 = vsub.f32 %v594_v54, %v681_v60 }
 0x136   : > { %v532_v43 = vpop.f32.mrb[7].mxu0  ;;  %v572_v44 = vpop.f32.mrb[7].mxu1  ;;  %v588_v2 = vmul.f32 2.0, %v2294_v39  ;;  %v2719_v63 = vsub.f32 %v698_v56, %v2669_v12  ;;  %v596_v5 = vmul.f32 2.0, %v2306_v40 }
 0x137   : > { %v587_v51 = vmul.f32 2.0, %v532_v43  ;;  %v2701_v53 = vsub.f32 %v697_v41, %v2669_v12  ;;  %v595_v58 = vmul.f32 2.0, %v572_v44  ;;  %v2711_v59 = vsub.f32 %v705_v50, %v2669_v12 }
 0x138   : > { %755 = vmax.xlane.f32.xlu1 %v2689_v45  ;;  %741 = vmax.xlane.f32.xlu0 %v2692_v46  ;;  %v2728_v7 = vsub.f32 %v706_v62, %v2669_v12  ;;  %v708_v9 = vsub.f32 %v596_v5, %v691_v8 }
 0x139   : > { %v699_v57 = vsub.f32 %v587_v51, %v2661_v0  ;;  %v707_v4 = vsub.f32 %v595_v58, %v686_v61  ;;  %v700_v0 = vsub.f32 %v588_v2, %v2663_v1 }
 0x13a   : > { %v2737_v1 = vsub.f32 %v708_v9, %v2669_v12 }
 0x13b   : > { %v2716_v3 = vsub.f32 %v699_v57, %v2669_v12  ;;  %v2725_v6 = vsub.f32 %v707_v4, %v2669_v12  ;;  %v2733_v10 = vsub.f32 %v700_v0, %v2669_v12 }
 0x13c   : > { %757 = vmax.xlane.f32.xlu0 %v2698_v52  ;;  %743 = vmax.xlane.f32.xlu1 %v2701_v53 }
 0x140   : > { %739 = vmax.xlane.f32.xlu0 %v2706_v55  ;;  %759 = vmax.xlane.f32.xlu1 %v2711_v59 }
 0x144   : > { %745 = vmax.xlane.f32.xlu0 %v2719_v63  ;;  %747 = vmax.xlane.f32.xlu1 %v2716_v3 }
 0x148   : > { %761 = vmax.xlane.f32.xlu0 %v2728_v7  ;;  %763 = vmax.xlane.f32.xlu1 %v2725_v6 }
 0x14c   : > { %749 = vmax.xlane.f32.xlu0 %v2733_v10 }
 0x150   : > { %765 = vmax.xlane.f32.xlu0 %v2737_v1 }
 0x1bd   : > { %v754_v15 = vpop.xlane.xlu0 %753  ;;  %v738_v16 = vpop.xlane.xlu1 %737 }
 0x1be   : > { %vm768_vm2 = vcmp.eq.f32.partialorder %v2675_v23, %v738_v16  ;;  %vm776_vm3 = vcmp.eq.f32.partialorder %v2672_v22, %v754_v15 }
 0x1bf   : > { %v784_v17 = vsel %vm768_vm2, %v2743_v14, 3e+38  ;;  %v792_v19 = vsel %vm776_vm3, %v2743_v14, 3e+38 }
 0x1c0   : > { %801 = vmin.xlane.f32.xlu0 %v784_v17 }
 0x1c1   : > { %v752_v18 = vpop.xlane.xlu1 %751  ;;  %v736_v12 = vpop.xlane.xlu0 %735 }
 0x1c2   : > { %vm767_vm4 = vcmp.eq.f32.partialorder %v2683_v34, %v736_v12  ;;  %vm775_vm5 = vcmp.eq.f32.partialorder %v2680_v33, %v752_v18 }
 0x1c3   : > { %v783_v20 = vsel %vm767_vm4, %v2743_v14, 3e+38  ;;  %v791_v26 = vsel %vm775_vm5, %v2743_v14, 3e+38 }
 0x1c4   : > { %817 = vmin.xlane.f32.xlu0 %v792_v19  ;;  %799 = vmin.xlane.f32.xlu1 %v783_v20 }
 0x1c5   : > { %v756_v21 = vpop.xlane.xlu1 %755  ;;  %v742_v24 = vpop.xlane.xlu0 %741 }
 0x1c6   : > { %vm770_vm6 = vcmp.eq.f32.partialorder %v2692_v46, %v742_v24  ;;  %vm777_vm9 = vcmp.eq.f32.partialorder %v2689_v45, %v756_v21 }
 0x1c7   : > { %v786_v25 = vsel %vm770_vm6, %v2743_v14, 3e+38  ;;  %v793_v37 = vsel %vm777_vm9, %v2743_v14, 3e+38 }
 0x1c8   : > { %805 = vmin.xlane.f32.xlu0 %v786_v25  ;;  %815 = vmin.xlane.f32.xlu1 %v791_v26 }
 0x1c9   : > { %v758_v27 = vpop.xlane.xlu0 %757  ;;  %v744_v28 = vpop.xlane.xlu1 %743 }
 0x1ca   : > { %vm778_vm7 = vcmp.eq.f32.partialorder %v2698_v52, %v758_v27  ;;  %vm771_vm11 = vcmp.eq.f32.partialorder %v2701_v53, %v744_v28 }
 0x1cb   : > { %v794_v29 = vsel %vm778_vm7, %v2743_v14, 3e+38  ;;  %v787_v41 = vsel %vm771_vm11, %v2743_v14, 3e+38 }
 0x1cc   : > { %821 = vmin.xlane.f32.xlu0 %v794_v29 }
 0x1cd   : > { %v740_v30 = vpop.xlane.xlu0 %739  ;;  %v760_v32 = vpop.xlane.xlu1 %759 }
 0x1ce   : > { %vm769_vm8 = vcmp.eq.f32.partialorder %v2706_v55, %v740_v30  ;;  %vm779_vm13 = vcmp.eq.f32.partialorder %v2711_v59, %v760_v32 }
 0x1cf   : > { %v785_v31 = vsel %vm769_vm8, %v2743_v14, 3e+38  ;;  %v795_v44 = vsel %vm779_vm13, %v2743_v14, 3e+38 }
 0x1d0   : > { %803 = vmin.xlane.f32.xlu1 %v785_v31 }
 0x1d1   : > { %v746_v35 = vpop.xlane.xlu0 %745  ;;  %v748_v39 = vpop.xlane.xlu1 %747 }
 0x1d2   : > { %vm772_vm10 = vcmp.eq.f32.partialorder %v2719_v63, %v746_v35  ;;  %vm773_vm15 = vcmp.eq.f32.partialorder %v2716_v3, %v748_v39 }
 0x1d3   : > { %v788_v36 = vsel %vm772_vm10, %v2743_v14, 3e+38  ;;  %v789_v50 = vsel %vm773_vm15, %v2743_v14, 3e+38 }
 0x1d4   : > { %809 = vmin.xlane.f32.xlu0 %v788_v36  ;;  %819 = vmin.xlane.f32.xlu1 %v793_v37 }
 0x1d5   : > { %v762_v38 = vpop.xlane.xlu0 %761  ;;  %v764_v47 = vpop.xlane.xlu1 %763 }
 0x1d6   : > { %vm780_vm12 = vcmp.eq.f32.partialorder %v2728_v7, %v762_v38  ;;  %vm781_vm1 = vcmp.eq.f32.partialorder %v2725_v6, %v764_v47 }
 0x1d7   : > { %v796_v40 = vsel %vm780_vm12, %v2743_v14, 3e+38  ;;  %v797_v51 = vsel %vm781_vm1, %v2743_v14, 3e+38 }
 0x1d8   : > { %825 = vmin.xlane.f32.xlu0 %v796_v40  ;;  %807 = vmin.xlane.f32.xlu1 %v787_v41 }
 0x1d9   : > { %v750_v42 = vpop.xlane.xlu0 %749 }
 0x1da   : > { %vm774_vm14 = vcmp.eq.f32.partialorder %v2733_v10, %v750_v42 }
 0x1db   : > { %v790_v43 = vsel %vm774_vm14, %v2743_v14, 3e+38 }
 0x1dc   : > { %813 = vmin.xlane.f32.xlu0 %v790_v43  ;;  %823 = vmin.xlane.f32.xlu1 %v795_v44 }
 0x1dd   : > { %v766_v48 = vpop.xlane.xlu0 %765 }
 0x1de   : > { %vm782_vm0 = vcmp.eq.f32.partialorder %v2737_v1, %v766_v48 }
 0x1df   : > { %v798_v49 = vsel %vm782_vm0, %v2743_v14, 3e+38 }
 0x1e0   : > { %829 = vmin.xlane.f32.xlu0 %v798_v49  ;;  %811 = vmin.xlane.f32.xlu1 %v789_v50 }
 0x1e4   : > { %827 = vmin.xlane.f32.xlu1 %v797_v51 }
 0x24d   : > { %v2777_v54 = vpop.xlane.xlu0 %801 }
 0x24e   : > { %vm849_vm2 = vcmp.eq.f32.partialorder %v2743_v14, %v2777_v54 }
 0x24f   : > { %v2782_v56 = vsel %vm849_vm2, -inf, %v2675_v23 }
 0x250   : > { %882 = vmax.xlane.f32.xlu0 %v2782_v56 }
 0x251   : > { %v2785_v57 = vpop.xlane.xlu0 %817  ;;  %v2787_v58 = vpop.xlane.xlu1 %799 }
 0x252   : > { %vm857_vm3 = vcmp.eq.f32.partialorder %v2743_v14, %v2785_v57  ;;  %vm848_vm4 = vcmp.eq.f32.partialorder %v2743_v14, %v2787_v58 }
 0x253   : > { %v2794_v60 = vsel %vm857_vm3, -inf, %v2672_v22  ;;  %v2797_v61 = vsel %vm848_vm4, -inf, %v2683_v34 }
 0x254   : > { %898 = vmax.xlane.f32.xlu0 %v2794_v60  ;;  %880 = vmax.xlane.f32.xlu1 %v2797_v61 }
 0x255   : > { %v2801_v23 = vpop.xlane.xlu0 %805  ;;  %v2803_v62 = vpop.xlane.xlu1 %815 }
 0x256   : > { %vm851_vm5 = vcmp.eq.f32.partialorder %v2743_v14, %v2801_v23  ;;  %vm856_vm6 = vcmp.eq.f32.partialorder %v2743_v14, %v2803_v62 }
 0x257   : > { %v2810_v22 = vsel %vm851_vm5, -inf, %v2692_v46  ;;  %v2813_v34 = vsel %vm856_vm6, -inf, %v2680_v33 }
 0x258   : > { %886 = vmax.xlane.f32.xlu0 %v2810_v22  ;;  %896 = vmax.xlane.f32.xlu1 %v2813_v34 }
 0x259   : > { %v2817_v2 = vpop.xlane.xlu0 %821 }
 0x25a   : > { %vm859_vm7 = vcmp.eq.f32.partialorder %v2743_v14, %v2817_v2 }
 0x25b   : > { %v2822_v4 = vsel %vm859_vm7, -inf, %v2698_v52 }
 0x25c   : > { %902 = vmax.xlane.f32.xlu0 %v2822_v4 }
 0x25d   : > { %v2825_v0 = vpop.xlane.xlu1 %803 }
 0x25e   : > { %vm850_vm8 = vcmp.eq.f32.partialorder %v2743_v14, %v2825_v0 }
 0x25f   : > { %v2830_v33 = vsel %vm850_vm8, -inf, %v2706_v55 }
 0x260   : > { %884 = vmax.xlane.f32.xlu1 %v2830_v33 }
 0x261   : > { %v2833_v46 = vpop.xlane.xlu0 %809  ;;  %v2835_v5 = vpop.xlane.xlu1 %819 }
 0x262   : > { %4596 = vst [vmem:[#allocation2_spill] sm:$0xff] %v2835_v5  ;;  %vm853_vm9 = vcmp.eq.f32.partialorder %v2743_v14, %v2833_v46  ;;  %vm858_vm10 = vcmp.eq.f32.partialorder %v2743_v14, %v2835_v5 }
 0x263   : > { %v2842_v52 = vsel %vm853_vm9, -inf, %v2719_v63  ;;  %v2845_v8 = vsel %vm858_vm10, -inf, %v2689_v45 }
 0x264   : > { %890 = vmax.xlane.f32.xlu0 %v2842_v52  ;;  %900 = vmax.xlane.f32.xlu1 %v2845_v8 }
 0x265   : > { %v2849_v55 = vpop.xlane.xlu0 %825  ;;  %v2851_v9 = vpop.xlane.xlu1 %807 }
 0x266   : > { %4597 = vst [vmem:[#allocation3_spill] sm:$0xff] %v2849_v55  ;;  %4598 = vst [vmem:[#allocation4_spill] sm:$0xff] %v2851_v9  ;;  %vm861_vm11 = vcmp.eq.f32.partialorder %v2743_v14, %v2849_v55  ;;  %vm852_vm12 = vcmp.eq.f32.partialorder %v2743_v14, %v2851_v9 }
 0x267   : > { %v2858_v63 = vsel %vm861_vm11, -inf, %v2728_v7  ;;  %v2861_v45 = vsel %vm852_vm12, -inf, %v2701_v53 }
 0x268   : > { %906 = vmax.xlane.f32.xlu0 %v2858_v63  ;;  %888 = vmax.xlane.f32.xlu1 %v2861_v45 }
 0x269   : > { %v2865_v11 = vpop.xlane.xlu0 %813  ;;  %v2867_v15 = vpop.xlane.xlu1 %823 }
 0x26a   : > { %4599 = vst [vmem:[#allocation5_spill] sm:$0xff] %v2865_v11  ;;  %4600 = vst [vmem:[#allocation6_spill] sm:$0xff] %v2867_v15  ;;  %vm855_vm13 = vcmp.eq.f32.partialorder %v2743_v14, %v2865_v11  ;;  %vm860_vm14 = vcmp.eq.f32.partialorder %v2743_v14, %v2867_v15 }
 0x26b   : > { %v2874_v7 = vsel %vm855_vm13, -inf, %v2733_v10  ;;  %v2877_v53 = vsel %vm860_vm14, -inf, %v2711_v59 }
 0x26c   : > { %894 = vmax.xlane.f32.xlu0 %v2874_v7  ;;  %904 = vmax.xlane.f32.xlu1 %v2877_v53 }
 0x26d   : > { %v2881_v16 = vpop.xlane.xlu0 %829  ;;  %v2883_v17 = vpop.xlane.xlu1 %811 }
 0x26e   : > { %4601 = vst [vmem:[#allocation7_spill] sm:$0xff] %v2881_v16  ;;  %4602 = vst [vmem:[#allocation8_spill] sm:$0xff] %v2883_v17  ;;  %vm863_vm15 = vcmp.eq.f32.partialorder %v2743_v14, %v2881_v16  ;;  %vm854_vm0 = vcmp.eq.f32.partialorder %v2743_v14, %v2883_v17 }
 0x26f   : > { %v2890_v10 = vsel %vm863_vm15, -inf, %v2737_v1  ;;  %v2893_v59 = vsel %vm854_vm0, -inf, %v2716_v3 }
 0x270   : > { %910 = vmax.xlane.f32.xlu0 %v2890_v10  ;;  %892 = vmax.xlane.f32.xlu1 %v2893_v59 }
 0x271   : > { %v2897_v18 = vpop.xlane.xlu1 %827 }
 0x272   : > { %4603 = vst [vmem:[#allocation9_spill] sm:$0xff] %v2897_v18  ;;  %vm862_vm1 = vcmp.eq.f32.partialorder %v2743_v14, %v2897_v18 }
 0x273   : > { %v2902_v12 = vsel %vm862_vm1, -inf, %v2725_v6 }
 0x274   : > { %908 = vmax.xlane.f32.xlu1 %v2902_v12 }
 0x2dd   : > { %v883_v19 = vpop.xlane.xlu0 %882 }
 0x2de   : > { %vm913_vm2 = vcmp.eq.f32.partialorder %v2782_v56, %v883_v19 }
 0x2df   : > { %v929_v3 = vsel %vm913_vm2, %v2743_v14, 3e+38 }
 0x2e0   : > { %946 = vmin.xlane.f32.xlu0 %v929_v3 }
 0x2e1   : > { %v899_v1 = vpop.xlane.xlu0 %898  ;;  %v881_v20 = vpop.xlane.xlu1 %880 }
 0x2e2   : > { %vm921_vm3 = vcmp.eq.f32.partialorder %v2794_v60, %v899_v1  ;;  %vm912_vm4 = vcmp.eq.f32.partialorder %v2797_v61, %v881_v20 }
 0x2e3   : > { %v937_v21 = vsel %vm921_vm3, %v2743_v14, 3e+38  ;;  %v928_v24 = vsel %vm912_vm4, %v2743_v14, 3e+38 }
 0x2e4   : > { %962 = vmin.xlane.f32.xlu0 %v937_v21  ;;  %944 = vmin.xlane.f32.xlu1 %v928_v24 }
 0x2e5   : > { %v887_v6 = vpop.xlane.xlu0 %886  ;;  %v897_v25 = vpop.xlane.xlu1 %896 }
 0x2e6   : > { %vm915_vm5 = vcmp.eq.f32.partialorder %v2810_v22, %v887_v6  ;;  %vm920_vm6 = vcmp.eq.f32.partialorder %v2813_v34, %v897_v25 }
 0x2e7   : > { %v931_v26 = vsel %vm915_vm5, %v2743_v14, 3e+38  ;;  %v936_v27 = vsel %vm920_vm6, %v2743_v14, 3e+38 }
 0x2e8   : > { %950 = vmin.xlane.f32.xlu0 %v931_v26  ;;  %960 = vmin.xlane.f32.xlu1 %v936_v27 }
 0x2e9   : > { %v903_v28 = vpop.xlane.xlu0 %902 }
 0x2ea   : > { %vm923_vm7 = vcmp.eq.f32.partialorder %v2822_v4, %v903_v28 }
 0x2eb   : > { %v939_v29 = vsel %vm923_vm7, %v2743_v14, 3e+38 }
 0x2ec   : > { %966 = vmin.xlane.f32.xlu0 %v939_v29 }
 0x2ed   : > { %v885_v30 = vpop.xlane.xlu1 %884 }
 0x2ee   : > { %vm914_vm8 = vcmp.eq.f32.partialorder %v2830_v33, %v885_v30 }
 0x2ef   : > { %v930_v31 = vsel %vm914_vm8, %v2743_v14, 3e+38 }
 0x2f0   : > { %948 = vmin.xlane.f32.xlu1 %v930_v31 }
 0x2f1   : > { %v891_v32 = vpop.xlane.xlu0 %890  ;;  %v901_v35 = vpop.xlane.xlu1 %900 }
 0x2f2   : > { %vm917_vm9 = vcmp.eq.f32.partialorder %v2842_v52, %v891_v32  ;;  %vm922_vm10 = vcmp.eq.f32.partialorder %v2845_v8, %v901_v35 }
 0x2f3   : > { %v933_v36 = vsel %vm917_vm9, %v2743_v14, 3e+38  ;;  %v938_v37 = vsel %vm922_vm10, %v2743_v14, 3e+38 }
 0x2f4   : > { %954 = vmin.xlane.f32.xlu0 %v933_v36  ;;  %964 = vmin.xlane.f32.xlu1 %v938_v37 }
 0x2f5   : > { %v907_v38 = vpop.xlane.xlu0 %906  ;;  %v889_v39 = vpop.xlane.xlu1 %888 }
 0x2f6   : > { %vm925_vm11 = vcmp.eq.f32.partialorder %v2858_v63, %v907_v38  ;;  %vm916_vm12 = vcmp.eq.f32.partialorder %v2861_v45, %v889_v39 }
 0x2f7   : > { %v941_v40 = vsel %vm925_vm11, %v2743_v14, 3e+38  ;;  %v932_v41 = vsel %vm916_vm12, %v2743_v14, 3e+38 }
 0x2f8   : > { %970 = vmin.xlane.f32.xlu0 %v941_v40  ;;  %952 = vmin.xlane.f32.xlu1 %v932_v41 }
 0x2f9   : > { %v895_v42 = vpop.xlane.xlu0 %894  ;;  %v905_v43 = vpop.xlane.xlu1 %904 }
 0x2fa   : > { %vm919_vm13 = vcmp.eq.f32.partialorder %v2874_v7, %v895_v42  ;;  %vm924_vm14 = vcmp.eq.f32.partialorder %v2877_v53, %v905_v43 }
 0x2fb   : > { %v935_v44 = vsel %vm919_vm13, %v2743_v14, 3e+38  ;;  %v940_v47 = vsel %vm924_vm14, %v2743_v14, 3e+38 }
 0x2fc   : > { %958 = vmin.xlane.f32.xlu0 %v935_v44  ;;  %968 = vmin.xlane.f32.xlu1 %v940_v47 }
 0x2fd   : > { %v911_v48 = vpop.xlane.xlu0 %910  ;;  %v893_v49 = vpop.xlane.xlu1 %892 }
 0x2fe   : > { %vm927_vm15 = vcmp.eq.f32.partialorder %v2890_v10, %v911_v48  ;;  %vm918_vm0 = vcmp.eq.f32.partialorder %v2893_v59, %v893_v49 }
 0x2ff   : > { %v943_v50 = vsel %vm927_vm15, %v2743_v14, 3e+38  ;;  %v934_v51 = vsel %vm918_vm0, %v2743_v14, 3e+38 }
 0x300   : > { %974 = vmin.xlane.f32.xlu0 %v943_v50  ;;  %956 = vmin.xlane.f32.xlu1 %v934_v51 }
 0x301   : > { %v909_v19 = vpop.xlane.xlu1 %908 }
 0x302   : > { %vm926_vm1 = vcmp.eq.f32.partialorder %v2902_v12, %v909_v19 }
 0x303   : > { %v942_v3 = vsel %vm926_vm1, %v2743_v14, 3e+38 }
 0x304   : > { %972 = vmin.xlane.f32.xlu1 %v942_v3 }
 0x36d   : > { %v2937_v1 = vpop.xlane.xlu0 %946 }
 0x36e   : > { %vm994_vm2 = vcmp.eq.f32.partialorder %v2743_v14, %v2937_v1 }
 0x36f   : > { %v2942_v20 = vsel %vm994_vm2, -inf, %v2782_v56 }
 0x370   : > { %1027 = vmax.xlane.f32.xlu0 %v2942_v20 }
 0x371   : > { %v2945_v21 = vpop.xlane.xlu0 %962  ;;  %v2947_v24 = vpop.xlane.xlu1 %944 }
 0x372   : > { %vm1002_vm3 = vcmp.eq.f32.partialorder %v2743_v14, %v2945_v21  ;;  %vm993_vm4 = vcmp.eq.f32.partialorder %v2743_v14, %v2947_v24 }
 0x373   : > { %v2954_v6 = vsel %vm1002_vm3, -inf, %v2794_v60  ;;  %v2957_v25 = vsel %vm993_vm4, -inf, %v2797_v61 }
 0x374   : > { %1043 = vmax.xlane.f32.xlu0 %v2954_v6  ;;  %1025 = vmax.xlane.f32.xlu1 %v2957_v25 }
 0x375   : > { %v2961_v56 = vpop.xlane.xlu0 %950  ;;  %v2963_v26 = vpop.xlane.xlu1 %960 }
 0x376   : > { %vm996_vm5 = vcmp.eq.f32.partialorder %v2743_v14, %v2961_v56  ;;  %vm1001_vm6 = vcmp.eq.f32.partialorder %v2743_v14, %v2963_v26 }
 0x377   : > { %v2970_v60 = vsel %vm996_vm5, -inf, %v2810_v22  ;;  %v2973_v61 = vsel %vm1001_vm6, -inf, %v2813_v34 }
 0x378   : > { %1031 = vmax.xlane.f32.xlu0 %v2970_v60  ;;  %1041 = vmax.xlane.f32.xlu1 %v2973_v61 }
 0x379   : > { %v2977_v27 = vpop.xlane.xlu0 %966 }
 0x37a   : > { %vm1004_vm7 = vcmp.eq.f32.partialorder %v2743_v14, %v2977_v27 }
 0x37b   : > { %v2982_v28 = vsel %vm1004_vm7, -inf, %v2822_v4 }
 0x37c   : > { %1047 = vmax.xlane.f32.xlu0 %v2982_v28 }
 0x37d   : > { %v2985_v29 = vpop.xlane.xlu1 %948 }
 0x37e   : > { %4604 = vst [vmem:[#allocation10_spill] sm:$0xff] %v2985_v29  ;;  %vm995_vm8 = vcmp.eq.f32.partialorder %v2743_v14, %v2985_v29 }
 0x37f   : > { %v2990_v22 = vsel %vm995_vm8, -inf, %v2830_v33 }
 0x380   : > { %1029 = vmax.xlane.f32.xlu1 %v2990_v22 }
 0x381   : > { %v2993_v34 = vpop.xlane.xlu0 %954  ;;  %v2995_v30 = vpop.xlane.xlu1 %964 }
 0x382   : > { %4605 = vst [vmem:[#allocation11_spill] sm:$0xff] %v2993_v34  ;;  %4606 = vst [vmem:[#allocation12_spill] sm:$0xff] %v2995_v30  ;;  %vm998_vm9 = vcmp.eq.f32.partialorder %v2743_v14, %v2993_v34  ;;  %vm1003_vm10 = vcmp.eq.f32.partialorder %v2743_v14, %v2995_v30 }
 0x383   : > { %v3002_v4 = vsel %vm998_vm9, -inf, %v2842_v52  ;;  %v3005_v31 = vsel %vm1003_vm10, -inf, %v2845_v8 }
 0x384   : > { %1035 = vmax.xlane.f32.xlu0 %v3002_v4  ;;  %1045 = vmax.xlane.f32.xlu1 %v3005_v31 }
 0x385   : > { %v3009_v33 = vpop.xlane.xlu0 %970  ;;  %v3011_v32 = vpop.xlane.xlu1 %952 }
 0x386   : > { %4607 = vst [vmem:[#allocation13_spill] sm:$0xff] %v3009_v33  ;;  %4608 = vst [vmem:[#allocation14_spill] sm:$0xff] %v3011_v32  ;;  %vm1006_vm11 = vcmp.eq.f32.partialorder %v2743_v14, %v3009_v33  ;;  %vm997_vm12 = vcmp.eq.f32.partialorder %v2743_v14, %v3011_v32 }
 0x387   : > { %v3018_v52 = vsel %vm1006_vm11, -inf, %v2858_v63  ;;  %v3021_v8 = vsel %vm997_vm12, -inf, %v2861_v45 }
 0x388   : > { %1051 = vmax.xlane.f32.xlu0 %v3018_v52  ;;  %1033 = vmax.xlane.f32.xlu1 %v3021_v8 }
 0x389   : > { %v3025_v35 = vpop.xlane.xlu0 %958  ;;  %v3027_v36 = vpop.xlane.xlu1 %968 }
 0x38a   : > { %4609 = vst [vmem:[#allocation15_spill] sm:$0xff] %v3025_v35  ;;  %4610 = vst [vmem:[#allocation16_spill] sm:$0xff] %v3027_v36  ;;  %vm1000_vm13 = vcmp.eq.f32.partialorder %v2743_v14, %v3025_v35  ;;  %vm1005_vm14 = vcmp.eq.f32.partialorder %v2743_v14, %v3027_v36 }
 0x38b   : > { %v3034_v63 = vsel %vm1000_vm13, -inf, %v2874_v7  ;;  %v3037_v45 = vsel %vm1005_vm14, -inf, %v2877_v53 }
 0x38c   : > { %1039 = vmax.xlane.f32.xlu0 %v3034_v63  ;;  %1049 = vmax.xlane.f32.xlu1 %v3037_v45 }
 0x38d   : > { %v3041_v37 = vpop.xlane.xlu0 %974  ;;  %v3043_v38 = vpop.xlane.xlu1 %956 }
 0x38e   : > { %4611 = vst [vmem:[#allocation17_spill] sm:$0xff] %v3041_v37  ;;  %4612 = vst [vmem:[#allocation18_spill] sm:$0xff] %v3043_v38  ;;  %vm1008_vm15 = vcmp.eq.f32.partialorder %v2743_v14, %v3041_v37  ;;  %vm999_vm0 = vcmp.eq.f32.partialorder %v2743_v14, %v3043_v38 }
 0x38f   : > { %v3050_v7 = vsel %vm1008_vm15, -inf, %v2890_v10  ;;  %v3053_v53 = vsel %vm999_vm0, -inf, %v2893_v59 }
 0x390   : > { %1055 = vmax.xlane.f32.xlu0 %v3050_v7  ;;  %1037 = vmax.xlane.f32.xlu1 %v3053_v53 }
 0x391   : > { %v3057_v39 = vpop.xlane.xlu1 %972 }
 0x392   : > { %4613 = vst [vmem:[#allocation19_spill] sm:$0xff] %v3057_v39  ;;  %vm1007_vm1 = vcmp.eq.f32.partialorder %v2743_v14, %v3057_v39 }
 0x393   : > { %v3062_v40 = vsel %vm1007_vm1, -inf, %v2902_v12 }
 0x394   : > { %1053 = vmax.xlane.f32.xlu1 %v3062_v40 }
 0x3fd   : > { %v1028_v41 = vpop.xlane.xlu0 %1027 }
 0x3fe   : > { %vm1058_vm2 = vcmp.eq.f32.partialorder %v2942_v20, %v1028_v41 }
 0x3ff   : > { %v1074_v10 = vsel %vm1058_vm2, %v2743_v14, 3e+38 }
 0x400   : > { %1091 = vmin.xlane.f32.xlu0 %v1074_v10 }
 0x401   : > { %v1044_v59 = vpop.xlane.xlu0 %1043  ;;  %v1026_v42 = vpop.xlane.xlu1 %1025 }
 0x402   : > { %vm1066_vm3 = vcmp.eq.f32.partialorder %v2954_v6, %v1044_v59  ;;  %vm1057_vm4 = vcmp.eq.f32.partialorder %v2957_v25, %v1026_v42 }
 0x403   : > { %v1082_v43 = vsel %vm1066_vm3, %v2743_v14, 3e+38  ;;  %v1073_v44 = vsel %vm1057_vm4, %v2743_v14, 3e+38 }
 0x404   : > { %1107 = vmin.xlane.f32.xlu0 %v1082_v43  ;;  %1089 = vmin.xlane.f32.xlu1 %v1073_v44 }
 0x405   : > { %v1032_v12 = vpop.xlane.xlu0 %1031  ;;  %v1042_v47 = vpop.xlane.xlu1 %1041 }
 0x406   : > { %vm1060_vm5 = vcmp.eq.f32.partialorder %v2970_v60, %v1032_v12  ;;  %vm1065_vm6 = vcmp.eq.f32.partialorder %v2973_v61, %v1042_v47 }
 0x407   : > { %v1076_v48 = vsel %vm1060_vm5, %v2743_v14, 3e+38  ;;  %v1081_v49 = vsel %vm1065_vm6, %v2743_v14, 3e+38 }
 0x408   : > { %1095 = vmin.xlane.f32.xlu0 %v1076_v48  ;;  %1105 = vmin.xlane.f32.xlu1 %v1081_v49 }
 0x409   : > { %v1048_v50 = vpop.xlane.xlu0 %1047 }
 0x40a   : > { %vm1068_vm7 = vcmp.eq.f32.partialorder %v2982_v28, %v1048_v50 }
 0x40b   : > { %v1084_v51 = vsel %vm1068_vm7, %v2743_v14, 3e+38 }
 0x40c   : > { %1111 = vmin.xlane.f32.xlu0 %v1084_v51 }
 0x40d   : > { %v1030_v19 = vpop.xlane.xlu1 %1029 }
 0x40e   : > { %vm1059_vm8 = vcmp.eq.f32.partialorder %v2990_v22, %v1030_v19 }
 0x40f   : > { %v1075_v3 = vsel %vm1059_vm8, %v2743_v14, 3e+38 }
 0x410   : > { %1093 = vmin.xlane.f32.xlu1 %v1075_v3 }
 0x411   : > { %v1036_v41 = vpop.xlane.xlu0 %1035  ;;  %v1046_v10 = vpop.xlane.xlu1 %1045 }
 0x412   : > { %vm1062_vm9 = vcmp.eq.f32.partialorder %v3002_v4, %v1036_v41  ;;  %vm1067_vm10 = vcmp.eq.f32.partialorder %v3005_v31, %v1046_v10 }
 0x413   : > { %v1078_v59 = vsel %vm1062_vm9, %v2743_v14, 3e+38  ;;  %v1083_v42 = vsel %vm1067_vm10, %v2743_v14, 3e+38 }
 0x414   : > { %1099 = vmin.xlane.f32.xlu0 %v1078_v59  ;;  %1109 = vmin.xlane.f32.xlu1 %v1083_v42 }
 0x415   : > { %v1052_v43 = vpop.xlane.xlu0 %1051  ;;  %v1034_v44 = vpop.xlane.xlu1 %1033 }
 0x416   : > { %vm1070_vm11 = vcmp.eq.f32.partialorder %v3018_v52, %v1052_v43  ;;  %vm1061_vm12 = vcmp.eq.f32.partialorder %v3021_v8, %v1034_v44 }
 0x417   : > { %v1086_v12 = vsel %vm1070_vm11, %v2743_v14, 3e+38  ;;  %v1077_v47 = vsel %vm1061_vm12, %v2743_v14, 3e+38 }
 0x418   : > { %1115 = vmin.xlane.f32.xlu0 %v1086_v12  ;;  %1097 = vmin.xlane.f32.xlu1 %v1077_v47 }
 0x419   : > { %v1040_v48 = vpop.xlane.xlu0 %1039  ;;  %v1050_v49 = vpop.xlane.xlu1 %1049 }
 0x41a   : > { %vm1064_vm13 = vcmp.eq.f32.partialorder %v3034_v63, %v1040_v48  ;;  %vm1069_vm14 = vcmp.eq.f32.partialorder %v3037_v45, %v1050_v49 }
 0x41b   : > { %v1080_v50 = vsel %vm1064_vm13, %v2743_v14, 3e+38  ;;  %v1085_v51 = vsel %vm1069_vm14, %v2743_v14, 3e+38 }
 0x41c   : > { %1103 = vmin.xlane.f32.xlu0 %v1080_v50  ;;  %1113 = vmin.xlane.f32.xlu1 %v1085_v51 }
 0x41d   : > { %v1056_v19 = vpop.xlane.xlu0 %1055  ;;  %v1038_v3 = vpop.xlane.xlu1 %1037 }
 0x41e   : > { %vm1072_vm15 = vcmp.eq.f32.partialorder %v3050_v7, %v1056_v19  ;;  %vm1063_vm0 = vcmp.eq.f32.partialorder %v3053_v53, %v1038_v3 }
 0x41f   : > { %v1088_v41 = vsel %vm1072_vm15, %v2743_v14, 3e+38  ;;  %v1079_v10 = vsel %vm1063_vm0, %v2743_v14, 3e+38 }
 0x420   : > { %1119 = vmin.xlane.f32.xlu0 %v1088_v41  ;;  %1101 = vmin.xlane.f32.xlu1 %v1079_v10 }
 0x421   : > { %v1054_v59 = vpop.xlane.xlu1 %1053 }
 0x422   : > { %vm1071_vm1 = vcmp.eq.f32.partialorder %v3062_v40, %v1054_v59 }
 0x423   : > { %v1087_v42 = vsel %vm1071_vm1, %v2743_v14, 3e+38 }
 0x424   : > { %1117 = vmin.xlane.f32.xlu1 %v1087_v42 }
 0x48d   : > { %v3097_v43 = vpop.xlane.xlu0 %1091 }
 0x48e   : > { %vm1139_vm2 = vcmp.eq.f32.partialorder %v2743_v14, %v3097_v43 }
 0x48f   : > { %v3102_v44 = vsel %vm1139_vm2, -inf, %v2942_v20 }
 0x490   : > { %1172 = vmax.xlane.f32.xlu0 %v3102_v44 }
 0x491   : > { %v3105_v12 = vpop.xlane.xlu0 %1107  ;;  %v3107_v47 = vpop.xlane.xlu1 %1089 }
 0x492   : > { %vm1147_vm3 = vcmp.eq.f32.partialorder %v2743_v14, %v3105_v12  ;;  %vm1138_vm4 = vcmp.eq.f32.partialorder %v2743_v14, %v3107_v47 }
 0x493   : > { %v3114_v48 = vsel %vm1147_vm3, -inf, %v2954_v6  ;;  %v3117_v49 = vsel %vm1138_vm4, -inf, %v2957_v25 }
 0x494   : > { %1188 = vmax.xlane.f32.xlu0 %v3114_v48  ;;  %1170 = vmax.xlane.f32.xlu1 %v3117_v49 }
 0x495   : > { %v3121_v20 = vpop.xlane.xlu0 %1095  ;;  %v3123_v50 = vpop.xlane.xlu1 %1105 }
 0x496   : > { %vm1141_vm5 = vcmp.eq.f32.partialorder %v2743_v14, %v3121_v20  ;;  %vm1146_vm6 = vcmp.eq.f32.partialorder %v2743_v14, %v3123_v50 }
 0x497   : > { %v3130_v6 = vsel %vm1141_vm5, -inf, %v2970_v60  ;;  %v3133_v25 = vsel %vm1146_vm6, -inf, %v2973_v61 }
 0x498   : > { %1176 = vmax.xlane.f32.xlu0 %v3130_v6  ;;  %1186 = vmax.xlane.f32.xlu1 %v3133_v25 }
 0x499   : > { %v3137_v51 = vpop.xlane.xlu0 %1111 }
 0x49a   : > { %vm1149_vm7 = vcmp.eq.f32.partialorder %v2743_v14, %v3137_v51 }
 0x49b   : > { %v3142_v19 = vsel %vm1149_vm7, -inf, %v2982_v28 }
 0x49c   : > { %1192 = vmax.xlane.f32.xlu0 %v3142_v19 }
 0x49d   : > { %v3145_v3 = vpop.xlane.xlu1 %1093 }
 0x49e   : > { %4614 = vst [vmem:[#allocation20_spill] sm:$0xff] %v3145_v3  ;;  %vm1140_vm8 = vcmp.eq.f32.partialorder %v2743_v14, %v3145_v3 }
 0x49f   : > { %v3150_v60 = vsel %vm1140_vm8, -inf, %v2990_v22 }
 0x4a0   : > { %1174 = vmax.xlane.f32.xlu1 %v3150_v60 }
 0x4a1   : > { %v3153_v61 = vpop.xlane.xlu0 %1099  ;;  %v3155_v41 = vpop.xlane.xlu1 %1109 }
 0x4a2   : > { %4615 = vst [vmem:[#allocation21_spill] sm:$0xff] %v3153_v61  ;;  %4616 = vst [vmem:[#allocation22_spill] sm:$0xff] %v3155_v41  ;;  %vm1143_vm9 = vcmp.eq.f32.partialorder %v2743_v14, %v3153_v61  ;;  %vm1148_vm10 = vcmp.eq.f32.partialorder %v2743_v14, %v3155_v41 }
 0x4a3   : > { %v3162_v28 = vsel %vm1143_vm9, -inf, %v3002_v4  ;;  %v3165_v10 = vsel %vm1148_vm10, -inf, %v3005_v31 }
 0x4a4   : > { %1180 = vmax.xlane.f32.xlu0 %v3162_v28  ;;  %1190 = vmax.xlane.f32.xlu1 %v3165_v10 }
 0x4a5   : > { %v3169_v22 = vpop.xlane.xlu0 %1115  ;;  %v3171_v59 = vpop.xlane.xlu1 %1097 }
 0x4a6   : > { %4617 = vst [vmem:[#allocation23_spill] sm:$0xff] %v3169_v22  ;;  %4618 = vst [vmem:[#allocation24_spill] sm:$0xff] %v3171_v59  ;;  %vm1151_vm11 = vcmp.eq.f32.partialorder %v2743_v14, %v3169_v22  ;;  %vm1142_vm12 = vcmp.eq.f32.partialorder %v2743_v14, %v3171_v59 }
 0x4a7   : > { %v3178_v4 = vsel %vm1151_vm11, -inf, %v3018_v52  ;;  %v3181_v31 = vsel %vm1142_vm12, -inf, %v3021_v8 }
 0x4a8   : > { %1196 = vmax.xlane.f32.xlu0 %v3178_v4  ;;  %1178 = vmax.xlane.f32.xlu1 %v3181_v31 }
 0x4a9   : > { %v3185_v42 = vpop.xlane.xlu0 %1103  ;;  %v3187_v39 = vpop.xlane.xlu1 %1113 }
 0x4aa   : > { %4619 = vst [vmem:[#allocation25_spill] sm:$0xff] %v3185_v42  ;;  %4620 = vst [vmem:[#allocation26_spill] sm:$0xff] %v3187_v39  ;;  %vm1145_vm13 = vcmp.eq.f32.partialorder %v2743_v14, %v3185_v42  ;;  %vm1150_vm14 = vcmp.eq.f32.partialorder %v2743_v14, %v3187_v39 }
 0x4ab   : > { %v3194_v52 = vsel %vm1145_vm13, -inf, %v3034_v63  ;;  %v3197_v8 = vsel %vm1150_vm14, -inf, %v3037_v45 }
 0x4ac   : > { %1184 = vmax.xlane.f32.xlu0 %v3194_v52  ;;  %1194 = vmax.xlane.f32.xlu1 %v3197_v8 }
 0x4ad   : > { %v3201_v18 = vpop.xlane.xlu0 %1119  ;;  %v3203_v37 = vpop.xlane.xlu1 %1101 }
 0x4ae   : > { %4621 = vst [vmem:[#allocation27_spill] sm:$0xff] %v3201_v18  ;;  %4622 = vst [vmem:[#allocation28_spill] sm:$0xff] %v3203_v37  ;;  %vm1153_vm15 = vcmp.eq.f32.partialorder %v2743_v14, %v3201_v18  ;;  %vm1144_vm0 = vcmp.eq.f32.partialorder %v2743_v14, %v3203_v37 }
 0x4af   : > { %v3210_v63 = vsel %vm1153_vm15, -inf, %v3050_v7  ;;  %v3213_v45 = vsel %vm1144_vm0, -inf, %v3053_v53 }
 0x4b0   : > { %1200 = vmax.xlane.f32.xlu0 %v3210_v63  ;;  %1182 = vmax.xlane.f32.xlu1 %v3213_v45 }
 0x4b1   : > { %v3217_v16 = vpop.xlane.xlu1 %1117 }
 0x4b2   : > { %4623 = vst [vmem:[#allocation29_spill] sm:$0xff] %v3217_v16  ;;  %vm1152_vm1 = vcmp.eq.f32.partialorder %v2743_v14, %v3217_v16 }
 0x4b3   : > { %v3222_v18 = vsel %vm1152_vm1, -inf, %v3062_v40 }
 0x4b4   : > { %1198 = vmax.xlane.f32.xlu1 %v3222_v18 }
 0x51d   : > { %v1173_v37 = vpop.xlane.xlu0 %1172 }
 0x51e   : > { %vm1203_vm2 = vcmp.eq.f32.partialorder %v3102_v44, %v1173_v37 }
 0x51f   : > { %v1219_v7 = vsel %vm1203_vm2, %v2743_v14, 3e+38 }
 0x520   : > { %1236 = vmin.xlane.f32.xlu0 %v1219_v7 }
 0x521   : > { %v1189_v53 = vpop.xlane.xlu0 %1188  ;;  %v1171_v39 = vpop.xlane.xlu1 %1170 }
 0x522   : > { %vm1211_vm3 = vcmp.eq.f32.partialorder %v3114_v48, %v1189_v53  ;;  %vm1202_vm4 = vcmp.eq.f32.partialorder %v3117_v49, %v1171_v39 }
 0x523   : > { %v1227_v42 = vsel %vm1211_vm3, %v2743_v14, 3e+38  ;;  %v1218_v16 = vsel %vm1202_vm4, %v2743_v14, 3e+38 }
 0x524   : > { %1252 = vmin.xlane.f32.xlu0 %v1227_v42  ;;  %1234 = vmin.xlane.f32.xlu1 %v1218_v16 }
 0x525   : > { %v1177_v40 = vpop.xlane.xlu0 %1176  ;;  %v1187_v59 = vpop.xlane.xlu1 %1186 }
 0x526   : > { %vm1205_vm5 = vcmp.eq.f32.partialorder %v3130_v6, %v1177_v40  ;;  %vm1210_vm6 = vcmp.eq.f32.partialorder %v3133_v25, %v1187_v59 }
 0x527   : > { %v1221_v37 = vsel %vm1205_vm5, %v2743_v14, 3e+38  ;;  %v1226_v7 = vsel %vm1210_vm6, %v2743_v14, 3e+38 }
 0x528   : > { %1240 = vmin.xlane.f32.xlu0 %v1221_v37  ;;  %1250 = vmin.xlane.f32.xlu1 %v1226_v7 }
 0x529   : > { %v1193_v53 = vpop.xlane.xlu0 %1192 }
 0x52a   : > { %vm1213_vm7 = vcmp.eq.f32.partialorder %v3142_v19, %v1193_v53 }
 0x52b   : > { %v1229_v39 = vsel %vm1213_vm7, %v2743_v14, 3e+38 }
 0x52c   : > { %1256 = vmin.xlane.f32.xlu0 %v1229_v39 }
 0x52d   : > { %v1175_v42 = vpop.xlane.xlu1 %1174 }
 0x52e   : > { %vm1204_vm8 = vcmp.eq.f32.partialorder %v3150_v60, %v1175_v42 }
 0x52f   : > { %v1220_v16 = vsel %vm1204_vm8, %v2743_v14, 3e+38 }
 0x530   : > { %1238 = vmin.xlane.f32.xlu1 %v1220_v16 }
 0x531   : > { %v1181_v40 = vpop.xlane.xlu0 %1180  ;;  %v1191_v59 = vpop.xlane.xlu1 %1190 }
 0x532   : > { %vm1207_vm9 = vcmp.eq.f32.partialorder %v3162_v28, %v1181_v40  ;;  %vm1212_vm10 = vcmp.eq.f32.partialorder %v3165_v10, %v1191_v59 }
 0x533   : > { %v1223_v37 = vsel %vm1207_vm9, %v2743_v14, 3e+38  ;;  %v1228_v7 = vsel %vm1212_vm10, %v2743_v14, 3e+38 }
 0x534   : > { %1244 = vmin.xlane.f32.xlu0 %v1223_v37  ;;  %1254 = vmin.xlane.f32.xlu1 %v1228_v7 }
 0x535   : > { %v1197_v53 = vpop.xlane.xlu0 %1196  ;;  %v1179_v39 = vpop.xlane.xlu1 %1178 }
 0x536   : > { %vm1215_vm11 = vcmp.eq.f32.partialorder %v3178_v4, %v1197_v53  ;;  %vm1206_vm12 = vcmp.eq.f32.partialorder %v3181_v31, %v1179_v39 }
 0x537   : > { %v1231_v42 = vsel %vm1215_vm11, %v2743_v14, 3e+38  ;;  %v1222_v16 = vsel %vm1206_vm12, %v2743_v14, 3e+38 }
 0x538   : > { %1260 = vmin.xlane.f32.xlu0 %v1231_v42  ;;  %1242 = vmin.xlane.f32.xlu1 %v1222_v16 }
 0x539   : > { %v1185_v40 = vpop.xlane.xlu0 %1184  ;;  %v1195_v59 = vpop.xlane.xlu1 %1194 }
 0x53a   : > { %vm1209_vm13 = vcmp.eq.f32.partialorder %v3194_v52, %v1185_v40  ;;  %vm1214_vm14 = vcmp.eq.f32.partialorder %v3197_v8, %v1195_v59 }
 0x53b   : > { %v1225_v37 = vsel %vm1209_vm13, %v2743_v14, 3e+38  ;;  %v1230_v7 = vsel %vm1214_vm14, %v2743_v14, 3e+38 }
 0x53c   : > { %1248 = vmin.xlane.f32.xlu0 %v1225_v37  ;;  %1258 = vmin.xlane.f32.xlu1 %v1230_v7 }
 0x53d   : > { %v1201_v53 = vpop.xlane.xlu0 %1200  ;;  %v1183_v39 = vpop.xlane.xlu1 %1182 }
 0x53e   : > { %vm1217_vm15 = vcmp.eq.f32.partialorder %v3210_v63, %v1201_v53  ;;  %vm1208_vm0 = vcmp.eq.f32.partialorder %v3213_v45, %v1183_v39 }
 0x53f   : > { %v1233_v42 = vsel %vm1217_vm15, %v2743_v14, 3e+38  ;;  %v1224_v16 = vsel %vm1208_vm0, %v2743_v14, 3e+38 }
 0x540   : > { %1264 = vmin.xlane.f32.xlu0 %v1233_v42  ;;  %1246 = vmin.xlane.f32.xlu1 %v1224_v16 }
 0x541   : > { %v1199_v40 = vpop.xlane.xlu1 %1198 }
 0x542   : > { %vm1216_vm1 = vcmp.eq.f32.partialorder %v3222_v18, %v1199_v40 }
 0x543   : > { %v1232_v59 = vsel %vm1216_vm1, %v2743_v14, 3e+38 }
 0x544   : > { %1262 = vmin.xlane.f32.xlu1 %v1232_v59 }
 0x5ad   : > { %v3257_v37 = vpop.xlane.xlu0 %1236 }
 0x5ae   : > { %vm1284_vm2 = vcmp.eq.f32.partialorder %v2743_v14, %v3257_v37 }
 0x5af   : > { %v3262_v7 = vsel %vm1284_vm2, -inf, %v3102_v44 }
 0x5b0   : > { %1317 = vmax.xlane.f32.xlu0 %v3262_v7 }
 0x5b1   : > { %v3265_v53 = vpop.xlane.xlu0 %1252  ;;  %v3267_v39 = vpop.xlane.xlu1 %1234 }
 0x5b2   : > { %vm1292_vm3 = vcmp.eq.f32.partialorder %v2743_v14, %v3265_v53  ;;  %vm1283_vm4 = vcmp.eq.f32.partialorder %v2743_v14, %v3267_v39 }
 0x5b3   : > { %v3274_v42 = vsel %vm1292_vm3, -inf, %v3114_v48  ;;  %v3277_v16 = vsel %vm1283_vm4, -inf, %v3117_v49 }
 0x5b4   : > { %1333 = vmax.xlane.f32.xlu0 %v3274_v42  ;;  %1315 = vmax.xlane.f32.xlu1 %v3277_v16 }
 0x5b5   : > { %v3281_v44 = vpop.xlane.xlu0 %1240  ;;  %v3283_v40 = vpop.xlane.xlu1 %1250 }
 0x5b6   : > { %vm1286_vm5 = vcmp.eq.f32.partialorder %v2743_v14, %v3281_v44  ;;  %vm1291_vm6 = vcmp.eq.f32.partialorder %v2743_v14, %v3283_v40 }
 0x5b7   : > { %v3290_v48 = vsel %vm1286_vm5, -inf, %v3130_v6  ;;  %v3293_v49 = vsel %vm1291_vm6, -inf, %v3133_v25 }
 0x5b8   : > { %1321 = vmax.xlane.f32.xlu0 %v3290_v48  ;;  %1331 = vmax.xlane.f32.xlu1 %v3293_v49 }
 0x5b9   : > { %v3297_v59 = vpop.xlane.xlu0 %1256 }
 0x5ba   : > { %4624 = vst [vmem:[#allocation30_spill] sm:$0xff] %v3297_v59  ;;  %vm1294_vm7 = vcmp.eq.f32.partialorder %v2743_v14, %v3297_v59 }
 0x5bb   : > { %v3302_v22 = vsel %vm1294_vm7, -inf, %v3142_v19 }
 0x5bc   : > { %1337 = vmax.xlane.f32.xlu0 %v3302_v22 }
 0x5bd   : > { %v3305_v41 = vpop.xlane.xlu1 %1238 }
 0x5be   : > { %4625 = vst [vmem:[#allocation31_spill] sm:$0xff] %v3305_v41  ;;  %vm1285_vm8 = vcmp.eq.f32.partialorder %v2743_v14, %v3305_v41 }
 0x5bf   : > { %v3310_v6 = vsel %vm1285_vm8, -inf, %v3150_v60 }
 0x5c0   : > { %1319 = vmax.xlane.f32.xlu1 %v3310_v6 }
 0x5c1   : > { %v3313_v25 = vpop.xlane.xlu0 %1244  ;;  %v3315_v61 = vpop.xlane.xlu1 %1254 }
 0x5c2   : > { %4626 = vst [vmem:[#allocation32_spill] sm:$0xff] %v3313_v25  ;;  %4627 = vst [vmem:[#allocation33_spill] sm:$0xff] %v3315_v61  ;;  %vm1288_vm9 = vcmp.eq.f32.partialorder %v2743_v14, %v3313_v25  ;;  %vm1293_vm10 = vcmp.eq.f32.partialorder %v2743_v14, %v3315_v61 }
 0x5c3   : > { %v3322_v19 = vsel %vm1288_vm9, -inf, %v3162_v28  ;;  %v3325_v38 = vsel %vm1293_vm10, -inf, %v3165_v10 }
 0x5c4   : > { %1325 = vmax.xlane.f32.xlu0 %v3322_v19  ;;  %1335 = vmax.xlane.f32.xlu1 %v3325_v38 }
 0x5c5   : > { %v3329_v60 = vpop.xlane.xlu0 %1260  ;;  %v3331_v36 = vpop.xlane.xlu1 %1242 }
 0x5c6   : > { %4628 = vst [vmem:[#allocation34_spill] sm:$0xff] %v3329_v60  ;;  %4629 = vst [vmem:[#allocation35_spill] sm:$0xff] %v3331_v36  ;;  %vm1296_vm11 = vcmp.eq.f32.partialorder %v2743_v14, %v3329_v60  ;;  %vm1287_vm12 = vcmp.eq.f32.partialorder %v2743_v14, %v3331_v36 }
 0x5c7   : > { %v3338_v28 = vsel %vm1296_vm11, -inf, %v3178_v4  ;;  %v3341_v10 = vsel %vm1287_vm12, -inf, %v3181_v31 }
 0x5c8   : > { %1341 = vmax.xlane.f32.xlu0 %v3338_v28  ;;  %1323 = vmax.xlane.f32.xlu1 %v3341_v10 }
 0x5c9   : > { %v3345_v61 = vpop.xlane.xlu0 %1248  ;;  %v3347_v25 = vpop.xlane.xlu1 %1258 }
 0x5ca   : > { %4630 = vst [vmem:[#allocation36_spill] sm:$0xff] %v3345_v61  ;;  %4631 = vst [vmem:[#allocation37_spill] sm:$0xff] %v3347_v25  ;;  %vm1290_vm13 = vcmp.eq.f32.partialorder %v2743_v14, %v3345_v61  ;;  %vm1295_vm14 = vcmp.eq.f32.partialorder %v2743_v14, %v3347_v25 }
 0x5cb   : > { %v3354_v4 = vsel %vm1290_vm13, -inf, %v3194_v52  ;;  %v3357_v31 = vsel %vm1295_vm14, -inf, %v3197_v8 }
 0x5cc   : > { %1329 = vmax.xlane.f32.xlu0 %v3354_v4  ;;  %1339 = vmax.xlane.f32.xlu1 %v3357_v31 }
 0x5cd   : > { %v3361_v36 = vpop.xlane.xlu0 %1264  ;;  %v3363_v60 = vpop.xlane.xlu1 %1246 }
 0x5ce   : > { %4632 = vst [vmem:[#allocation38_spill] sm:$0xff] %v3361_v36  ;;  %4633 = vst [vmem:[#allocation39_spill] sm:$0xff] %v3363_v60  ;;  %vm1298_vm15 = vcmp.eq.f32.partialorder %v2743_v14, %v3361_v36  ;;  %vm1289_vm0 = vcmp.eq.f32.partialorder %v2743_v14, %v3363_v60 }
 0x5cf   : > { %v3370_v52 = vsel %vm1298_vm15, -inf, %v3210_v63  ;;  %v3373_v8 = vsel %vm1289_vm0, -inf, %v3213_v45 }
 0x5d0   : > { %1345 = vmax.xlane.f32.xlu0 %v3370_v52  ;;  %1327 = vmax.xlane.f32.xlu1 %v3373_v8 }
 0x5d1   : > { %v3377_v25 = vpop.xlane.xlu1 %1262 }
 0x5d2   : > { %4634 = vst [vmem:[#allocation40_spill] sm:$0xff] %v3377_v25  ;;  %vm1297_vm1 = vcmp.eq.f32.partialorder %v2743_v14, %v3377_v25 }
 0x5d3   : > { %v3382_v36 = vsel %vm1297_vm1, -inf, %v3222_v18 }
 0x5d4   : > { %1343 = vmax.xlane.f32.xlu1 %v3382_v36 }
 0x63d   : > { %v1318_v60 = vpop.xlane.xlu0 %1317 }
 0x63e   : > { %vm1348_vm2 = vcmp.eq.f32.partialorder %v3262_v7, %v1318_v60 }
 0x63f   : > { %v1364_v63 = vsel %vm1348_vm2, %v2743_v14, 3e+38 }
 0x640   : > { %1381 = vmin.xlane.f32.xlu0 %v1364_v63 }
 0x641   : > { %v1334_v45 = vpop.xlane.xlu0 %1333  ;;  %v1316_v61 = vpop.xlane.xlu1 %1315 }
 0x642   : > { %vm1356_vm3 = vcmp.eq.f32.partialorder %v3274_v42, %v1334_v45  ;;  %vm1347_vm4 = vcmp.eq.f32.partialorder %v3277_v16, %v1316_v61 }
 0x643   : > { %v1372_v35 = vsel %vm1356_vm3, %v2743_v14, 3e+38  ;;  %v1363_v25 = vsel %vm1347_vm4, %v2743_v14, 3e+38 }
 0x644   : > { %1397 = vmin.xlane.f32.xlu0 %v1372_v35  ;;  %1379 = vmin.xlane.f32.xlu1 %v1363_v25 }
 0x645   : > { %v1322_v18 = vpop.xlane.xlu0 %1321  ;;  %v1332_v32 = vpop.xlane.xlu1 %1331 }
 0x646   : > { %vm1350_vm5 = vcmp.eq.f32.partialorder %v3290_v48, %v1322_v18  ;;  %vm1355_vm6 = vcmp.eq.f32.partialorder %v3293_v49, %v1332_v32 }
 0x647   : > { %v1366_v60 = vsel %vm1350_vm5, %v2743_v14, 3e+38  ;;  %v1371_v63 = vsel %vm1355_vm6, %v2743_v14, 3e+38 }
 0x648   : > { %1385 = vmin.xlane.f32.xlu0 %v1366_v60  ;;  %1395 = vmin.xlane.f32.xlu1 %v1371_v63 }
 0x649   : > { %v1338_v45 = vpop.xlane.xlu0 %1337 }
 0x64a   : > { %vm1358_vm7 = vcmp.eq.f32.partialorder %v3302_v22, %v1338_v45 }
 0x64b   : > { %v1374_v61 = vsel %vm1358_vm7, %v2743_v14, 3e+38 }
 0x64c   : > { %1401 = vmin.xlane.f32.xlu0 %v1374_v61 }
 0x64d   : > { %v1320_v35 = vpop.xlane.xlu1 %1319 }
 0x64e   : > { %vm1349_vm8 = vcmp.eq.f32.partialorder %v3310_v6, %v1320_v35 }
 0x64f   : > { %v1365_v25 = vsel %vm1349_vm8, %v2743_v14, 3e+38 }
 0x650   : > { %1383 = vmin.xlane.f32.xlu1 %v1365_v25 }
 0x651   : > { %v1326_v18 = vpop.xlane.xlu0 %1325  ;;  %v1336_v32 = vpop.xlane.xlu1 %1335 }
 0x652   : > { %vm1352_vm9 = vcmp.eq.f32.partialorder %v3322_v19, %v1326_v18  ;;  %vm1357_vm10 = vcmp.eq.f32.partialorder %v3325_v38, %v1336_v32 }
 0x653   : > { %v1368_v60 = vsel %vm1352_vm9, %v2743_v14, 3e+38  ;;  %v1373_v63 = vsel %vm1357_vm10, %v2743_v14, 3e+38 }
 0x654   : > { %1389 = vmin.xlane.f32.xlu0 %v1368_v60  ;;  %1399 = vmin.xlane.f32.xlu1 %v1373_v63 }
 0x655   : > { %v1342_v45 = vpop.xlane.xlu0 %1341  ;;  %v1324_v61 = vpop.xlane.xlu1 %1323 }
 0x656   : > { %vm1360_vm11 = vcmp.eq.f32.partialorder %v3338_v28, %v1342_v45  ;;  %vm1351_vm12 = vcmp.eq.f32.partialorder %v3341_v10, %v1324_v61 }
 0x657   : > { %v1376_v35 = vsel %vm1360_vm11, %v2743_v14, 3e+38  ;;  %v1367_v25 = vsel %vm1351_vm12, %v2743_v14, 3e+38 }
 0x658   : > { %1405 = vmin.xlane.f32.xlu0 %v1376_v35  ;;  %1387 = vmin.xlane.f32.xlu1 %v1367_v25 }
 0x659   : > { %v1330_v18 = vpop.xlane.xlu0 %1329  ;;  %v1340_v32 = vpop.xlane.xlu1 %1339 }
 0x65a   : > { %vm1354_vm13 = vcmp.eq.f32.partialorder %v3354_v4, %v1330_v18  ;;  %vm1359_vm14 = vcmp.eq.f32.partialorder %v3357_v31, %v1340_v32 }
 0x65b   : > { %v1370_v60 = vsel %vm1354_vm13, %v2743_v14, 3e+38  ;;  %v1375_v63 = vsel %vm1359_vm14, %v2743_v14, 3e+38 }
 0x65c   : > { %1393 = vmin.xlane.f32.xlu0 %v1370_v60  ;;  %1403 = vmin.xlane.f32.xlu1 %v1375_v63 }
 0x65d   : > { %v1346_v45 = vpop.xlane.xlu0 %1345  ;;  %v1328_v61 = vpop.xlane.xlu1 %1327 }
 0x65e   : > { %vm1362_vm15 = vcmp.eq.f32.partialorder %v3370_v52, %v1346_v45  ;;  %vm1353_vm0 = vcmp.eq.f32.partialorder %v3373_v8, %v1328_v61 }
 0x65f   : > { %v1378_v35 = vsel %vm1362_vm15, %v2743_v14, 3e+38  ;;  %v1369_v25 = vsel %vm1353_vm0, %v2743_v14, 3e+38 }
 0x660   : > { %1409 = vmin.xlane.f32.xlu0 %v1378_v35  ;;  %1391 = vmin.xlane.f32.xlu1 %v1369_v25 }
 0x661   : > { %v1344_v18 = vpop.xlane.xlu1 %1343 }
 0x662   : > { %vm1361_vm1 = vcmp.eq.f32.partialorder %v3382_v36, %v1344_v18 }
 0x663   : > { %v1377_v32 = vsel %vm1361_vm1, %v2743_v14, 3e+38 }
 0x664   : > { %1407 = vmin.xlane.f32.xlu1 %v1377_v32 }
 0x6cd   : > { %v3417_v60 = vpop.xlane.xlu0 %1381 }
 0x6ce   : > { %vm1429_vm2 = vcmp.eq.f32.partialorder %v2743_v14, %v3417_v60 }
 0x6cf   : > { %v3422_v63 = vsel %vm1429_vm2, -inf, %v3262_v7 }
 0x6d0   : > { %1462 = vmax.xlane.f32.xlu0 %v3422_v63 }
 0x6d1   : > { %v3425_v45 = vpop.xlane.xlu0 %1397  ;;  %v3427_v61 = vpop.xlane.xlu1 %1379 }
 0x6d2   : > { %vm1437_vm3 = vcmp.eq.f32.partialorder %v2743_v14, %v3425_v45  ;;  %vm1428_vm4 = vcmp.eq.f32.partialorder %v2743_v14, %v3427_v61 }
 0x6d3   : > { %v3434_v35 = vsel %vm1437_vm3, -inf, %v3274_v42  ;;  %v3437_v25 = vsel %vm1428_vm4, -inf, %v3277_v16 }
 0x6d4   : > { %1478 = vmax.xlane.f32.xlu0 %v3434_v35  ;;  %1460 = vmax.xlane.f32.xlu1 %v3437_v25 }
 0x6d5   : > { %v3441_v7 = vpop.xlane.xlu0 %1385  ;;  %v3443_v18 = vpop.xlane.xlu1 %1395 }
 0x6d6   : > { %vm1431_vm5 = vcmp.eq.f32.partialorder %v2743_v14, %v3441_v7  ;;  %vm1436_vm6 = vcmp.eq.f32.partialorder %v2743_v14, %v3443_v18 }
 0x6d7   : > { %v3450_v42 = vsel %vm1431_vm5, -inf, %v3290_v48  ;;  %v3453_v16 = vsel %vm1436_vm6, -inf, %v3293_v49 }
 0x6d8   : > { %1466 = vmax.xlane.f32.xlu0 %v3450_v42  ;;  %1476 = vmax.xlane.f32.xlu1 %v3453_v16 }
 0x6d9   : > { %v3457_v32 = vpop.xlane.xlu0 %1401 }
 0x6da   : > { %4635 = vst [vmem:[#allocation41_spill] sm:$0xff] %v3457_v32  ;;  %vm1439_vm7 = vcmp.eq.f32.partialorder %v2743_v14, %v3457_v32 }
 0x6db   : > { %v3462_v33 = vsel %vm1439_vm7, -inf, %v3302_v22 }
 0x6dc   : > { %1482 = vmax.xlane.f32.xlu0 %v3462_v33 }
 0x6dd   : > { %v3465_v30 = vpop.xlane.xlu1 %1383 }
 0x6de   : > { %4636 = vst [vmem:[#allocation42_spill] sm:$0xff] %v3465_v30  ;;  %vm1430_vm8 = vcmp.eq.f32.partialorder %v2743_v14, %v3465_v30 }
 0x6df   : > { %v3470_v48 = vsel %vm1430_vm8, -inf, %v3310_v6 }
 0x6e0   : > { %1464 = vmax.xlane.f32.xlu1 %v3470_v48 }
 0x6e1   : > { %v3473_v49 = vpop.xlane.xlu0 %1389  ;;  %v3475_v41 = vpop.xlane.xlu1 %1399 }
 0x6e2   : > { %4637 = vst [vmem:[#allocation43_spill] sm:$0xff] %v3473_v49  ;;  %4638 = vst [vmem:[#allocation44_spill] sm:$0xff] %v3475_v41  ;;  %vm1433_vm9 = vcmp.eq.f32.partialorder %v2743_v14, %v3473_v49  ;;  %vm1438_vm10 = vcmp.eq.f32.partialorder %v2743_v14, %v3475_v41 }
 0x6e3   : > { %v3482_v22 = vsel %vm1433_vm9, -inf, %v3322_v19  ;;  %v3485_v30 = vsel %vm1438_vm10, -inf, %v3325_v38 }
 0x6e4   : > { %1470 = vmax.xlane.f32.xlu0 %v3482_v22  ;;  %1480 = vmax.xlane.f32.xlu1 %v3485_v30 }
 0x6e5   : > { %v3489_v6 = vpop.xlane.xlu0 %1405  ;;  %v3491_v34 = vpop.xlane.xlu1 %1387 }
 0x6e6   : > { %4639 = vst [vmem:[#allocation45_spill] sm:$0xff] %v3489_v6  ;;  %4640 = vst [vmem:[#allocation46_spill] sm:$0xff] %v3491_v34  ;;  %vm1441_vm11 = vcmp.eq.f32.partialorder %v2743_v14, %v3489_v6  ;;  %vm1432_vm12 = vcmp.eq.f32.partialorder %v2743_v14, %v3491_v34 }
 0x6e7   : > { %v3498_v19 = vsel %vm1441_vm11, -inf, %v3338_v28  ;;  %v3501_v38 = vsel %vm1432_vm12, -inf, %v3341_v10 }
 0x6e8   : > { %1486 = vmax.xlane.f32.xlu0 %v3498_v19  ;;  %1468 = vmax.xlane.f32.xlu1 %v3501_v38 }
 0x6e9   : > { %v3505_v41 = vpop.xlane.xlu0 %1393  ;;  %v3507_v49 = vpop.xlane.xlu1 %1403 }
 0x6ea   : > { %4641 = vst [vmem:[#allocation47_spill] sm:$0xff] %v3505_v41  ;;  %4642 = vst [vmem:[#allocation48_spill] sm:$0xff] %v3507_v49  ;;  %vm1435_vm13 = vcmp.eq.f32.partialorder %v2743_v14, %v3505_v41  ;;  %vm1440_vm14 = vcmp.eq.f32.partialorder %v2743_v14, %v3507_v49 }
 0x6eb   : > { %v3514_v28 = vsel %vm1435_vm13, -inf, %v3354_v4  ;;  %v3517_v10 = vsel %vm1440_vm14, -inf, %v3357_v31 }
 0x6ec   : > { %1474 = vmax.xlane.f32.xlu0 %v3514_v28  ;;  %1484 = vmax.xlane.f32.xlu1 %v3517_v10 }
 0x6ed   : > { %v3521_v34 = vpop.xlane.xlu0 %1409  ;;  %v3523_v6 = vpop.xlane.xlu1 %1391 }
 0x6ee   : > { %4643 = vst [vmem:[#allocation49_spill] sm:$0xff] %v3521_v34  ;;  %4644 = vst [vmem:[#allocation50_spill] sm:$0xff] %v3523_v6  ;;  %vm1443_vm15 = vcmp.eq.f32.partialorder %v2743_v14, %v3521_v34  ;;  %vm1434_vm0 = vcmp.eq.f32.partialorder %v2743_v14, %v3523_v6 }
 0x6ef   : > { %v3530_v4 = vsel %vm1443_vm15, -inf, %v3370_v52  ;;  %v3533_v31 = vsel %vm1434_vm0, -inf, %v3373_v8 }
 0x6f0   : > { %1490 = vmax.xlane.f32.xlu0 %v3530_v4  ;;  %1472 = vmax.xlane.f32.xlu1 %v3533_v31 }
 0x6f1   : > { %v3537_v49 = vpop.xlane.xlu1 %1407 }
 0x6f2   : > { %4645 = vst [vmem:[#allocation51_spill] sm:$0xff] %v3537_v49  ;;  %vm1442_vm1 = vcmp.eq.f32.partialorder %v2743_v14, %v3537_v49 }
 0x6f3   : > { %v3542_v34 = vsel %vm1442_vm1, -inf, %v3382_v36 }
 0x6f4   : > { %1488 = vmax.xlane.f32.xlu1 %v3542_v34 }
 0x75d   : > { %v1463_v6 = vpop.xlane.xlu0 %1462 }
 0x75e   : > { %vm1493_vm2 = vcmp.eq.f32.partialorder %v3422_v63, %v1463_v6 }
 0x75f   : > { %v1509_v52 = vsel %vm1493_vm2, %v2743_v14, 3e+38 }
 0x760   : > { %1526 = vmin.xlane.f32.xlu0 %v1509_v52 }
 0x761   : > { %v1479_v8 = vpop.xlane.xlu0 %1478  ;;  %v1461_v41 = vpop.xlane.xlu1 %1460 }
 0x762   : > { %vm1501_vm3 = vcmp.eq.f32.partialorder %v3434_v35, %v1479_v8  ;;  %vm1492_vm4 = vcmp.eq.f32.partialorder %v3437_v25, %v1461_v41 }
 0x763   : > { %v1517_v3 = vsel %vm1501_vm3, %v2743_v14, 3e+38  ;;  %v1508_v49 = vsel %vm1492_vm4, %v2743_v14, 3e+38 }
 0x764   : > { %1542 = vmin.xlane.f32.xlu0 %v1517_v3  ;;  %1524 = vmin.xlane.f32.xlu1 %v1508_v49 }
 0x765   : > { %v1467_v36 = vpop.xlane.xlu0 %1466  ;;  %v1477_v17 = vpop.xlane.xlu1 %1476 }
 0x766   : > { %vm1495_vm5 = vcmp.eq.f32.partialorder %v3450_v42, %v1467_v36  ;;  %vm1500_vm6 = vcmp.eq.f32.partialorder %v3453_v16, %v1477_v17 }
 0x767   : > { %v1511_v6 = vsel %vm1495_vm5, %v2743_v14, 3e+38  ;;  %v1516_v52 = vsel %vm1500_vm6, %v2743_v14, 3e+38 }
 0x768   : > { %1530 = vmin.xlane.f32.xlu0 %v1511_v6  ;;  %1540 = vmin.xlane.f32.xlu1 %v1516_v52 }
 0x769   : > { %v1483_v8 = vpop.xlane.xlu0 %1482 }
 0x76a   : > { %vm1503_vm7 = vcmp.eq.f32.partialorder %v3462_v33, %v1483_v8 }
 0x76b   : > { %v1519_v41 = vsel %vm1503_vm7, %v2743_v14, 3e+38 }
 0x76c   : > { %1546 = vmin.xlane.f32.xlu0 %v1519_v41 }
 0x76d   : > { %v1465_v3 = vpop.xlane.xlu1 %1464 }
 0x76e   : > { %vm1494_vm8 = vcmp.eq.f32.partialorder %v3470_v48, %v1465_v3 }
 0x76f   : > { %v1510_v49 = vsel %vm1494_vm8, %v2743_v14, 3e+38 }
 0x770   : > { %1528 = vmin.xlane.f32.xlu1 %v1510_v49 }
 0x771   : > { %v1471_v36 = vpop.xlane.xlu0 %1470  ;;  %v1481_v17 = vpop.xlane.xlu1 %1480 }
 0x772   : > { %vm1497_vm9 = vcmp.eq.f32.partialorder %v3482_v22, %v1471_v36  ;;  %vm1502_vm10 = vcmp.eq.f32.partialorder %v3485_v30, %v1481_v17 }
 0x773   : > { %v1513_v6 = vsel %vm1497_vm9, %v2743_v14, 3e+38  ;;  %v1518_v52 = vsel %vm1502_vm10, %v2743_v14, 3e+38 }
 0x774   : > { %1534 = vmin.xlane.f32.xlu0 %v1513_v6  ;;  %1544 = vmin.xlane.f32.xlu1 %v1518_v52 }
 0x775   : > { %v1487_v8 = vpop.xlane.xlu0 %1486  ;;  %v1469_v41 = vpop.xlane.xlu1 %1468 }
 0x776   : > { %vm1505_vm11 = vcmp.eq.f32.partialorder %v3498_v19, %v1487_v8  ;;  %vm1496_vm12 = vcmp.eq.f32.partialorder %v3501_v38, %v1469_v41 }
 0x777   : > { %v1521_v3 = vsel %vm1505_vm11, %v2743_v14, 3e+38  ;;  %v1512_v49 = vsel %vm1496_vm12, %v2743_v14, 3e+38 }
 0x778   : > { %1550 = vmin.xlane.f32.xlu0 %v1521_v3  ;;  %1532 = vmin.xlane.f32.xlu1 %v1512_v49 }
 0x779   : > { %v1475_v36 = vpop.xlane.xlu0 %1474  ;;  %v1485_v17 = vpop.xlane.xlu1 %1484 }
 0x77a   : > { %vm1499_vm13 = vcmp.eq.f32.partialorder %v3514_v28, %v1475_v36  ;;  %vm1504_vm14 = vcmp.eq.f32.partialorder %v3517_v10, %v1485_v17 }
 0x77b   : > { %v1515_v6 = vsel %vm1499_vm13, %v2743_v14, 3e+38  ;;  %v1520_v52 = vsel %vm1504_vm14, %v2743_v14, 3e+38 }
 0x77c   : > { %1538 = vmin.xlane.f32.xlu0 %v1515_v6  ;;  %1548 = vmin.xlane.f32.xlu1 %v1520_v52 }
 0x77d   : > { %v1491_v8 = vpop.xlane.xlu0 %1490  ;;  %v1473_v41 = vpop.xlane.xlu1 %1472 }
 0x77e   : > { %vm1507_vm15 = vcmp.eq.f32.partialorder %v3530_v4, %v1491_v8  ;;  %vm1498_vm0 = vcmp.eq.f32.partialorder %v3533_v31, %v1473_v41 }
 0x77f   : > { %v1523_v3 = vsel %vm1507_vm15, %v2743_v14, 3e+38  ;;  %v1514_v49 = vsel %vm1498_vm0, %v2743_v14, 3e+38 }
 0x780   : > { %1554 = vmin.xlane.f32.xlu0 %v1523_v3  ;;  %1536 = vmin.xlane.f32.xlu1 %v1514_v49 }
 0x781   : > { %v1489_v36 = vpop.xlane.xlu1 %1488 }
 0x782   : > { %vm1506_vm1 = vcmp.eq.f32.partialorder %v3542_v34, %v1489_v36 }
 0x783   : > { %v1522_v17 = vsel %vm1506_vm1, %v2743_v14, 3e+38 }
 0x784   : > { %1552 = vmin.xlane.f32.xlu1 %v1522_v17 }
 0x7ed   : > { %v3577_v6 = vpop.xlane.xlu0 %1526 }
 0x7ee   : > { %vm1574_vm2 = vcmp.eq.f32.partialorder %v2743_v14, %v3577_v6 }
 0x7ef   : > { %v3582_v52 = vsel %vm1574_vm2, -inf, %v3422_v63 }
 0x7f0   : > { %1607 = vmax.xlane.f32.xlu0 %v3582_v52 }
 0x7f1   : > { %v3585_v8 = vpop.xlane.xlu0 %1542  ;;  %v3587_v41 = vpop.xlane.xlu1 %1524 }
 0x7f2   : > { %vm1582_vm3 = vcmp.eq.f32.partialorder %v2743_v14, %v3585_v8  ;;  %vm1573_vm4 = vcmp.eq.f32.partialorder %v2743_v14, %v3587_v41 }
 0x7f3   : > { %v3594_v3 = vsel %vm1582_vm3, -inf, %v3434_v35  ;;  %v3597_v49 = vsel %vm1573_vm4, -inf, %v3437_v25 }
 0x7f4   : > { %1623 = vmax.xlane.f32.xlu0 %v3594_v3  ;;  %1605 = vmax.xlane.f32.xlu1 %v3597_v49 }
 0x7f5   : > { %v3601_v63 = vpop.xlane.xlu0 %1530  ;;  %v3603_v36 = vpop.xlane.xlu1 %1540 }
 0x7f6   : > { %vm1576_vm5 = vcmp.eq.f32.partialorder %v2743_v14, %v3601_v63  ;;  %vm1581_vm6 = vcmp.eq.f32.partialorder %v2743_v14, %v3603_v36 }
 0x7f7   : > { %v3610_v35 = vsel %vm1576_vm5, -inf, %v3450_v42  ;;  %v3613_v25 = vsel %vm1581_vm6, -inf, %v3453_v16 }
 0x7f8   : > { %1611 = vmax.xlane.f32.xlu0 %v3610_v35  ;;  %1621 = vmax.xlane.f32.xlu1 %v3613_v25 }
 0x7f9   : > { %v3617_v17 = vpop.xlane.xlu0 %1546 }
 0x7fa   : > { %4646 = vst [vmem:[#allocation52_spill] sm:$0xff] %v3617_v17  ;;  %vm1584_vm7 = vcmp.eq.f32.partialorder %v2743_v14, %v3617_v17 }
 0x7fb   : > { %v3622_v15 = vsel %vm1584_vm7, -inf, %v3462_v33 }
 0x7fc   : > { %1627 = vmax.xlane.f32.xlu0 %v3622_v15 }
 0x7fd   : > { %v3625_v29 = vpop.xlane.xlu1 %1528 }
 0x7fe   : > { %4647 = vst [vmem:[#allocation53_spill] sm:$0xff] %v3625_v29  ;;  %vm1575_vm8 = vcmp.eq.f32.partialorder %v2743_v14, %v3625_v29 }
 0x7ff   : > { %v3630_v42 = vsel %vm1575_vm8, -inf, %v3470_v48 }
 0x800   : > { %1609 = vmax.xlane.f32.xlu1 %v3630_v42 }
 0x801   : > { %v3633_v16 = vpop.xlane.xlu0 %1534  ;;  %v3635_v11 = vpop.xlane.xlu1 %1544 }
 0x802   : > { %4648 = vst [vmem:[#allocation54_spill] sm:$0xff] %v3633_v16  ;;  %4649 = vst [vmem:[#allocation55_spill] sm:$0xff] %v3635_v11  ;;  %vm1578_vm9 = vcmp.eq.f32.partialorder %v2743_v14, %v3633_v16  ;;  %vm1583_vm10 = vcmp.eq.f32.partialorder %v2743_v14, %v3635_v11 }
 0x803   : > { %v3642_v33 = vsel %vm1578_vm9, -inf, %v3482_v22  ;;  %v3645_v29 = vsel %vm1583_vm10, -inf, %v3485_v30 }
 0x804   : > { %1615 = vmax.xlane.f32.xlu0 %v3642_v33  ;;  %1625 = vmax.xlane.f32.xlu1 %v3645_v29 }
 0x805   : > { %v3649_v48 = vpop.xlane.xlu0 %1550  ;;  %v3651_v17 = vpop.xlane.xlu1 %1532 }
 0x806   : > { %4650 = vst [vmem:[#allocation56_spill] sm:$0xff] %v3649_v48  ;;  %4651 = vst [vmem:[#allocation57_spill] sm:$0xff] %v3651_v17  ;;  %vm1586_vm11 = vcmp.eq.f32.partialorder %v2743_v14, %v3649_v48  ;;  %vm1577_vm12 = vcmp.eq.f32.partialorder %v2743_v14, %v3651_v17 }
 0x807   : > { %v3658_v22 = vsel %vm1586_vm11, -inf, %v3498_v19  ;;  %v3661_v30 = vsel %vm1577_vm12, -inf, %v3501_v38 }
 0x808   : > { %1631 = vmax.xlane.f32.xlu0 %v3658_v22  ;;  %1613 = vmax.xlane.f32.xlu1 %v3661_v30 }
 0x809   : > { %v3665_v11 = vpop.xlane.xlu0 %1538  ;;  %v3667_v16 = vpop.xlane.xlu1 %1548 }
 0x80a   : > { %4652 = vst [vmem:[#allocation58_spill] sm:$0xff] %v3665_v11  ;;  %4653 = vst [vmem:[#allocation59_spill] sm:$0xff] %v3667_v16  ;;  %vm1580_vm13 = vcmp.eq.f32.partialorder %v2743_v14, %v3665_v11  ;;  %vm1585_vm14 = vcmp.eq.f32.partialorder %v2743_v14, %v3667_v16 }
 0x80b   : > { %v3674_v19 = vsel %vm1580_vm13, -inf, %v3514_v28  ;;  %v3677_v38 = vsel %vm1585_vm14, -inf, %v3517_v10 }
 0x80c   : > { %1619 = vmax.xlane.f32.xlu0 %v3674_v19  ;;  %1629 = vmax.xlane.f32.xlu1 %v3677_v38 }
 0x80d   : > { %v3681_v17 = vpop.xlane.xlu0 %1554  ;;  %v3683_v48 = vpop.xlane.xlu1 %1536 }
 0x80e   : > { %4654 = vst [vmem:[#allocation60_spill] sm:$0xff] %v3681_v17  ;;  %4655 = vst [vmem:[#allocation61_spill] sm:$0xff] %v3683_v48  ;;  %vm1588_vm15 = vcmp.eq.f32.partialorder %v2743_v14, %v3681_v17  ;;  %vm1579_vm0 = vcmp.eq.f32.partialorder %v2743_v14, %v3683_v48 }
 0x80f   : > { %v3690_v28 = vsel %vm1588_vm15, -inf, %v3530_v4  ;;  %v3693_v10 = vsel %vm1579_vm0, -inf, %v3533_v31 }
 0x810   : > { %1635 = vmax.xlane.f32.xlu0 %v3690_v28  ;;  %1617 = vmax.xlane.f32.xlu1 %v3693_v10 }
 0x811   : > { %v3697_v16 = vpop.xlane.xlu1 %1552 }
 0x812   : > { %4656 = vst [vmem:[#allocation62_spill] sm:$0xff] %v3697_v16  ;;  %vm1587_vm1 = vcmp.eq.f32.partialorder %v2743_v14, %v3697_v16 }
 0x813   : > { %v3702_v17 = vsel %vm1587_vm1, -inf, %v3542_v34 }
 0x814   : > { %1633 = vmax.xlane.f32.xlu1 %v3702_v17 }
 0x87d   : > { %v1608_v48 = vpop.xlane.xlu0 %1607 }
 0x87e   : > { %vm1638_vm2 = vcmp.eq.f32.partialorder %v3582_v52, %v1608_v48 }
 0x87f   : > { %v1654_v4 = vsel %vm1638_vm2, %v2743_v14, 3e+38 }
 0x880   : > { %1671 = vmin.xlane.f32.xlu0 %v1654_v4 }
 0x881   : > { %v1624_v31 = vpop.xlane.xlu0 %1623  ;;  %v1606_v11 = vpop.xlane.xlu1 %1605 }
 0x882   : > { %vm1646_vm3 = vcmp.eq.f32.partialorder %v3594_v3, %v1624_v31  ;;  %vm1637_vm4 = vcmp.eq.f32.partialorder %v3597_v49, %v1606_v11 }
 0x883   : > { %v1662_v9 = vsel %vm1646_vm3, %v2743_v14, 3e+38  ;;  %v1653_v16 = vsel %vm1637_vm4, %v2743_v14, 3e+38 }
 0x884   : > { %1687 = vmin.xlane.f32.xlu0 %v1662_v9  ;;  %1669 = vmin.xlane.f32.xlu1 %v1653_v16 }
 0x885   : > { %v1612_v34 = vpop.xlane.xlu0 %1611  ;;  %v1622_v32 = vpop.xlane.xlu1 %1621 }
 0x886   : > { %vm1640_vm5 = vcmp.eq.f32.partialorder %v3610_v35, %v1612_v34  ;;  %vm1645_vm6 = vcmp.eq.f32.partialorder %v3613_v25, %v1622_v32 }
 0x887   : > { %v1656_v48 = vsel %vm1640_vm5, %v2743_v14, 3e+38  ;;  %v1661_v4 = vsel %vm1645_vm6, %v2743_v14, 3e+38 }
 0x888   : > { %1675 = vmin.xlane.f32.xlu0 %v1656_v48  ;;  %1685 = vmin.xlane.f32.xlu1 %v1661_v4 }
 0x889   : > { %v1628_v31 = vpop.xlane.xlu0 %1627 }
 0x88a   : > { %vm1648_vm7 = vcmp.eq.f32.partialorder %v3622_v15, %v1628_v31 }
 0x88b   : > { %v1664_v11 = vsel %vm1648_vm7, %v2743_v14, 3e+38 }
 0x88c   : > { %1691 = vmin.xlane.f32.xlu0 %v1664_v11 }
 0x88d   : > { %v1610_v9 = vpop.xlane.xlu1 %1609 }
 0x88e   : > { %vm1639_vm8 = vcmp.eq.f32.partialorder %v3630_v42, %v1610_v9 }
 0x88f   : > { %v1655_v16 = vsel %vm1639_vm8, %v2743_v14, 3e+38 }
 0x890   : > { %1673 = vmin.xlane.f32.xlu1 %v1655_v16 }
 0x891   : > { %v1616_v34 = vpop.xlane.xlu0 %1615  ;;  %v1626_v32 = vpop.xlane.xlu1 %1625 }
 0x892   : > { %vm1642_vm9 = vcmp.eq.f32.partialorder %v3642_v33, %v1616_v34  ;;  %vm1647_vm10 = vcmp.eq.f32.partialorder %v3645_v29, %v1626_v32 }
 0x893   : > { %v1658_v48 = vsel %vm1642_vm9, %v2743_v14, 3e+38  ;;  %v1663_v4 = vsel %vm1647_vm10, %v2743_v14, 3e+38 }
 0x894   : > { %1679 = vmin.xlane.f32.xlu0 %v1658_v48  ;;  %1689 = vmin.xlane.f32.xlu1 %v1663_v4 }
 0x895   : > { %v1632_v31 = vpop.xlane.xlu0 %1631  ;;  %v1614_v11 = vpop.xlane.xlu1 %1613 }
 0x896   : > { %vm1650_vm11 = vcmp.eq.f32.partialorder %v3658_v22, %v1632_v31  ;;  %vm1641_vm12 = vcmp.eq.f32.partialorder %v3661_v30, %v1614_v11 }
 0x897   : > { %v1666_v9 = vsel %vm1650_vm11, %v2743_v14, 3e+38  ;;  %v1657_v16 = vsel %vm1641_vm12, %v2743_v14, 3e+38 }
 0x898   : > { %1695 = vmin.xlane.f32.xlu0 %v1666_v9  ;;  %1677 = vmin.xlane.f32.xlu1 %v1657_v16 }
 0x899   : > { %v1620_v34 = vpop.xlane.xlu0 %1619  ;;  %v1630_v32 = vpop.xlane.xlu1 %1629 }
 0x89a   : > { %vm1644_vm13 = vcmp.eq.f32.partialorder %v3674_v19, %v1620_v34  ;;  %vm1649_vm14 = vcmp.eq.f32.partialorder %v3677_v38, %v1630_v32 }
 0x89b   : > { %v1660_v48 = vsel %vm1644_vm13, %v2743_v14, 3e+38  ;;  %v1665_v4 = vsel %vm1649_vm14, %v2743_v14, 3e+38 }
 0x89c   : > { %1683 = vmin.xlane.f32.xlu0 %v1660_v48  ;;  %1693 = vmin.xlane.f32.xlu1 %v1665_v4 }
 0x89d   : > { %v1636_v31 = vpop.xlane.xlu0 %1635  ;;  %v1618_v11 = vpop.xlane.xlu1 %1617 }
 0x89e   : > { %vm1652_vm15 = vcmp.eq.f32.partialorder %v3690_v28, %v1636_v31  ;;  %vm1643_vm0 = vcmp.eq.f32.partialorder %v3693_v10, %v1618_v11 }
 0x89f   : > { %v1668_v9 = vsel %vm1652_vm15, %v2743_v14, 3e+38  ;;  %v1659_v16 = vsel %vm1643_vm0, %v2743_v14, 3e+38 }
 0x8a0   : > { %1699 = vmin.xlane.f32.xlu0 %v1668_v9  ;;  %1681 = vmin.xlane.f32.xlu1 %v1659_v16 }
 0x8a1   : > { %v1634_v34 = vpop.xlane.xlu1 %1633 }
 0x8a2   : > { %vm1651_vm1 = vcmp.eq.f32.partialorder %v3702_v17, %v1634_v34 }
 0x8a3   : > { %v1667_v32 = vsel %vm1651_vm1, %v2743_v14, 3e+38 }
 0x8a4   : > { %1697 = vmin.xlane.f32.xlu1 %v1667_v32 }
 0x90d   : > { %v3737_v48 = vpop.xlane.xlu0 %1671 }
 0x90e   : > { %vm1719_vm2 = vcmp.eq.f32.partialorder %v2743_v14, %v3737_v48 }
 0x90f   : > { %v3742_v4 = vsel %vm1719_vm2, -inf, %v3582_v52 }
 0x910   : > { %1752 = vmax.xlane.f32.xlu0 %v3742_v4 }
 0x911   : > { %v3745_v31 = vpop.xlane.xlu0 %1687  ;;  %v3747_v11 = vpop.xlane.xlu1 %1669 }
 0x912   : > { %vm1727_vm3 = vcmp.eq.f32.partialorder %v2743_v14, %v3745_v31  ;;  %vm1718_vm4 = vcmp.eq.f32.partialorder %v2743_v14, %v3747_v11 }
 0x913   : > { %v3754_v9 = vsel %vm1727_vm3, -inf, %v3594_v3  ;;  %v3757_v16 = vsel %vm1718_vm4, -inf, %v3597_v49 }
 0x914   : > { %1768 = vmax.xlane.f32.xlu0 %v3754_v9  ;;  %1750 = vmax.xlane.f32.xlu1 %v3757_v16 }
 0x915   : > { %v3761_v52 = vpop.xlane.xlu0 %1675  ;;  %v3763_v34 = vpop.xlane.xlu1 %1685 }
 0x916   : > { %4657 = vst [vmem:[#allocation63_spill] sm:$0xff] %v3761_v52  ;;  %4658 = vst [vmem:[#allocation64_spill] sm:$0xff] %v3763_v34  ;;  %vm1721_vm5 = vcmp.eq.f32.partialorder %v2743_v14, %v3761_v52  ;;  %vm1726_vm6 = vcmp.eq.f32.partialorder %v2743_v14, %v3763_v34 }
 0x917   : > { %v3770_v3 = vsel %vm1721_vm5, -inf, %v3610_v35  ;;  %v3773_v49 = vsel %vm1726_vm6, -inf, %v3613_v25 }
 0x918   : > { %1756 = vmax.xlane.f32.xlu0 %v3770_v3  ;;  %1766 = vmax.xlane.f32.xlu1 %v3773_v49 }
 0x919   : > { %v3777_v32 = vpop.xlane.xlu0 %1691 }
 0x91a   : > { %4659 = vst [vmem:[#allocation65_spill] sm:$0xff] %v3777_v32  ;;  %vm1729_vm7 = vcmp.eq.f32.partialorder %v2743_v14, %v3777_v32 }
 0x91b   : > { %v3782_v55 = vsel %vm1729_vm7, -inf, %v3622_v15 }
 0x91c   : > { %1772 = vmax.xlane.f32.xlu0 %v3782_v55 }
 0x91d   : > { %v3785_v34 = vpop.xlane.xlu1 %1673 }
 0x91e   : > { %4660 = vst [vmem:[#allocation66_spill] sm:$0xff] %v3785_v34  ;;  %vm1720_vm8 = vcmp.eq.f32.partialorder %v2743_v14, %v3785_v34 }
 0x91f   : > { %v3790_v35 = vsel %vm1720_vm8, -inf, %v3630_v42 }
 0x920   : > { %1754 = vmax.xlane.f32.xlu1 %v3790_v35 }
 0x921   : > { %v3793_v25 = vpop.xlane.xlu0 %1679  ;;  %v3795_v52 = vpop.xlane.xlu1 %1689 }
 0x922   : > { %4661 = vst [vmem:[#allocation67_spill] sm:$0xff] %v3793_v25  ;;  %4662 = vst [vmem:[#allocation68_spill] sm:$0xff] %v3795_v52  ;;  %vm1723_vm9 = vcmp.eq.f32.partialorder %v2743_v14, %v3793_v25  ;;  %vm1728_vm10 = vcmp.eq.f32.partialorder %v2743_v14, %v3795_v52 }
 0x923   : > { %v3802_v15 = vsel %vm1723_vm9, -inf, %v3642_v33  ;;  %v3805_v34 = vsel %vm1728_vm10, -inf, %v3645_v29 }
 0x924   : > { %1760 = vmax.xlane.f32.xlu0 %v3802_v15  ;;  %1770 = vmax.xlane.f32.xlu1 %v3805_v34 }
 0x925   : > { %v3809_v42 = vpop.xlane.xlu0 %1695  ;;  %v3811_v32 = vpop.xlane.xlu1 %1677 }
 0x926   : > { %4663 = vst [vmem:[#allocation69_spill] sm:$0xff] %v3809_v42  ;;  %4664 = vst [vmem:[#allocation70_spill] sm:$0xff] %v3811_v32  ;;  %vm1731_vm11 = vcmp.eq.f32.partialorder %v2743_v14, %v3809_v42  ;;  %vm1722_vm12 = vcmp.eq.f32.partialorder %v2743_v14, %v3811_v32 }
 0x927   : > { %v3818_v33 = vsel %vm1731_vm11, -inf, %v3658_v22  ;;  %v3821_v29 = vsel %vm1722_vm12, -inf, %v3661_v30 }
 0x928   : > { %1776 = vmax.xlane.f32.xlu0 %v3818_v33  ;;  %1758 = vmax.xlane.f32.xlu1 %v3821_v29 }
 0x929   : > { %v3825_v52 = vpop.xlane.xlu0 %1683  ;;  %v3827_v25 = vpop.xlane.xlu1 %1693 }
 0x92a   : > { %4665 = vst [vmem:[#allocation71_spill] sm:$0xff] %v3825_v52  ;;  %4666 = vst [vmem:[#allocation72_spill] sm:$0xff] %v3827_v25  ;;  %vm1725_vm13 = vcmp.eq.f32.partialorder %v2743_v14, %v3825_v52  ;;  %vm1730_vm14 = vcmp.eq.f32.partialorder %v2743_v14, %v3827_v25 }
 0x92b   : > { %v3834_v22 = vsel %vm1725_vm13, -inf, %v3674_v19  ;;  %v3837_v30 = vsel %vm1730_vm14, -inf, %v3677_v38 }
 0x92c   : > { %1764 = vmax.xlane.f32.xlu0 %v3834_v22  ;;  %1774 = vmax.xlane.f32.xlu1 %v3837_v30 }
 0x92d   : > { %v3841_v32 = vpop.xlane.xlu0 %1699  ;;  %v3843_v42 = vpop.xlane.xlu1 %1681 }
 0x92e   : > { %4667 = vst [vmem:[#allocation73_spill] sm:$0xff] %v3841_v32  ;;  %4668 = vst [vmem:[#allocation74_spill] sm:$0xff] %v3843_v42  ;;  %vm1733_vm15 = vcmp.eq.f32.partialorder %v2743_v14, %v3841_v32  ;;  %vm1724_vm0 = vcmp.eq.f32.partialorder %v2743_v14, %v3843_v42 }
 0x92f   : > { %v3850_v19 = vsel %vm1733_vm15, -inf, %v3690_v28  ;;  %v3853_v38 = vsel %vm1724_vm0, -inf, %v3693_v10 }
 0x930   : > { %1780 = vmax.xlane.f32.xlu0 %v3850_v19  ;;  %1762 = vmax.xlane.f32.xlu1 %v3853_v38 }
 0x931   : > { %v3857_v25 = vpop.xlane.xlu1 %1697 }
 0x932   : > { %4669 = vst [vmem:[#allocation75_spill] sm:$0xff] %v3857_v25  ;;  %vm1732_vm1 = vcmp.eq.f32.partialorder %v2743_v14, %v3857_v25 }
 0x933   : > { %v3862_v32 = vsel %vm1732_vm1, -inf, %v3702_v17 }
 0x934   : > { %1778 = vmax.xlane.f32.xlu1 %v3862_v32 }
 0x99d   : > { %v1753_v42 = vpop.xlane.xlu0 %1752 }
 0x99e   : > { %vm1783_vm2 = vcmp.eq.f32.partialorder %v3742_v4, %v1753_v42 }
 0x99f   : > { %v1799_v28 = vsel %vm1783_vm2, %v2743_v14, 3e+38  ;;  %vm831_vm2 = vcmp.eq.s32.totalorder %v2740_v13, 0 }
 0x9a0   : > { %1816 = vmin.xlane.f32.xlu0 %v1799_v28 }
 0x9a1   : > { %v1769_v10 = vpop.xlane.xlu0 %1768  ;;  %v1751_v52 = vpop.xlane.xlu1 %1750 }
 0x9a2   : > { %vm1791_vm3 = vcmp.eq.f32.partialorder %v3754_v9, %v1769_v10  ;;  %vm1782_vm4 = vcmp.eq.f32.partialorder %v3757_v16, %v1751_v52 }
 0x9a3   : > { %v1807_v59 = vsel %vm1791_vm3, %v2743_v14, 3e+38  ;;  %v1798_v25 = vsel %vm1782_vm4, %v2743_v14, 3e+38  ;;  %vm976_vm3 = vcmp.eq.s32.totalorder %v2740_v13, 1  ;;  %vm1121_vm4 = vcmp.eq.s32.totalorder %v2740_v13, 2 }
 0x9a4   : > { %1832 = vmin.xlane.f32.xlu0 %v1807_v59  ;;  %1814 = vmin.xlane.f32.xlu1 %v1798_v25 }
 0x9a5   : > { %v1757_v17 = vpop.xlane.xlu0 %1756  ;;  %v1767_v5 = vpop.xlane.xlu1 %1766 }
 0x9a6   : > { %vm1785_vm5 = vcmp.eq.f32.partialorder %v3770_v3, %v1757_v17  ;;  %vm1790_vm6 = vcmp.eq.f32.partialorder %v3773_v49, %v1767_v5 }
 0x9a7   : > { %v1801_v42 = vsel %vm1785_vm5, %v2743_v14, 3e+38  ;;  %v1806_v28 = vsel %vm1790_vm6, %v2743_v14, 3e+38  ;;  %vm1266_vm5 = vcmp.eq.s32.totalorder %v2740_v13, 3  ;;  %vm1411_vm6 = vcmp.eq.s32.totalorder %v2740_v13, 4 }
 0x9a8   : > { %1820 = vmin.xlane.f32.xlu0 %v1801_v42  ;;  %1830 = vmin.xlane.f32.xlu1 %v1806_v28 }
 0x9a9   : > { %v1773_v10 = vpop.xlane.xlu0 %1772 }
 0x9aa   : > { %vm1793_vm7 = vcmp.eq.f32.partialorder %v3782_v55, %v1773_v10 }
 0x9ab   : > { %v1809_v52 = vsel %vm1793_vm7, %v2743_v14, 3e+38  ;;  %vm1556_vm7 = vcmp.eq.s32.totalorder %v2740_v13, 5 }
 0x9ac   : > { %1836 = vmin.xlane.f32.xlu0 %v1809_v52 }
 0x9ad   : > { %v1755_v59 = vpop.xlane.xlu1 %1754 }
 0x9ae   : > { %vm1784_vm8 = vcmp.eq.f32.partialorder %v3790_v35, %v1755_v59 }
 0x9af   : > { %v1800_v25 = vsel %vm1784_vm8, %v2743_v14, 3e+38  ;;  %vm1701_vm8 = vcmp.eq.s32.totalorder %v2740_v13, 6 }
 0x9b0   : > { %1818 = vmin.xlane.f32.xlu1 %v1800_v25 }
 0x9b1   : > { %v1761_v17 = vpop.xlane.xlu0 %1760  ;;  %v1771_v5 = vpop.xlane.xlu1 %1770 }
 0x9b2   : > { %vm1787_vm9 = vcmp.eq.f32.partialorder %v3802_v15, %v1761_v17  ;;  %vm1792_vm10 = vcmp.eq.f32.partialorder %v3805_v34, %v1771_v5 }
 0x9b3   : > { %v1803_v42 = vsel %vm1787_vm9, %v2743_v14, 3e+38  ;;  %v1808_v28 = vsel %vm1792_vm10, %v2743_v14, 3e+38  ;;  %vm1846_vm9 = vcmp.eq.s32.totalorder %v2740_v13, 7 }
 0x9b4   : > { %1824 = vmin.xlane.f32.xlu0 %v1803_v42  ;;  %1834 = vmin.xlane.f32.xlu1 %v1808_v28 }
 0x9b5   : > { %v1777_v10 = vpop.xlane.xlu0 %1776  ;;  %v1759_v52 = vpop.xlane.xlu1 %1758 }
 0x9b6   : > { %vm1795_vm11 = vcmp.eq.f32.partialorder %v3818_v33, %v1777_v10  ;;  %vm1786_vm12 = vcmp.eq.f32.partialorder %v3821_v29, %v1759_v52 }
 0x9b7   : > { %v1811_v59 = vsel %vm1795_vm11, %v2743_v14, 3e+38  ;;  %v1802_v25 = vsel %vm1786_vm12, %v2743_v14, 3e+38 }
 0x9b8   : > { %1840 = vmin.xlane.f32.xlu0 %v1811_v59  ;;  %1822 = vmin.xlane.f32.xlu1 %v1802_v25 }
 0x9b9   : > { %v1765_v17 = vpop.xlane.xlu0 %1764  ;;  %v1775_v5 = vpop.xlane.xlu1 %1774 }
 0x9ba   : > { %vm1789_vm13 = vcmp.eq.f32.partialorder %v3834_v22, %v1765_v17  ;;  %vm1794_vm14 = vcmp.eq.f32.partialorder %v3837_v30, %v1775_v5 }
 0x9bb   : > { %v1805_v42 = vsel %vm1789_vm13, %v2743_v14, 3e+38  ;;  %v1810_v28 = vsel %vm1794_vm14, %v2743_v14, 3e+38 }
 0x9bc   : > { %1828 = vmin.xlane.f32.xlu0 %v1805_v42  ;;  %1838 = vmin.xlane.f32.xlu1 %v1810_v28  ;;  %v833_v42 = vsel %vm831_vm2, %v2777_v54, 0.0 }
 0x9bd   : > { %v1781_v10 = vpop.xlane.xlu0 %1780  ;;  %v1763_v52 = vpop.xlane.xlu1 %1762  ;;  %v978_v28 = vsel %vm976_vm3, %v2937_v1, %v833_v42  ;;  %v835_v1 = vsel %vm831_vm2, %v2801_v23, 0.0 }
 0x9be   : > { %vm1797_vm15 = vcmp.eq.f32.partialorder %v3850_v19, %v1781_v10  ;;  %vm1788_vm0 = vcmp.eq.f32.partialorder %v3853_v38, %v1763_v52  ;;  %v841_v10 = vsel %vm831_vm2, %v2785_v57, 0.0  ;;  %v832_v52 = vsel %vm831_vm2, %v2787_v58, 0.0 }
 0x9bf   : > { %v1813_v59 = vsel %vm1797_vm15, %v2743_v14, 3e+38  ;;  %v1804_v25 = vsel %vm1788_vm0, %v2743_v14, 3e+38  ;;  %v1123_v54 = vsel %vm1121_vm4, %v3097_v43, %v978_v28  ;;  %v843_v58 = vsel %vm831_vm2, %v2817_v2, 0.0 }
 0x9c0   : > { %1844 = vmin.xlane.f32.xlu0 %v1813_v59  ;;  %1826 = vmin.xlane.f32.xlu1 %v1804_v25  ;;  %v840_v59 = vsel %vm831_vm2, %v2803_v62, 0.0  ;;  %v1268_v57 = vsel %vm1266_vm5, %v3257_v37, %v1123_v54  ;;  %v834_v43 = vsel %vm831_vm2, %v2825_v0, 0.0  ;;  %v986_v62 = vsel %vm976_vm3, %v2945_v21, %v841_v10  ;;  %v4672_v54 = vld [vmem:[#allocation63_spill] sm:$0xff] }
 0x9c1   : > { %v1779_v17 = vpop.xlane.xlu1 %1778  ;;  %v1413_v23 = vsel %vm1411_vm6, %v3417_v60, %v1268_v57  ;;  %v977_v37 = vsel %vm976_vm3, %v2947_v24, %v832_v52  ;;  %v980_v2 = vsel %vm976_vm3, %v2961_v56, %v835_v1  ;;  %v985_v60 = vsel %vm976_vm3, %v2963_v26, %v840_v59  ;;  %v4673_v1 = vld [vmem:[#allocation64_spill] sm:$0xff] }
 0x9c2   : > { %vm1796_vm1 = vcmp.eq.f32.partialorder %v3862_v32, %v1779_v17  ;;  %v1558_v0 = vsel %vm1556_vm7, %v3577_v6, %v1413_v23  ;;  %v1131_v21 = vsel %vm1121_vm4, %v3105_v12, %v986_v62  ;;  %v1122_v24 = vsel %vm1121_vm4, %v3107_v47, %v977_v37  ;;  %v4674_v62 = vld [vmem:[#allocation3_spill] sm:$0xff] }
 0x9c3   : > { %v1812_v5 = vsel %vm1796_vm1, %v2743_v14, 3e+38  ;;  %v1703_v56 = vsel %vm1701_vm8, %v3737_v48, %v1558_v0  ;;  %v1276_v6 = vsel %vm1266_vm5, %v3265_v53, %v1131_v21  ;;  %v1267_v26 = vsel %vm1266_vm5, %v3267_v39, %v1122_v24  ;;  %v4676_v24 = vld [vmem:[#allocation4_spill] sm:$0xff] }
 0x9c4   : > { %1842 = vmin.xlane.f32.xlu1 %v1812_v5  ;;  %v988_v47 = vsel %vm976_vm3, %v2977_v27, %v843_v58  ;;  %v1421_v48 = vsel %vm1411_vm6, %v3425_v45, %v1276_v6  ;;  %v1412_v53 = vsel %vm1411_vm6, %v3427_v61, %v1267_v26  ;;  %v1125_v17 = vsel %vm1121_vm4, %v3121_v20, %v980_v2  ;;  %v4675_v2 = vld [vmem:[#allocation41_spill] sm:$0xff]  ;;  %v4678_v26 = vld [vmem:[#allocation10_spill] sm:$0xff] }
 0x9c5   : > { %v1130_v5 = vsel %vm1121_vm4, %v3123_v50, %v985_v60  ;;  %v1566_v27 = vsel %vm1556_vm7, %v3585_v8, %v1421_v48  ;;  %v1557_v45 = vsel %vm1556_vm7, %v3587_v41, %v1412_v53  ;;  %v1270_v61 = vsel %vm1266_vm5, %v3281_v44, %v1125_v17  ;;  %v4679_v48 = vld [vmem:[#allocation52_spill] sm:$0xff] }
 0x9c6   : > { %v1275_v20 = vsel %vm1266_vm5, %v3283_v40, %v1130_v5  ;;  %v1711_v50 = vsel %vm1701_vm8, %v3745_v31, %v1566_v27  ;;  %v1702_v8 = vsel %vm1701_vm8, %v3747_v11, %v1557_v45  ;;  %v1415_v40 = vsel %vm1411_vm6, %v3441_v7, %v1270_v61  ;;  %v4681_v17 = vld [vmem:[#allocation8_spill] sm:$0xff]  ;;  %v4683_v45 = vld [vmem:[#allocation65_spill] sm:$0xff] }
 0x9c7   : > { %v1420_v31 = vsel %vm1411_vm6, %v3443_v18, %v1275_v20  ;;  %v837_v10 = vsel %vm831_vm2, %v2833_v46, 0.0  ;;  %v1133_v52 = vsel %vm1121_vm4, %v3137_v51, %v988_v47  ;;  %v1560_v7 = vsel %vm1556_vm7, %v3601_v63, %v1415_v40  ;;  %v4682_v27 = vld [vmem:[#allocation20_spill] sm:$0xff] }
 0x9c8   : > { %v1565_v18 = vsel %vm1556_vm7, %v3603_v36, %v1420_v31  ;;  %v1705_v63 = vsel %vm1701_vm8, %v4672_v54, %v1560_v7  ;;  %v845_v37 = vsel %vm831_vm2, %v4674_v62, 0.0  ;;  %v979_v47 = vsel %vm976_vm3, %v4678_v26, %v834_v43  ;;  %v4686_v31 = vld [vmem:[#allocation12_spill] sm:$0xff]  ;;  %v4687_v7 = vld [vmem:[#allocation13_spill] sm:$0xff] }
 0x9c9   : > { %v1710_v36 = vsel %vm1701_vm8, %v4673_v1, %v1565_v18  ;;  %v838_v5 = vsel %vm831_vm2, %v4681_v17, 0.0  ;;  %v1124_v43 = vsel %vm1121_vm4, %v4682_v27, %v979_v47  ;;  %v990_v18 = vsel %vm976_vm3, %v4687_v7, %v845_v37  ;;  %v4694_v37 = vld [vmem:[#allocation21_spill] sm:$0xff]  ;;  %v4697_v26 = vld [vmem:[#allocation32_spill] sm:$0xff] }
 0xa2d   : > { %v1817_v25 = vpop.xlane.xlu0 %1816 }
 0xa2e   : > { %v3970_v12 = vsel %vm1846_vm9, %v1817_v25, %v1703_v56  ;;  %vm1864_vm10 = vcmp.eq.f32.partialorder %v2743_v14, %v1817_v25  ;;  %v836_v56 = vsel %vm831_vm2, %v4676_v24, 0.0  ;;  %v4677_v25 = vld [vmem:[#allocation5_spill] sm:$0xff] }
 0xa2f   : > { %v3983_v39 = vsel %vm1864_vm10, -inf, %v3742_v4  ;;  %v839_v6 = vsel %vm831_vm2, %v4677_v25, 0.0 }
 0xa30   : > { %1897 = vmax.xlane.f32.xlu0 %v3983_v39 }
 0xa31   : > { %v1833_v4 = vpop.xlane.xlu0 %1832  ;;  %v1815_v41 = vpop.xlane.xlu1 %1814 }
 0xa32   : > { %v4012_v42 = vsel %vm1846_vm9, %v1833_v4, %v1711_v50  ;;  %vm1872_vm11 = vcmp.eq.f32.partialorder %v2743_v14, %v1833_v4  ;;  %v4017_v44 = vsel %vm1846_vm9, %v1815_v41, %v1702_v8  ;;  %vm1863_vm12 = vcmp.eq.f32.partialorder %v2743_v14, %v1815_v41  ;;  %v4684_v50 = vld [vmem:[#allocation11_spill] sm:$0xff] }
 0xa33   : > { %v4027_v11 = vsel %vm1872_vm11, -inf, %v3754_v9  ;;  %v4030_v28 = vsel %vm1863_vm12, -inf, %v3757_v16  ;;  %v4670_v9 = vld [vmem:[#allocation2_spill] sm:$0xff]  ;;  %v982_v8 = vsel %vm976_vm3, %v4684_v50, %v837_v10  ;;  %v4685_v4 = vld [vmem:[#allocation31_spill] sm:$0xff] }
 0xa34   : > { %1913 = vmax.xlane.f32.xlu0 %v4027_v11  ;;  %1895 = vmax.xlane.f32.xlu1 %v4030_v28  ;;  %v842_v46 = vsel %vm831_vm2, %v4670_v9, 0.0  ;;  %v4671_v16 = vld [vmem:[#allocation30_spill] sm:$0xff]  ;;  %v1269_v41 = vsel %vm1266_vm5, %v4685_v4, %v1124_v43  ;;  %v4701_v43 = vld [vmem:[#allocation44_spill] sm:$0xff] }
 0xa35   : > { %v1278_v51 = vsel %vm1266_vm5, %v4671_v16, %v1133_v52  ;;  %v1821_v59 = vpop.xlane.xlu0 %1820  ;;  %v1831_v57 = vpop.xlane.xlu1 %1830  ;;  %v987_v52 = vsel %vm976_vm3, %v4686_v31, %v842_v46  ;;  %v4688_v9 = vld [vmem:[#allocation42_spill] sm:$0xff]  ;;  %v4691_v46 = vld [vmem:[#allocation16_spill] sm:$0xff] }
 0xa36   : > { %v4060_v58 = vsel %vm1846_vm9, %v1821_v59, %v1705_v63  ;;  %vm1866_vm13 = vcmp.eq.f32.partialorder %v2743_v14, %v1821_v59  ;;  %v4065_v23 = vsel %vm1846_vm9, %v1831_v57, %v1710_v36  ;;  %vm1871_vm14 = vcmp.eq.f32.partialorder %v2743_v14, %v1831_v57  ;;  %v4690_v63 = vld [vmem:[#allocation15_spill] sm:$0xff]  ;;  %v4692_v59 = vld [vmem:[#allocation53_spill] sm:$0xff] }
 0xa37   : > { %v1423_v0 = vsel %vm1411_vm6, %v4675_v2, %v1278_v51  ;;  %v4075_v60 = vsel %vm1866_vm13, -inf, %v3770_v3  ;;  %v4078_v21 = vsel %vm1871_vm14, -inf, %v3773_v49  ;;  %v4680_v49 = vld [vmem:[#allocation6_spill] sm:$0xff]  ;;  %v1414_v10 = vsel %vm1411_vm6, %v4688_v9, %v1269_v41  ;;  %v4707_v9 = vld [vmem:[#allocation35_spill] sm:$0xff] }
 0xa38   : > { %v1568_v3 = vsel %vm1556_vm7, %v4679_v48, %v1423_v0  ;;  %1901 = vmax.xlane.f32.xlu0 %v4075_v60  ;;  %1911 = vmax.xlane.f32.xlu1 %v4078_v21  ;;  %v844_v53 = vsel %vm831_vm2, %v4680_v49, 0.0  ;;  %v4689_v51 = vld [vmem:[#allocation14_spill] sm:$0xff]  ;;  %v984_v1 = vsel %vm976_vm3, %v4690_v63, %v839_v6  ;;  %v1559_v57 = vsel %vm1556_vm7, %v4692_v59, %v1414_v10  ;;  %v4698_v48 = vld [vmem:[#allocation33_spill] sm:$0xff]  ;;  %v4709_v63 = vld [vmem:[#allocation68_spill] sm:$0xff] }
 0xa39   : > { %v1713_v61 = vsel %vm1701_vm8, %v4683_v45, %v1568_v3  ;;  %v1837_v20 = vpop.xlane.xlu0 %1836  ;;  %v981_v54 = vsel %vm976_vm3, %v4689_v51, %v836_v56  ;;  %v989_v36 = vsel %vm976_vm3, %v4691_v46, %v844_v53  ;;  %v1127_v2 = vsel %vm1121_vm4, %v4694_v37, %v982_v8  ;;  %v4695_v0 = vld [vmem:[#allocation22_spill] sm:$0xff]  ;;  %v4699_v53 = vld [vmem:[#allocation23_spill] sm:$0xff]  ;;  %v4703_v8 = vld [vmem:[#allocation25_spill] sm:$0xff] }
 0xa3a   : > { %v4114_v40 = vsel %vm1846_vm9, %v1837_v20, %v1713_v61  ;;  %vm1874_vm15 = vcmp.eq.f32.partialorder %v2743_v14, %v1837_v20  ;;  %v1132_v24 = vsel %vm1121_vm4, %v4695_v0, %v987_v52  ;;  %v4696_v56 = vld [vmem:[#allocation66_spill] sm:$0xff]  ;;  %v1272_v47 = vsel %vm1266_vm5, %v4697_v26, %v1127_v2  ;;  %v4702_v20 = vld [vmem:[#allocation24_spill] sm:$0xff]  ;;  %v4705_v52 = vld [vmem:[#allocation55_spill] sm:$0xff] }
 0xa3b   : > { %v4127_v16 = vsel %vm1874_vm15, -inf, %v3782_v55  ;;  %v4693_v55 = vld [vmem:[#allocation18_spill] sm:$0xff]  ;;  %v1704_v25 = vsel %vm1701_vm8, %v4696_v56, %v1559_v57  ;;  %v1277_v3 = vsel %vm1266_vm5, %v4698_v48, %v1132_v24  ;;  %v1135_v17 = vsel %vm1121_vm4, %v4699_v53, %v990_v18  ;;  %v4708_v51 = vld [vmem:[#allocation67_spill] sm:$0xff]  ;;  %v4710_v37 = vld [vmem:[#allocation45_spill] sm:$0xff] }
 0xa3c   : > { %1917 = vmax.xlane.f32.xlu0 %v4127_v16  ;;  %v983_v62 = vsel %vm976_vm3, %v4693_v55, %v838_v5  ;;  %v4700_v5 = vld [vmem:[#allocation43_spill] sm:$0xff]  ;;  %v1422_v45 = vsel %vm1411_vm6, %v4701_v43, %v1277_v3  ;;  %v1126_v50 = vsel %vm1121_vm4, %v4702_v20, %v981_v54  ;;  %v1129_v4 = vsel %vm1121_vm4, %v4703_v8, %v984_v1  ;;  %v4704_v41 = vld [vmem:[#allocation54_spill] sm:$0xff]  ;;  %v4714_v3 = vld [vmem:[#allocation57_spill] sm:$0xff] }
 0xa3d   : > { %v1819_v6 = vpop.xlane.xlu1 %1818  ;;  %v1417_v27 = vsel %vm1411_vm6, %v4700_v5, %v1272_v47  ;;  %v1567_v7 = vsel %vm1556_vm7, %v4705_v52, %v1422_v45  ;;  %v1271_v10 = vsel %vm1266_vm5, %v4707_v9, %v1126_v50  ;;  %v4711_v0 = vld [vmem:[#allocation46_spill] sm:$0xff]  ;;  %v4713_v47 = vld [vmem:[#allocation56_spill] sm:$0xff]  ;;  %v4717_v5 = vld [vmem:[#allocation69_spill] sm:$0xff] }
 0xa3e   : > { %v4162_v49 = vsel %vm1846_vm9, %v1819_v6, %v1704_v25  ;;  %vm1865_vm0 = vcmp.eq.f32.partialorder %v2743_v14, %v1819_v6  ;;  %v1562_v31 = vsel %vm1556_vm7, %v4704_v41, %v1417_v27  ;;  %v1712_v1 = vsel %vm1701_vm8, %v4709_v63, %v1567_v7  ;;  %v4712_v6 = vld [vmem:[#allocation26_spill] sm:$0xff]  ;;  %v4719_v41 = vld [vmem:[#allocation47_spill] sm:$0xff]  ;;  %v4720_v52 = vld [vmem:[#allocation48_spill] sm:$0xff] }
 0xa3f   : > { %v4175_v61 = vsel %vm1865_vm0, -inf, %v3790_v35  ;;  %v4706_v35 = vld [vmem:[#allocation34_spill] sm:$0xff]  ;;  %v1707_v54 = vsel %vm1701_vm8, %v4708_v51, %v1562_v31  ;;  %v1416_v24 = vsel %vm1411_vm6, %v4711_v0, %v1271_v10  ;;  %v1134_v26 = vsel %vm1121_vm4, %v4712_v6, %v989_v36  ;;  %v4721_v9 = vld [vmem:[#allocation28_spill] sm:$0xff]  ;;  %v4723_v63 = vld [vmem:[#allocation59_spill] sm:$0xff] }
 0xa40   : > { %1899 = vmax.xlane.f32.xlu1 %v4175_v61  ;;  %v1280_v18 = vsel %vm1266_vm5, %v4706_v35, %v1135_v17  ;;  %v1561_v53 = vsel %vm1556_vm7, %v4714_v3, %v1416_v24  ;;  %v4716_v17 = vld [vmem:[#allocation37_spill] sm:$0xff]  ;;  %v4718_v43 = vld [vmem:[#allocation70_spill] sm:$0xff]  ;;  %v1128_v10 = vsel %vm1121_vm4, %v4721_v9, %v983_v62 }
 0xa41   : > { %v1825_v46 = vpop.xlane.xlu0 %1824  ;;  %v1835_v59 = vpop.xlane.xlu1 %1834  ;;  %v1425_v2 = vsel %vm1411_vm6, %v4710_v37, %v1280_v18  ;;  %v1279_v36 = vsel %vm1266_vm5, %v4716_v17, %v1134_v26  ;;  %v1706_v45 = vsel %vm1701_vm8, %v4718_v43, %v1561_v53  ;;  %v4722_v51 = vld [vmem:[#allocation58_spill] sm:$0xff]  ;;  %v4728_v53 = vld [vmem:[#allocation61_spill] sm:$0xff] }
 0xa42   : > { %v4204_v57 = vsel %vm1846_vm9, %v1825_v46, %v1707_v54  ;;  %vm1868_vm1 = vcmp.eq.f32.partialorder %v2743_v14, %v1825_v46  ;;  %v4209_v55 = vsel %vm1846_vm9, %v1835_v59, %v1712_v1  ;;  %vm1873_vm10 = vcmp.eq.f32.partialorder %v2743_v14, %v1835_v59  ;;  %v4725_v46 = vld [vmem:[#allocation71_spill] sm:$0xff]  ;;  %v4726_v59 = vld [vmem:[#allocation72_spill] sm:$0xff]  ;;  %v4727_v26 = vld [vmem:[#allocation50_spill] sm:$0xff] }
 0xa43   : > { %v4219_v56 = vsel %vm1868_vm1, -inf, %v3802_v15  ;;  %v4222_v25 = vsel %vm1873_vm10, -inf, %v3805_v34  ;;  %v1570_v48 = vsel %vm1556_vm7, %v4713_v47, %v1425_v2  ;;  %v4715_v15 = vld [vmem:[#allocation36_spill] sm:$0xff]  ;;  %v1424_v7 = vsel %vm1411_vm6, %v4720_v52, %v1279_v36 }
 0xa44   : > { %1905 = vmax.xlane.f32.xlu0 %v4219_v56  ;;  %1915 = vmax.xlane.f32.xlu1 %v4222_v25  ;;  %v1274_v34 = vsel %vm1266_vm5, %v4715_v15, %v1129_v4  ;;  %v1715_v27 = vsel %vm1701_vm8, %v4717_v5, %v1570_v48  ;;  %v1569_v1 = vsel %vm1556_vm7, %v4723_v63, %v1424_v7 }
 0xa45   : > { %v1841_v20 = vpop.xlane.xlu0 %1840  ;;  %v1823_v50 = vpop.xlane.xlu1 %1822  ;;  %v1419_v31 = vsel %vm1411_vm6, %v4719_v41, %v1274_v34  ;;  %v1714_v37 = vsel %vm1701_vm8, %v4726_v59, %v1569_v1  ;;  %v4729_v34 = vld [vmem:[#allocation74_spill] sm:$0xff] }
 0xa46   : > { %v4249_v8 = vsel %vm1846_vm9, %v1841_v20, %v1715_v27  ;;  %vm1876_vm11 = vcmp.eq.f32.partialorder %v2743_v14, %v1841_v20  ;;  %v4254_v4 = vsel %vm1846_vm9, %v1823_v50, %v1706_v45  ;;  %vm1867_vm12 = vcmp.eq.f32.partialorder %v2743_v14, %v1823_v50 }
 0xa47   : > { %v4264_v35 = vsel %vm1876_vm11, -inf, %v3818_v33  ;;  %v4267_v18 = vsel %vm1867_vm12, -inf, %v3821_v29  ;;  %v1564_v54 = vsel %vm1556_vm7, %v4722_v51, %v1419_v31  ;;  %v4724_v33 = vld [vmem:[#allocation39_spill] sm:$0xff] }
 0xa48   : > { %1921 = vmax.xlane.f32.xlu0 %v4264_v35  ;;  %1903 = vmax.xlane.f32.xlu1 %v4267_v18  ;;  %v1273_v29 = vsel %vm1266_vm5, %v4724_v33, %v1128_v10  ;;  %v1709_v62 = vsel %vm1701_vm8, %v4725_v46, %v1564_v54 }
 0xa49   : > { %v1829_v2 = vpop.xlane.xlu0 %1828  ;;  %v1839_v0 = vpop.xlane.xlu1 %1838  ;;  %v1418_v47 = vsel %vm1411_vm6, %v4727_v26, %v1273_v29 }
 0xa4a   : > { %v4291_v24 = vsel %vm1846_vm9, %v1829_v2, %v1709_v62  ;;  %vm1870_vm13 = vcmp.eq.f32.partialorder %v2743_v14, %v1829_v2  ;;  %v4296_v6 = vsel %vm1846_vm9, %v1839_v0, %v1714_v37  ;;  %vm1875_vm14 = vcmp.eq.f32.partialorder %v2743_v14, %v1839_v0 }
 0xa4b   : > { %v4303_v48 = vsel %vm1870_vm13, -inf, %v3834_v22  ;;  %v4306_v3 = vsel %vm1875_vm14, -inf, %v3837_v30  ;;  %v1563_v15 = vsel %vm1556_vm7, %v4728_v53, %v1418_v47 }
 0xa4c   : > { %1909 = vmax.xlane.f32.xlu0 %v4303_v48  ;;  %1919 = vmax.xlane.f32.xlu1 %v4306_v3  ;;  %v1708_v17 = vsel %vm1701_vm8, %v4729_v34, %v1563_v15 }
 0xa4d   : > { %v4316_v36 = vpop.xlane.xlu0 %1844  ;;  %v1827_v5 = vpop.xlane.xlu1 %1826 }
 0xa4e   : > { %vm1878_vm15 = vcmp.eq.f32.partialorder %v2743_v14, %v4316_v36  ;;  %v4322_v22 = vsel %vm1846_vm9, %v1827_v5, %v1708_v17  ;;  %vm1869_vm0 = vcmp.eq.f32.partialorder %v2743_v14, %v1827_v5 }
 0xa4f   : > { %v4326_v30 = vsel %vm1878_vm15, -inf, %v3850_v19  ;;  %v4329_v27 = vsel %vm1869_vm0, -inf, %v3853_v38 }
 0xa50   : > { %1925 = vmax.xlane.f32.xlu0 %v4326_v30  ;;  %1907 = vmax.xlane.f32.xlu1 %v4329_v27 }
 0xa51   : > { %v4333_v43 = vpop.xlane.xlu1 %1842 }
 0xa52   : > { %vm1877_vm1 = vcmp.eq.f32.partialorder %v2743_v14, %v4333_v43 }
 0xa53   : > { %v4338_v45 = vsel %vm1877_vm1, -inf, %v3862_v32 }
 0xa54   : > { %1923 = vmax.xlane.f32.xlu1 %v4338_v45 }
 0xabd   : > { %v1898_v20 = vpop.xlane.xlu0 %1897 }
 0xabe   : > { %vm1928_vm10 = vcmp.eq.f32.partialorder %v3983_v39, %v1898_v20 }
 0xabf   : > { %v1944_v19 = vsel %vm1928_vm10, %v2743_v14, 3e+38 }
 0xac0   : > { %1961 = vmin.xlane.f32.xlu0 %v1944_v19 }
 0xac1   : > { %v1914_v38 = vpop.xlane.xlu0 %1913  ;;  %v1896_v50 = vpop.xlane.xlu1 %1895 }
 0xac2   : > { %vm1936_vm11 = vcmp.eq.f32.partialorder %v4027_v11, %v1914_v38  ;;  %vm1927_vm12 = vcmp.eq.f32.partialorder %v4030_v28, %v1896_v50 }
 0xac3   : > { %v1952_v41 = vsel %vm1936_vm11, %v2743_v14, 3e+38  ;;  %v1943_v31 = vsel %vm1927_vm12, %v2743_v14, 3e+38 }
 0xac4   : > { %1977 = vmin.xlane.f32.xlu0 %v1952_v41  ;;  %1959 = vmin.xlane.f32.xlu1 %v1943_v31 }
 0xac5   : > { %v1902_v32 = vpop.xlane.xlu0 %1901  ;;  %v1912_v52 = vpop.xlane.xlu1 %1911 }
 0xac6   : > { %vm1930_vm13 = vcmp.eq.f32.partialorder %v4075_v60, %v1902_v32  ;;  %vm1935_vm14 = vcmp.eq.f32.partialorder %v4078_v21, %v1912_v52 }
 0xac7   : > { %v1946_v39 = vsel %vm1930_vm13, %v2743_v14, 3e+38  ;;  %v1951_v7 = vsel %vm1935_vm14, %v2743_v14, 3e+38 }
 0xac8   : > { %1965 = vmin.xlane.f32.xlu0 %v1946_v39  ;;  %1975 = vmin.xlane.f32.xlu1 %v1951_v7 }
 0xac9   : > { %v1918_v11 = vpop.xlane.xlu0 %1917 }
 0xaca   : > { %vm1938_vm15 = vcmp.eq.f32.partialorder %v4127_v16, %v1918_v11 }
 0xacb   : > { %v1954_v28 = vsel %vm1938_vm15, %v2743_v14, 3e+38 }
 0xacc   : > { %1981 = vmin.xlane.f32.xlu0 %v1954_v28 }
 0xacd   : > { %v1900_v9 = vpop.xlane.xlu1 %1899 }
 0xace   : > { %vm1929_vm0 = vcmp.eq.f32.partialorder %v4175_v61, %v1900_v9 }
 0xacf   : > { %v1945_v10 = vsel %vm1929_vm0, %v2743_v14, 3e+38 }
 0xad0   : > { %1963 = vmin.xlane.f32.xlu1 %v1945_v10 }
 0xad1   : > { %v1906_v60 = vpop.xlane.xlu0 %1905  ;;  %v1916_v21 = vpop.xlane.xlu1 %1915 }
 0xad2   : > { %vm1932_vm1 = vcmp.eq.f32.partialorder %v4219_v56, %v1906_v60  ;;  %vm1937_vm10 = vcmp.eq.f32.partialorder %v4222_v25, %v1916_v21 }
 0xad3   : > { %v1948_v51 = vsel %vm1932_vm1, %v2743_v14, 3e+38  ;;  %v1953_v54 = vsel %vm1937_vm10, %v2743_v14, 3e+38  ;;  %vm1991_vm10 = vcmp.eq.s32.totalorder %v2740_v13, 8 }
 0xad4   : > { %1969 = vmin.xlane.f32.xlu0 %v1948_v51  ;;  %1979 = vmin.xlane.f32.xlu1 %v1953_v54  ;;  %v4730_v51 = vld [vmem:[#allocation7_spill] sm:$0xff] }
 0xad5   : > { %v1922_v16 = vpop.xlane.xlu0 %1921  ;;  %v1904_v63 = vpop.xlane.xlu1 %1903  ;;  %v847_v54 = vsel %vm831_vm2, %v4730_v51, 0.0 }
 0xad6   : > { %vm1940_vm11 = vcmp.eq.f32.partialorder %v4264_v35, %v1922_v16  ;;  %vm1931_vm12 = vcmp.eq.f32.partialorder %v4267_v18, %v1904_v63  ;;  %v4731_v16 = vld [vmem:[#allocation17_spill] sm:$0xff] }
 0xad7   : > { %v1956_v61 = vsel %vm1940_vm11, %v2743_v14, 3e+38  ;;  %v1947_v1 = vsel %vm1931_vm12, %v2743_v14, 3e+38  ;;  %vm2024_vm11 = vcmask 72704   ;;  %v992_v63 = vsel %vm976_vm3, %v4731_v16, %v847_v54 }
 0xad8   : > { %1985 = vmin.xlane.f32.xlu0 %v1956_v61  ;;  %1967 = vmin.xlane.f32.xlu1 %v1947_v1 }
 0xad9   : > { %v1910_v56 = vpop.xlane.xlu0 %1909  ;;  %v1920_v25 = vpop.xlane.xlu1 %1919 }
 0xada   : > { %vm1934_vm13 = vcmp.eq.f32.partialorder %v4303_v48, %v1910_v56  ;;  %vm1939_vm14 = vcmp.eq.f32.partialorder %v4306_v3, %v1920_v25  ;;  %v4732_v56 = vld [vmem:[#allocation27_spill] sm:$0xff]  ;;  %v4733_v25 = vld [vmem:[#allocation38_spill] sm:$0xff] }
 0xadb   : > { %v1950_v33 = vsel %vm1934_vm13, %v2743_v14, 3e+38  ;;  %v1955_v29 = vsel %vm1939_vm14, %v2743_v14, 3e+38 }
 0xadc   : > { %1973 = vmin.xlane.f32.xlu0 %v1950_v33  ;;  %1983 = vmin.xlane.f32.xlu1 %v1955_v29 }
 0xadd   : > { %v1926_v35 = vpop.xlane.xlu0 %1925  ;;  %v1908_v18 = vpop.xlane.xlu1 %1907 }
 0xade   : > { %vm1942_vm15 = vcmp.eq.f32.partialorder %v4326_v30, %v1926_v35  ;;  %vm1933_vm0 = vcmp.eq.f32.partialorder %v4329_v27, %v1908_v18 }
 0xadf   : > { %v1958_v46 = vsel %vm1942_vm15, %v2743_v14, 3e+38  ;;  %v1949_v62 = vsel %vm1933_vm0, %v2743_v14, 3e+38 }
 0xae0   : > { %1989 = vmin.xlane.f32.xlu0 %v1958_v46  ;;  %1971 = vmin.xlane.f32.xlu1 %v1949_v62  ;;  %v4734_v46 = vld [vmem:[#allocation9_spill] sm:$0xff] }
 0xae1   : > { %v1924_v59 = vpop.xlane.xlu1 %1923  ;;  %v846_v62 = vsel %vm831_vm2, %v4734_v46, 0.0 }
 0xae2   : > { %vm1941_vm1 = vcmp.eq.f32.partialorder %v4338_v45, %v1924_v59  ;;  %v4735_v59 = vld [vmem:[#allocation49_spill] sm:$0xff] }
 0xae3   : > { %v1957_v37 = vsel %vm1941_vm1, %v2743_v14, 3e+38 }
 0xae4   : > { %1987 = vmin.xlane.f32.xlu1 %v1957_v37 }
 0xb4d   : > { %v1962_v2 = vpop.xlane.xlu0 %1961 }
 0xb4e   : > { %v1993_v0 = vsel %vm1991_vm10, %v1962_v2, %v3970_v12 }
 0xb4f   : > { %v2373_v26 = vtrunc.f32 %v1993_v0 }
 0xb51   : > { %v2374_v47 = vcvt.f32.s32 %v2373_v26  ;;  %v1978_v14 = vpop.xlane.xlu0 %1977  ;;  %v1960_v48 = vpop.xlane.xlu1 %1959  ;;  %v4736_v26 = vld [vmem:[#allocation19_spill] sm:$0xff] }
 0xb52   : > { %v2001_v3 = vsel %vm1991_vm10, %v1978_v14, %v4012_v42  ;;  %v1992_v12 = vsel %vm1991_vm10, %v1960_v48, %v4017_v44  ;;  %v4737_v14 = vld [vmem:[#allocation60_spill] sm:$0xff] }
 0xb53   : > { %2026 = vst.msk [vmem:[%s4381_s8 + $0x8] sm:$0xff] %vm2024_vm11, %v2374_v47  ;;  %v2389_v53 = vtrunc.f32 %v2001_v3  ;;  %v2371_v15 = vtrunc.f32 %v1992_v12  ;;  %v991_v47 = vsel %vm976_vm3, %v4736_v26, %v846_v62  ;;  %v4738_v12 = vld [vmem:[#allocation29_spill] sm:$0xff] }
 0xb55   : > { %v2390_v34 = vcvt.f32.s32 %v2389_v53  ;;  %v2372_v17 = vcvt.f32.s32 %v2371_v15  ;;  %v1966_v5 = vpop.xlane.xlu0 %1965  ;;  %v1976_v30 = vpop.xlane.xlu1 %1975  ;;  %v4739_v53 = vld [vmem:[#allocation73_spill] sm:$0xff] }
 0xb56   : > { %v1995_v27 = vsel %vm1991_vm10, %v1966_v5, %v4060_v58  ;;  %v2000_v42 = vsel %vm1991_vm10, %v1976_v30, %v4065_v23 }
 0xb57   : > { %2034 = vst.msk [vmem:[%s4381_s8 + $0x48] sm:$0xff] %vm2024_vm11, %v2390_v34  ;;  %2025 = vst.msk [vmem:[%s4381_s8] sm:$0xff] %vm2024_vm11, %v2372_v17  ;;  %v2377_v44 = vtrunc.f32 %v1995_v27  ;;  %v2387_v45 = vtrunc.f32 %v2000_v42  ;;  %v4740_v34 = vld [vmem:[#allocation40_spill] sm:$0xff] }
 0xb59   : > { %v2378_v20 = vcvt.f32.s32 %v2377_v44  ;;  %v2388_v19 = vcvt.f32.s32 %v2387_v45  ;;  %v1982_v38 = vpop.xlane.xlu0 %1981  ;;  %v4741_v45 = vld [vmem:[#allocation51_spill] sm:$0xff] }
 0xb5a   : > { %v2003_v50 = vsel %vm1991_vm10, %v1982_v38, %v4114_v40 }
 0xb5b   : > { %2028 = vst.msk [vmem:[%s4381_s8 + $0x18] sm:$0xff] %vm2024_vm11, %v2378_v20  ;;  %2033 = vst.msk [vmem:[%s4381_s8 + $0x40] sm:$0xff] %vm2024_vm11, %v2388_v19  ;;  %v2393_v58 = vtrunc.f32 %v2003_v50  ;;  %v4742_v50 = vld [vmem:[#allocation62_spill] sm:$0xff] }
 0xb5d   : > { %v2394_v23 = vcvt.f32.s32 %v2393_v58  ;;  %v1964_v41 = vpop.xlane.xlu1 %1963 }
 0xb5e   : > { %v1994_v31 = vsel %vm1991_vm10, %v1964_v41, %v4162_v49  ;;  %v4743_v41 = vld [vmem:[#allocation75_spill] sm:$0xff] }
 0xb5f   : > { %2036 = vst.msk [vmem:[%s4381_s8 + $0x58] sm:$0xff] %vm2024_vm11, %v2394_v23  ;;  %v2375_v32 = vtrunc.f32 %v1994_v31 }
 0xb61   : > { %v2376_v52 = vcvt.f32.s32 %v2375_v32  ;;  %v1970_v39 = vpop.xlane.xlu0 %1969  ;;  %v1980_v7 = vpop.xlane.xlu1 %1979 }
 0xb62   : > { %v1997_v40 = vsel %vm1991_vm10, %v1970_v39, %v4204_v57  ;;  %v2002_v11 = vsel %vm1991_vm10, %v1980_v7, %v4209_v55 }
 0xb63   : > { %2027 = vst.msk [vmem:[%s4381_s8 + $0x10] sm:$0xff] %vm2024_vm11, %v2376_v52  ;;  %v2381_v28 = vtrunc.f32 %v1997_v40  ;;  %v2391_v49 = vtrunc.f32 %v2002_v11 }
 0xb65   : > { %v2382_v9 = vcvt.f32.s32 %v2381_v28  ;;  %v2392_v10 = vcvt.f32.s32 %v2391_v49  ;;  %v1986_v60 = vpop.xlane.xlu0 %1985  ;;  %v1968_v21 = vpop.xlane.xlu1 %1967 }
 0xb66   : > { %v2005_v57 = vsel %vm1991_vm10, %v1986_v60, %v4249_v8  ;;  %v1996_v55 = vsel %vm1991_vm10, %v1968_v21, %v4254_v4  ;;  %v1137_v8 = vsel %vm1121_vm4, %v4732_v56, %v992_v63 }
 0xb67   : > { %2030 = vst.msk [vmem:[%s4381_s8 + $0x28] sm:$0xff] %vm2024_vm11, %v2382_v9  ;;  %2035 = vst.msk [vmem:[%s4381_s8 + $0x50] sm:$0xff] %vm2024_vm11, %v2392_v10  ;;  %v2397_v61 = vtrunc.f32 %v2005_v57  ;;  %v2379_v1 = vtrunc.f32 %v1996_v55  ;;  %v1282_v4 = vsel %vm1266_vm5, %v4733_v25, %v1137_v8 }
 0xb68   : > { %v1427_v37 = vsel %vm1411_vm6, %v4735_v59, %v1282_v4 }
 0xb69   : > { %v2398_v33 = vcvt.f32.s32 %v2397_v61  ;;  %v2380_v29 = vcvt.f32.s32 %v2379_v1  ;;  %v1974_v35 = vpop.xlane.xlu0 %1973  ;;  %v1984_v18 = vpop.xlane.xlu1 %1983  ;;  %v1572_v48 = vsel %vm1556_vm7, %v4737_v14, %v1427_v37 }
 0xb6a   : > { %v1999_v2 = vsel %vm1991_vm10, %v1974_v35, %v4291_v24  ;;  %v2004_v0 = vsel %vm1991_vm10, %v1984_v18, %v4296_v6  ;;  %v1136_v6 = vsel %vm1121_vm4, %v4738_v12, %v991_v47  ;;  %v1717_v15 = vsel %vm1701_vm8, %v4739_v53, %v1572_v48 }
 0xb6b   : > { %2038 = vst.msk [vmem:[%s4381_s8 + $0x68] sm:$0xff] %vm2024_vm11, %v2398_v33  ;;  %2029 = vst.msk [vmem:[%s4381_s8 + $0x20] sm:$0xff] %vm2024_vm11, %v2380_v29  ;;  %v2385_v3 = vtrunc.f32 %v1999_v2  ;;  %v2395_v24 = vtrunc.f32 %v2004_v0  ;;  %v1281_v17 = vsel %vm1266_vm5, %v4740_v34, %v1136_v6  ;;  %v1862_v5 = vsel %vm1846_vm9, %v4316_v36, %v1717_v15 }
 0xb6c   : > { %v1426_v20 = vsel %vm1411_vm6, %v4741_v45, %v1281_v17 }
 0xb6d   : > { %v2386_v30 = vcvt.f32.s32 %v2385_v3  ;;  %v2396_v27 = vcvt.f32.s32 %v2395_v24  ;;  %v1990_v42 = vpop.xlane.xlu0 %1989  ;;  %v1972_v44 = vpop.xlane.xlu1 %1971  ;;  %v1571_v36 = vsel %vm1556_vm7, %v4742_v50, %v1426_v20 }
 0xb6e   : > { %v2007_v19 = vsel %vm1991_vm10, %v1990_v42, %v1862_v5  ;;  %v1998_v38 = vsel %vm1991_vm10, %v1972_v44, %v4322_v22  ;;  %v1716_v31 = vsel %vm1701_vm8, %v4743_v41, %v1571_v36 }
 0xb6f   : > { %2032 = vst.msk [vmem:[%s4381_s8 + $0x38] sm:$0xff] %vm2024_vm11, %v2386_v30  ;;  %2037 = vst.msk [vmem:[%s4381_s8 + $0x60] sm:$0xff] %vm2024_vm11, %v2396_v27  ;;  %v2401_v58 = vtrunc.f32 %v2007_v19  ;;  %v2383_v23 = vtrunc.f32 %v1998_v38  ;;  %v1861_v32 = vsel %vm1846_vm9, %v4333_v43, %v1716_v31 }
 0xb71   : > { %v2402_v22 = vcvt.f32.s32 %v2401_v58  ;;  %v2384_v52 = vcvt.f32.s32 %v2383_v23  ;;  %v1988_v39 = vpop.xlane.xlu1 %1987 }
 0xb72   : > { %v2006_v7 = vsel %vm1991_vm10, %v1988_v39, %v1861_v32 }
 0xb73   : > { %2040 = vst.msk [vmem:[%s4381_s8 + $0x78] sm:$0xff] %vm2024_vm11, %v2402_v22  ;;  %2031 = vst.msk [vmem:[%s4381_s8 + $0x30] sm:$0xff] %vm2024_vm11, %v2384_v52  ;;  %v2399_v40 = vtrunc.f32 %v2006_v7 }
 0xb75   : > { %v2400_v11 = vcvt.f32.s32 %v2399_v40 }
 0xb77   : > { %2039 = vst.msk [vmem:[%s4381_s8 + $0x70] sm:$0xff] %vm2024_vm11, %v2400_v11 }
 0xb78 PF: > { %s14_s17 = sadd.s32 1, %s2452_s17   ;;  %s4744_s15 = smov %s2448_s16 }
 0xb79   : > { %p11_p5 = scmp.ge.s32.totalorder %s14_s17, 4   ;;  %s4745_s16 = smov %s4747_s18 }
 0xb7b   :  { %13 = sbr.rel (!%p11_p5) target bundleno = 2 (0x2), region = 75 }

// kernel: gc_block_forward.3
= control target key start
LH: loop header
LB: loop body
LE: loop exit
PB: predicated region body
PF: predicated region fallthrough
CT: control target
= control target key end

     0   :  { %12 = vsyncpa [#allocation3], 0  ;;  %s2709_s0 = inlined_call_operand.vmem [shape: bf16[2,128,8], index: 0, kind: input, shape index: {}]   ;;  %s2710_s1 = inlined_call_operand.vmem [shape: bf16[2,128,72], index: 1, kind: input, shape index: {}]   ;;  %s2711_s2 = inlined_call_operand.vmem [shape: bf16[8,8], index: 2, kind: input, shape index: {}]   ;;  %s2712_s3 = inlined_call_operand.vmem [shape: bf16[24,8], index: 3, kind: input, shape index: {}]   ;;  %s2713_s4 = inlined_call_operand.vmem [shape: f32[3,8,8], index: 4, kind: input, shape index: {}]   ;;  %s2714_s5 = inlined_call_operand.vmem [shape: f32[1,8], index: 5, kind: input, shape index: {}]   ;;  %s2715_s6 = inlined_call_operand.vmem [shape: f32[8,1], index: 6, kind: input, shape index: {}]   ;;  %s2716_s7 = inlined_call_operand.hbm [shape: f32[2,8,128], index: 7, kind: output, shape index: {}]  }
   0x1   :  { %14 = vsyncpa [#allocation3 + $0x1], 0  ;;  %s2282_s24 = smov 0   ;;  %s2284_s25 = smov 0  }
   0x2   :  { %s2286_s26 = smov 0   ;;  %s2288_s27 = smov 0  }
   0x3   :  { %s2290_s28 = smov 0   ;;  %s2292_s29 = smov 0  }
   0x4 LB: > { %s1582_s30 = sadd.s32 4294967295, %s2233_s29   ;;  %s1583_s8 = sadd.s32 4294967294, %s2233_s29   ;;  %s2233_s29 = sphi %s2292_s29, %s20_s29   ;;  %s2229_s28 = sphi %s2290_s28, %s2725_s28   ;;  %s2225_s27 = sphi %s2288_s27, %s2724_s27   ;;  %s2221_s26 = sphi %s2286_s26, %s2723_s26   ;;  %s2217_s25 = sphi %s2284_s25, %s2722_s25   ;;  %s2213_s24 = sphi %s2282_s24, %s2721_s24  }
   0x5   : > { %s32_s9 = sadd.s32 1, %s2229_s28  ;;  %s202_s10 = sadd.s32 1, %s2221_s26 }
   0x6   : > { %p34_p0 = scmp.ge.s32.totalorder %s32_s9, 2  ;;  %p212_p1 = scmp.ne.s32.totalorder %s2221_s26, %s2217_s25 }
   0x7   : > { %p213_p2 = scmp.eq.s32.totalorder %s1582_s30, 1  ;;  %p218_p3 = scmp.ne.s32.totalorder %s2217_s25, %s2213_s24 }
   0x8   : > { %s2727_s9 = smov (%p34_p0, %s32_s9), 0  ;;  %p219_p5 = scmp.eq.s32.totalorder %s1583_s8, 1 }
   0x9   : > { %p2322_p4 = por %p213_p2, %p212_p1  ;;  %s197_s12 = ssub.s32 %s2229_s28, %s2727_s9 }
   0xa   : > { %p1586_p6 = scmp.ge.s32.totalorder %s2233_s29, 1  ;;  %p200_p7 = scmp.eq.s32.totalorder %s197_s12, 0 }
   0xb   : > { %p2329_p8 = por %p219_p5, %p218_p3  ;;  %p278_p9 = scmp.lt.s32.totalorder %s2233_s29, 3 }
   0xc   : > { %s2335_s14 = scalar_select %p200_p7, %s2221_s26, %s202_s10  }
   0xd   : > { %p279_p10 = pnand %p1586_p6, %p278_p9 }
   0xe   : > { %v360_v0 = vld [vmem:[%s2711_s2] sm:$0xf] (!%p279_p10)  ;;  %vm433_vm0 = vcmask (!%p279_p10), 1043456   ;;  %p324_p11 = scmp.lt.s32.totalorder (!%p279_p10), %s2225_s27, 1  ;;  %vm408_vm1 = vcmask (!%p279_p10), 64512   ;;  %s2235_s16 = smov (!%p279_p10), 104  }
   0xf   : > { %282 = sbr.rel (%p279_p10) target bundleno = 954 (0x3ba), region = 48  ;;  %2071 = vmatprep.subr.msk.bf16.mxu0 (!%p279_p10), %vm433_vm0, %v360_v0  ;;  %v435_v1 = vsel (!%p279_p10), %vm433_vm0, %v360_v0, 0  ;;  %v2347_v2 = vld [vmem:[%s2712_s3] sm:$0xff] (!%p279_p10)   ;;  %v2366_v4 = vld [vmem:[%s2712_s3 + $0x8] ss:$0 sps:$4 sm:$0xff] (!%p279_p10)   ;;  %vm602_vm2 = vcmask (!%p279_p10), 195584   ;;  %vm2472_vm3 = vmpackc.low (!%p279_p10), %vm408_vm1, %vm408_vm1 }
  0x10   : > { %1793 = vmatpush3.bf16.msra.mxu0 (!%p279_p10), %v435_v1  ;;  %v2388_v10 = vsel (!%p279_p10), %vm433_vm0, %v2366_v4, 0  ;;  %v2236_v26 = vmov (!%p279_p10), 0.0|0.0   ;;  %v2446_v45 = vld [vmem:[%s2714_s5] ss:$0 sm:$0xff] (!%p279_p10)  ;;  %vm2238_vm4 = vmmov (!%p279_p10), 0   ;;  %s320_s15 = sand.u32 (!%p279_p10), 1, %s2217_s25  }
  0x11   : > { %1810 = vmatprep.subr.bf16.mxu0 (!%p279_p10), %v2347_v2  ;;  %1975 = vmatprep.subr.bf16.mxu1 (!%p279_p10), %v2236_v26 }
  0x16   : > { %s325_s17 = scalar_select %p324_p11, %s2225_s27, 1 }
  0x18   : > { %s1700_s20 = sshll.u32 %s325_s17, 6  ;;  %s2237_s17 = smov 80  }
  0x19   : > { %s2353_s23 = scalar_lea.vmem %s2710_s1, %s1700_s20  ;;  %s2358_s10 = scalar_lea.vmem %s2709_s0, %s1700_s20 }
  0x1a   : > { %v2361_v3 = vld [vmem:[%s2353_s23] sm:$0xff]   ;;  %v2139_v6 = vld [vmem:[%s2358_s10 + $0x8] sm:$0xff]   ;;  %v2378_v8 = vld [vmem:[%s2353_s23 + $0x10] sm:$0xff]  }
  0x1b   : > { %v2138_v5 = vld [vmem:[%s2358_s10] sm:$0xff]   ;;  %760 = vrot.lane.b32.xlu0 %v2361_v3, %s2235_s16  ;;  %v2374_v7 = vld [vmem:[%s2353_s23 + $0x8] sm:$0xff]   ;;  %v2142_v9 = vld [vmem:[%s2358_s10 + $0x10] sm:$0xff]  }
  0x1c   : > { %1794 = vmatprep.mubr.msk.bf16.mxu0 %vm408_vm1, %v2138_v5  ;;  %764 = vrot.lane.b32.xlu1 %v2378_v8, %s2235_s16  ;;  %v2143_v11 = vld [vmem:[%s2358_s10 + $0x18] sm:$0xff]   ;;  %v2145_v13 = vld [vmem:[%s2358_s10 + $0x20] sm:$0xff]   ;;  %v2148_v15 = vld [vmem:[%s2353_s23 + $0x28] sm:$0xff]  }
  0x1d   : > { %1795 = vmatmul.mubr.msk.bf16.vlgmr.msra.gmra.mrb[0].mxu0 %vm408_vm1, %v2139_v6  ;;  %v2144_v12 = vld [vmem:[%s2353_s23 + $0x18] sm:$0xff]   ;;  %v2147_v14 = vld [vmem:[%s2353_s23 + $0x20] sm:$0xff]   ;;  %v2152_v16 = vld [vmem:[%s2353_s23 + $0x30] sm:$0xff]  }
  0x1e   : > { %1811 = vmatpush3.bf16.msra.mxu0 %v2347_v2  ;;  %1798 = vmatprep.mubr.msk.bf16.mxu0 %vm408_vm1, %v2142_v9  ;;  %v2146_v17 = vld [vmem:[%s2358_s10 + $0x28] sm:$0xff]   ;;  %v2153_v18 = vld [vmem:[%s2353_s23 + $0x38] sm:$0xff]   ;;  %v2149_v19 = vld [vmem:[%s2358_s10 + $0x30] sm:$0xff]   ;;  %s1476_s23 = scalar_lea.sflag [#allocation3], %s320_s15 }
  0x1f   : > { %762 = vrot.lane.b32.xlu0 %v2374_v7, %s2235_s16  ;;  %2072 = vmatprep.subr.msk.bf16.mxu0 %vm433_vm0, %v2366_v4  ;;  %v2150_v20 = vld [vmem:[%s2358_s10 + $0x38] sm:$0xff]  }
  0x20   : > { %766 = vrot.lane.b32.xlu1 %v2144_v12, %s2235_s16 }
  0x22   : > { %1813 = vmatpush3.bf16.msra.mxu0 %v2388_v10 }
  0x23   : > { %1830 = vmatprep.subr.bf16.mxu0 %v2347_v2  ;;  %768 = vrot.lane.b32.xlu0 %v2147_v14, %s2235_s16 }
  0x24   : > { %770 = vrot.lane.b32.xlu1 %v2148_v15, %s2235_s16 }
  0x25   : > { %1799 = vmatmul.mubr.msk.bf16.gmra.mrb[4].mxu0 %vm408_vm1, %v2143_v11 }
  0x26   : > { %1802 = vmatprep.mubr.msk.bf16.mxu0 %vm408_vm1, %v2145_v13 }
  0x27   : > { %772 = vrot.lane.b32.xlu0 %v2152_v16, %s2235_s16 }
  0x28   : > { %774 = vrot.lane.b32.xlu1 %v2153_v18, %s2235_s16  ;;  %s1587_s16 = sshll.u32 %s320_s15, 3 }
  0x29   : > { %s322_s18 = scalar_lea.vmem [#allocation2], %s1587_s16 }
  0x2a   : > { %s1490_s19 = sshll.u32 %s322_s18, 4  ;;  %s2664_s19 = int_to_ptr.vmem [resolvable:$true] %s1490_s19 }
  0x2b   : > { %1173 = vrot.lane.b32.xlu0 %v2361_v3, %s2237_s17  ;;  %s2155_s30 = scalar_lea.vmem %s2664_s19, 128 }
  0x2c   : > { %1175 = vrot.lane.b32.xlu1 %v2374_v7, %s2237_s17  ;;  %p2156_p12 = scmp.ne.s32.totalorder %s2664_s19, %s2155_s30 }
  0x2d   : > { %1803 = vmatmul.mubr.msk.bf16.gmra.mrb[8].mxu0 %vm408_vm1, %v2146_v17 }
  0x2e   : > { %1806 = vmatprep.mubr.msk.bf16.mxu0 %vm408_vm1, %v2149_v19  ;;  %p2157_p13 = pnand %p2156_p12, %p2322_p4 }
  0x2f   : > { %1177 = vrot.lane.b32.xlu0 %v2378_v8, %s2237_s17 }
  0x30   : > { %1179 = vrot.lane.b32.xlu1 %v2144_v12, %s2237_s17  ;;  %p2158_p0 = pneg %p2157_p13 }
  0x33   : > { %1181 = vrot.lane.b32.xlu0 %v2147_v14, %s2237_s17 }
  0x34   : > { %1183 = vrot.lane.b32.xlu1 %v2148_v15, %s2237_s17 }
  0x35   : > { %1807 = vmatmul.mubr.msk.bf16.gmra.mrb[12].mxu0 %vm408_vm1, %v2150_v20 }
  0x36   : > { %1814 = vmatprep.mubr.msk.bf16.mxu0 %vm602_vm2, %v2361_v3 }
  0x37   : > { %1185 = vrot.lane.b32.xlu0 %v2152_v16, %s2237_s17 }
  0x38   : > { %1187 = vrot.lane.b32.xlu1 %v2153_v18, %s2237_s17  ;;  %s1697_s17 = sshll.u32 %s2225_s27, 7  ;;  %s2241_s27 = smov [#allocation2]  }
  0x39   : > { %s2662_s22 = scalar_lea.hbm %s2716_s7, %s1697_s17  ;;  %s2159_s8 = sshll.u32 %s2241_s27, 4  ;;  %s2160_s8 = int_to_ptr.vmem [resolvable:$false] %s2159_s8 }
  0x3a   : > { %s2161_s10 = scalar_lea.vmem %s2160_s8, 256  ;;  %p2162_p1 = scmp.lt.s32.totalorder %s2664_s19, %s2160_s8 }
  0x3b   : > { %p2163_p2 = scmp.lt.s32.totalorder %s2161_s10, %s2155_s30 }
  0x3d   : > { %1815 = vmatmul.mubr.msk.bf16.vlgmr.msra.gmra.mrb[16].mxu0 %vm602_vm2, %v2374_v7  ;;  %p2164_p3 = por %p2163_p2, %p2162_p1 }
  0x3e   : > { %1818 = vmatprep.mubr.msk.bf16.mxu0 %vm602_vm2, %v2378_v8  ;;  %1831 = vmatpush3.bf16.msra.mxu0 %v2347_v2 }
  0x3f   : > { %2073 = vmatprep.subr.msk.bf16.mxu0 %vm433_vm0, %v2366_v4  ;;  %p2165_p5 = pnand %p2164_p3, %p2158_p0 }
  0x42   : > { %1833 = vmatpush3.bf16.msra.mxu0 %v2388_v10 }
  0x43   : > { %2007 = vmatprep.subr.bf16.mxu0 %v2236_v26 }
  0x45   : > { %1819 = vmatmul.mubr.msk.bf16.gmra.mrb[20].mxu0 %vm602_vm2, %v2144_v12 }
  0x46   : > { %1822 = vmatprep.mubr.msk.bf16.mxu0 %vm602_vm2, %v2147_v14 }
  0x4d   : > { %1823 = vmatmul.mubr.msk.bf16.gmra.mrb[24].mxu0 %vm602_vm2, %v2148_v15 }
  0x4e   : > { %1826 = vmatprep.mubr.msk.bf16.mxu0 %vm602_vm2, %v2152_v16 }
  0x55   : > { %1827 = vmatmul.mubr.msk.bf16.gmra.mrb[28].mxu0 %vm602_vm2, %v2153_v18 }
  0x8d   : > { %v761_v21 = vpop.permute.xlu0 %760 }
  0x8e   : > { %1834 = vmatprep.mubr.msk.bf16.mxu0 %vm602_vm2, %v761_v21  ;;  %v765_v23 = vpop.permute.xlu1 %764 }
  0x91   : > { %v763_v22 = vpop.permute.xlu0 %762 }
  0x92   : > { %1835 = vmatmul.mubr.msk.bf16.vlgmr.msra.gmra.mrb[32].mxu0 %vm602_vm2, %v763_v22  ;;  %v767_v24 = vpop.permute.xlu1 %766 }
  0x93   : > { %1838 = vmatprep.mubr.msk.bf16.mxu0 %vm602_vm2, %v765_v23 }
  0x95   : > { %v769_v25 = vpop.permute.xlu0 %768 }
  0x96   : > { %v771_v27 = vpop.permute.xlu1 %770 }
  0x99   : > { %v773_v28 = vpop.permute.xlu0 %772 }
  0x9a   : > { %1839 = vmatmul.mubr.msk.bf16.gmra.mrb[36].mxu0 %vm602_vm2, %v767_v24  ;;  %v775_v29 = vpop.permute.xlu1 %774 }
  0x9b   : > { %1842 = vmatprep.mubr.msk.bf16.mxu0 %vm602_vm2, %v769_v25 }
  0xa2   : > { %1843 = vmatmul.mubr.msk.bf16.gmra.mrb[40].mxu0 %vm602_vm2, %v771_v27 }
  0xa3   : > { %1846 = vmatprep.mubr.msk.bf16.mxu0 %vm602_vm2, %v773_v28 }
  0xaa   : > { %1847 = vmatmul.mubr.msk.bf16.gmra.mrb[44].mxu0 %vm602_vm2, %v775_v29 }
  0xf0   : > { %v1796_v30 = vpop.f32.mrb[0].mxu0 }
  0xf1   : > { %v471_v31 = vpop.f32.mrb[1].mxu0  ;;  %v2449_v47 = vadd.f32 %v1796_v30, %v2446_v45 }
  0xf2   : > { %v1797_v32 = vpop.f32.mrb[2].mxu0  ;;  %v2452_v48 = vadd.f32 %v2446_v45, %v471_v31 }
  0xf3   : > { %v474_v33 = vpop.f32.mrb[3].mxu0  ;;  %v2455_v49 = vadd.f32 %v1797_v32, %v2446_v45 }
  0xf4   : > { %v2458_v50 = vadd.f32 %v2446_v45, %v474_v33 }
  0xf8   : > { %v1800_v34 = vpop.f32.mrb[4].mxu0 }
  0xf9   : > { %v487_v35 = vpop.f32.mrb[5].mxu0  ;;  %v2465_v61 = vadd.f32 %v1800_v34, %v2446_v45 }
  0xfa   : > { %v1801_v36 = vpop.f32.mrb[6].mxu0  ;;  %v2468_v63 = vadd.f32 %v2446_v45, %v487_v35 }
  0xfb   : > { %v490_v37 = vpop.f32.mrb[7].mxu0  ;;  %v2477_v3 = vadd.f32 %v1801_v36, %v2446_v45 }
  0xfc   : > { %v2480_v6 = vadd.f32 %v2446_v45, %v490_v37 }
 0x100   : > { %v1804_v38 = vpop.f32.mrb[8].mxu0 }
 0x101   : > { %v503_v39 = vpop.f32.mrb[9].mxu0  ;;  %v2490_v19 = vadd.f32 %v1804_v38, %v2446_v45 }
 0x102   : > { %v1805_v40 = vpop.f32.mrb[10].mxu0  ;;  %v2493_v21 = vadd.f32 %v2446_v45, %v503_v39 }
 0x103   : > { %v506_v41 = vpop.f32.mrb[11].mxu0  ;;  %v2496_v23 = vadd.f32 %v1805_v40, %v2446_v45 }
 0x104   : > { %v2499_v25 = vadd.f32 %v2446_v45, %v506_v41 }
 0x108   : > { %v1808_v42 = vpop.f32.mrb[12].mxu0 }
 0x109   : > { %v519_v43 = vpop.f32.mrb[13].mxu0  ;;  %v2509_v38 = vadd.f32 %v1808_v42, %v2446_v45 }
 0x10a   : > { %v1809_v44 = vpop.f32.mrb[14].mxu0  ;;  %v2512_v40 = vadd.f32 %v2446_v45, %v519_v43 }
 0x10b   : > { %v522_v46 = vpop.f32.mrb[15].mxu0 }
 0x110   : > { %v1816_v51 = vpop.f32.mrb[16].mxu0 }
 0x111   : > { %v729_v52 = vsub.f32 %v2449_v47, %v1816_v51  ;;  %v664_v53 = vpop.f32.mrb[17].mxu0  ;;  %v2515_v51 = vadd.f32 %v1809_v44, %v2446_v45 }
 0x112   : > { %v727_v54 = vsub.f32 %v2452_v48, %v664_v53  ;;  %v1817_v55 = vpop.f32.mrb[18].mxu0  ;;  %v2518_v53 = vadd.f32 %v2446_v45, %v522_v46 }
 0x113   : > { %v745_v56 = vmax.f32 %v729_v52, 0.0  ;;  %v730_v57 = vsub.f32 %v2455_v49, %v1817_v55  ;;  %v667_v58 = vpop.f32.mrb[19].mxu0 }
 0x114   : > { %v743_v59 = vmax.f32 %v727_v54, 0.0  ;;  %v728_v60 = vsub.f32 %v2458_v50, %v667_v58 }
 0x115   : > { %v746_v62 = vmax.f32 %v730_v57, 0.0 }
 0x116   : > { %v744_v0 = vmax.f32 %v728_v60, 0.0 }
 0x117   : > { %v2012_v5 = vpack.c.bf16 %v746_v62, %v745_v56  ;;  %v2239_v56 = vmov 0.0  }
 0x118   : > { %v2008_v7 = vpack.c.bf16 %v744_v0, %v743_v59  ;;  %v1820_v8 = vpop.f32.mrb[20].mxu0  ;;  %1882 = vmatprep.mubr.msk.f32.mxu1 %vm2238_vm4, %v2239_v56  ;;  %1917 = vmatprep.mubr.msk.f32.mxu0 %vm2238_vm4, %v2239_v56 }
 0x119   : > { %v733_v9 = vsub.f32 %v2465_v61, %v1820_v8  ;;  %v680_v11 = vpop.f32.mrb[21].mxu0  ;;  %v759_v8 = vld [vmem:[%s2713_s4] sm:$0xff] }
 0x11a   : > { %2010 = vmatpush3.bf16.xpose.msk.msra.mxu0 %vm2472_vm3, %v2008_v7  ;;  %v731_v12 = vsub.f32 %v2468_v63, %v680_v11  ;;  %v1821_v13 = vpop.f32.mrb[22].mxu0 }
 0x11b   : > { %v749_v14 = vmax.f32 %v733_v9, 0.0  ;;  %2011 = vmatprep.subr.bf16.mxu0 %v2236_v26  ;;  %v734_v15 = vsub.f32 %v2477_v3, %v1821_v13  ;;  %v683_v16 = vpop.f32.mrb[23].mxu0 }
 0x11c   : > { %v747_v17 = vmax.f32 %v731_v12, 0.0  ;;  %v732_v18 = vsub.f32 %v2480_v6, %v683_v16 }
 0x11d   : > { %v750_v20 = vmax.f32 %v734_v15, 0.0 }
 0x11e   : > { %v748_v22 = vmax.f32 %v732_v18, 0.0 }
 0x11f   : > { %v2020_v24 = vpack.c.bf16 %v750_v20, %v749_v14 }
 0x120   : > { %v2016_v27 = vpack.c.bf16 %v748_v22, %v747_v17  ;;  %v1824_v28 = vpop.f32.mrb[24].mxu0 }
 0x121   : > { %v737_v29 = vsub.f32 %v2490_v19, %v1824_v28  ;;  %v696_v30 = vpop.f32.mrb[25].mxu0 }
 0x122   : > { %2014 = vmatpush3.bf16.xpose.msk.msra.mxu0 %vm2472_vm3, %v2012_v5  ;;  %v735_v31 = vsub.f32 %v2493_v21, %v696_v30  ;;  %v1825_v32 = vpop.f32.mrb[26].mxu0 }
 0x123   : > { %2015 = vmatprep.subr.bf16.mxu0 %v2236_v26  ;;  %v753_v33 = vmax.f32 %v737_v29, 0.0  ;;  %v738_v34 = vsub.f32 %v2496_v23, %v1825_v32  ;;  %v699_v35 = vpop.f32.mrb[27].mxu0 }
 0x124   : > { %v751_v36 = vmax.f32 %v735_v31, 0.0  ;;  %v736_v37 = vsub.f32 %v2499_v25, %v699_v35 }
 0x125   : > { %v754_v39 = vmax.f32 %v738_v34, 0.0 }
 0x126   : > { %v752_v41 = vmax.f32 %v736_v37, 0.0 }
 0x127   : > { %v2028_v52 = vpack.c.bf16 %v754_v39, %v753_v33 }
 0x128   : > { %v2024_v54 = vpack.c.bf16 %v752_v41, %v751_v36  ;;  %v1828_v55 = vpop.f32.mrb[28].mxu0 }
 0x129   : > { %v741_v42 = vsub.f32 %v2509_v38, %v1828_v55  ;;  %v712_v43 = vpop.f32.mrb[29].mxu0 }
 0x12a   : > { %2018 = vmatpush3.bf16.xpose.msk.msra.mxu0 %vm2472_vm3, %v2016_v27  ;;  %v739_v44 = vsub.f32 %v2512_v40, %v712_v43  ;;  %v1829_v45 = vpop.f32.mrb[30].mxu0 }
 0x12b   : > { %2019 = vmatprep.subr.bf16.mxu0 %v2236_v26  ;;  %v757_v46 = vmax.f32 %v741_v42, 0.0  ;;  %v742_v57 = vsub.f32 %v2515_v51, %v1829_v45  ;;  %v715_v58 = vpop.f32.mrb[31].mxu0 }
 0x12c   : > { %v755_v59 = vmax.f32 %v739_v44, 0.0  ;;  %v740_v60 = vsub.f32 %v2518_v53, %v715_v58 }
 0x12d   : > { %v758_v62 = vmax.f32 %v742_v57, 0.0 }
 0x12e   : > { %v756_v0 = vmax.f32 %v740_v60, 0.0 }
 0x12f   : > { %v2036_v5 = vpack.c.bf16 %v758_v62, %v757_v46 }
 0x130   : > { %v2032_v7 = vpack.c.bf16 %v756_v0, %v755_v59 }
 0x132   : > { %2022 = vmatpush3.bf16.xpose.msk.msra.mxu0 %vm2472_vm3, %v2020_v24 }
 0x133   : > { %2023 = vmatprep.subr.bf16.mxu0 %v2236_v26 }
 0x13a   : > { %2026 = vmatpush3.bf16.xpose.msk.msra.mxu0 %vm2472_vm3, %v2024_v54 }
 0x13b   : > { %2027 = vmatprep.subr.bf16.mxu0 %v2236_v26 }
 0x142   : > { %2030 = vmatpush3.bf16.xpose.msk.msra.mxu0 %vm2472_vm3, %v2028_v52 }
 0x143   : > { %2031 = vmatprep.subr.bf16.mxu0 %v2236_v26 }
 0x14a   : > { %2034 = vmatpush3.bf16.xpose.msk.msra.mxu0 %vm2472_vm3, %v2032_v7 }
 0x14b   : > { %2035 = vmatprep.subr.bf16.mxu0 %v2236_v26 }
 0x152   : > { %2038 = vmatpush3.bf16.xpose.msk.msra.mxu0 %vm2472_vm3, %v2036_v5 }
 0x159   : > { %1918 = vmatmul.mubr.msk.f32.vlgmr.msra.gmra.mrb[48].mxu0 %vm408_vm1, %v759_v8 }
 0x165   : > { %v1836_v9 = vpop.f32.mrb[32].mxu0 }
 0x166   : > { %v899_v11 = vsub.f32 %v2449_v47, %v1836_v9  ;;  %v834_v12 = vpop.f32.mrb[33].mxu0 }
 0x167   : > { %v897_v13 = vsub.f32 %v2452_v48, %v834_v12  ;;  %v1837_v14 = vpop.f32.mrb[34].mxu0 }
 0x168   : > { %v900_v15 = vsub.f32 %v2455_v49, %v1837_v14  ;;  %v837_v16 = vpop.f32.mrb[35].mxu0  ;;  %v915_v18 = vmax.f32 %v899_v11, 0.0 }
 0x169   : > { %v898_v17 = vsub.f32 %v2458_v50, %v837_v16  ;;  %v913_v22 = vmax.f32 %v897_v13, 0.0 }
 0x16a   : > { %v916_v20 = vmax.f32 %v900_v15, 0.0 }
 0x16b   : > { %v914_v24 = vmax.f32 %v898_v17, 0.0 }
 0x16c   : > { %v1980_v27 = vpack.c.bf16 %v916_v20, %v915_v18 }
 0x16d   : > { %v1976_v28 = vpack.c.bf16 %v914_v24, %v913_v22  ;;  %v1840_v29 = vpop.f32.mrb[36].mxu0 }
 0x16e   : > { %v903_v30 = vsub.f32 %v2465_v61, %v1840_v29  ;;  %v850_v31 = vpop.f32.mrb[37].mxu0  ;;  %v1635_v29 = vld [vmem:[%s2713_s4 + $0x8] sm:$0xff] }
 0x16f   : > { %v901_v32 = vsub.f32 %v2468_v63, %v850_v31  ;;  %v1841_v33 = vpop.f32.mrb[38].mxu0  ;;  %1978 = vmatpush3.bf16.xpose.msk.msra.mxu1 %vm2472_vm3, %v1976_v28  ;;  %v1176_v31 = vpop.permute.xlu1 %1175 }
 0x170   : > { %v904_v34 = vsub.f32 %v2477_v3, %v1841_v33  ;;  %v853_v35 = vpop.f32.mrb[39].mxu0  ;;  %1979 = vmatprep.subr.bf16.mxu1 %v2236_v26  ;;  %v919_v37 = vmax.f32 %v903_v30, 0.0  ;;  %v1174_v30 = vpop.permute.xlu0 %1173 }
 0x171   : > { %v902_v36 = vsub.f32 %v2480_v6, %v853_v35  ;;  %v917_v41 = vmax.f32 %v901_v32, 0.0 }
 0x172   : > { %v920_v39 = vmax.f32 %v904_v34, 0.0 }
 0x173   : > { %v918_v52 = vmax.f32 %v902_v36, 0.0  ;;  %v1180_v33 = vpop.permute.xlu1 %1179 }
 0x174   : > { %v1988_v54 = vpack.c.bf16 %v920_v39, %v919_v37  ;;  %v1178_v32 = vpop.permute.xlu0 %1177  ;;  %v1466_v37 = vld [vmem:[%s2715_s6] sm:$0xff]  ;;  %v2240_v39 = vmov 0  }
 0x175   : > { %v1984_v55 = vpack.c.bf16 %v918_v52, %v917_v41  ;;  %v1844_v42 = vpop.f32.mrb[40].mxu0  ;;  %2136 = vset.pattern.permute.xlu0 %v2240_v39 }
 0x176   : > { %v907_v43 = vsub.f32 %v2490_v19, %v1844_v42  ;;  %v866_v44 = vpop.f32.mrb[41].mxu0  ;;  %1469 = vperm.xlu0 %2136, %v1466_v37  }
 0x177   : > { %v905_v45 = vsub.f32 %v2493_v21, %v866_v44  ;;  %v1845_v46 = vpop.f32.mrb[42].mxu0  ;;  %1982 = vmatpush3.bf16.xpose.msk.msra.mxu1 %vm2472_vm3, %v1980_v27 }
 0x178   : > { %v908_v57 = vsub.f32 %v2496_v23, %v1845_v46  ;;  %v869_v58 = vpop.f32.mrb[43].mxu0  ;;  %1983 = vmatprep.subr.bf16.mxu1 %v2236_v26  ;;  %v923_v60 = vmax.f32 %v907_v43, 0.0  ;;  %v1182_v34 = vpop.permute.xlu0 %1181 }
 0x179   : > { %v906_v59 = vsub.f32 %v2499_v25, %v869_v58  ;;  %v921_v0 = vmax.f32 %v905_v45, 0.0 }
 0x17a   : > { %v924_v62 = vmax.f32 %v908_v57, 0.0 }
 0x17b   : > { %v922_v5 = vmax.f32 %v906_v59, 0.0 }
 0x17c   : > { %v1996_v7 = vpack.c.bf16 %v924_v62, %v923_v60  ;;  %v1186_v35 = vpop.permute.xlu0 %1185 }
 0x17d   : > { %v1992_v8 = vpack.c.bf16 %v922_v5, %v921_v0  ;;  %v1848_v9 = vpop.f32.mrb[44].mxu0 }
 0x17e   : > { %v911_v11 = vsub.f32 %v2509_v38, %v1848_v9  ;;  %v882_v12 = vpop.f32.mrb[45].mxu0 }
 0x17f   : > { %v909_v13 = vsub.f32 %v2512_v40, %v882_v12  ;;  %v1849_v14 = vpop.f32.mrb[46].mxu0  ;;  %1986 = vmatpush3.bf16.xpose.msk.msra.mxu1 %vm2472_vm3, %v1984_v55 }
 0x180   : > { %v912_v15 = vsub.f32 %v2515_v51, %v1849_v14  ;;  %v885_v16 = vpop.f32.mrb[47].mxu0  ;;  %1987 = vmatprep.subr.bf16.mxu1 %v2236_v26  ;;  %v927_v18 = vmax.f32 %v911_v11, 0.0 }
 0x181   : > { %v910_v17 = vsub.f32 %v2518_v53, %v885_v16  ;;  %v925_v22 = vmax.f32 %v909_v13, 0.0 }
 0x182   : > { %v928_v20 = vmax.f32 %v912_v15, 0.0 }
 0x183   : > { %v926_v24 = vmax.f32 %v910_v17, 0.0 }
 0x184   : > { %v2004_v27 = vpack.c.bf16 %v928_v20, %v927_v18 }
 0x185   : > { %v2000_v28 = vpack.c.bf16 %v926_v24, %v925_v22 }
 0x187   : > { %1990 = vmatpush3.bf16.xpose.msk.msra.mxu1 %vm2472_vm3, %v1988_v54 }
 0x188   : > { %1991 = vmatprep.subr.bf16.mxu1 %v2236_v26 }
 0x18f   : > { %1994 = vmatpush3.bf16.xpose.msk.msra.mxu1 %vm2472_vm3, %v1992_v8 }
 0x190   : > { %1995 = vmatprep.subr.bf16.mxu1 %v2236_v26 }
 0x197   : > { %1998 = vmatpush3.bf16.xpose.msk.msra.mxu1 %vm2472_vm3, %v1996_v7 }
 0x198   : > { %1999 = vmatprep.subr.bf16.mxu1 %v2236_v26 }
 0x19f   : > { %2002 = vmatpush3.bf16.xpose.msk.msra.mxu1 %vm2472_vm3, %v2000_v28 }
 0x1a0   : > { %2003 = vmatprep.subr.bf16.mxu1 %v2236_v26 }
 0x1a7   : > { %2006 = vmatpush3.bf16.xpose.msk.msra.mxu1 %vm2472_vm3, %v2004_v27 }
 0x1a8   : > { %1920 = vmatprep.subr.bf16.mxu1 %v2347_v2 }
 0x1ae   : > { %1883 = vmatmul.mubr.msk.f32.vlgmr.msra.gmra.mrb[0].mxu1 %vm408_vm1, %v1635_v29 }
 0x1af   : > { %1921 = vmatpush3.bf16.msra.mxu1 %v2347_v2  ;;  %1924 = vmatprep.mubr.msk.bf16.mxu1 %vm602_vm2, %v1174_v30  ;;  %v1184_v2 = vpop.permute.xlu1 %1183 }
 0x1b0   : > { %2074 = vmatprep.subr.msk.bf16.mxu1 %vm433_vm0, %v2366_v4 }
 0x1b3   : > { %1923 = vmatpush3.bf16.msra.mxu1 %v2388_v10  ;;  %v1188_v4 = vpop.permute.xlu1 %1187 }
 0x1b4   : > { %2039 = vmatprep.subr.bf16.mxu1 %v2236_v26 }
 0x1b6   : > { %1925 = vmatmul.mubr.msk.bf16.vlgmr.msra.gmra.mrb[4].mxu1 %vm602_vm2, %v1176_v31 }
 0x1b7   : > { %1928 = vmatprep.mubr.msk.bf16.mxu1 %vm602_vm2, %v1178_v32 }
 0x1be   : > { %1929 = vmatmul.mubr.msk.bf16.gmra.mrb[8].mxu1 %vm602_vm2, %v1180_v33 }
 0x1bf   : > { %1932 = vmatprep.mubr.msk.bf16.mxu1 %vm602_vm2, %v1182_v34 }
 0x1c6   : > { %1933 = vmatmul.mubr.msk.bf16.gmra.mrb[12].mxu1 %vm602_vm2, %v1184_v2 }
 0x1c7   : > { %1936 = vmatprep.mubr.msk.bf16.mxu1 %vm602_vm2, %v1186_v35 }
 0x1ce   : > { %1937 = vmatmul.mubr.msk.bf16.gmra.mrb[16].mxu1 %vm602_vm2, %v1188_v4 }
 0x1cf   : > { %1972 = vmatprep.mubr.msk.f32.mxu1 %vm2238_vm4, %v2239_v56 }
 0x22c   : > { %v1169_v10 = vpop.f32.mrb[48].mxu0 }
 0x22d   : > { %v1919_v36 = vpop.f32.mrb[49].mxu0 }
 0x281   : > { %v1048_v41 = vpop.f32.mrb[0].mxu1 }
 0x282   : > { %v1884_v52 = vpop.f32.mrb[1].mxu1  ;;  %v2611_v54 = vadd.f32 %v1169_v10, %v1048_v41 }
 0x289   : > { %v1926_v55 = vpop.f32.mrb[4].mxu1 }
 0x28a   : > { %v1312_v42 = vsub.f32 %v2449_v47, %v1926_v55  ;;  %v1247_v43 = vpop.f32.mrb[5].mxu1 }
 0x28b   : > { %v1310_v44 = vsub.f32 %v2452_v48, %v1247_v43  ;;  %v1927_v56 = vpop.f32.mrb[6].mxu1 }
 0x28c   : > { %v1313_v45 = vsub.f32 %v2455_v49, %v1927_v56  ;;  %v1250_v46 = vpop.f32.mrb[7].mxu1  ;;  %v1328_v58 = vmax.f32 %v1312_v42, 0.0 }
 0x28d   : > { %v1311_v57 = vsub.f32 %v2458_v50, %v1250_v46  ;;  %v1326_v60 = vmax.f32 %v1310_v44, 0.0 }
 0x28e   : > { %v1329_v59 = vmax.f32 %v1313_v45, 0.0 }
 0x28f   : > { %v1327_v62 = vmax.f32 %v1311_v57, 0.0 }
 0x290   : > { %v2044_v0 = vpack.c.bf16 %v1329_v59, %v1328_v58 }
 0x291   : > { %v2040_v5 = vpack.c.bf16 %v1327_v62, %v1326_v60  ;;  %v1930_v7 = vpop.f32.mrb[8].mxu1 }
 0x292   : > { %v1316_v8 = vsub.f32 %v2465_v61, %v1930_v7  ;;  %v1263_v9 = vpop.f32.mrb[9].mxu1 }
 0x293   : > { %v1314_v47 = vsub.f32 %v2468_v63, %v1263_v9  ;;  %v1931_v11 = vpop.f32.mrb[10].mxu1  ;;  %2042 = vmatpush3.bf16.xpose.msk.msra.mxu1 %vm2472_vm3, %v2040_v5 }
 0x294   : > { %v1317_v48 = vsub.f32 %v2477_v3, %v1931_v11  ;;  %v1266_v49 = vpop.f32.mrb[11].mxu1  ;;  %2043 = vmatprep.subr.bf16.mxu1 %v2236_v26  ;;  %v1332_v12 = vmax.f32 %v1316_v8, 0.0 }
 0x295   : > { %v1315_v50 = vsub.f32 %v2480_v6, %v1266_v49  ;;  %v1330_v14 = vmax.f32 %v1314_v47, 0.0 }
 0x296   : > { %v1333_v13 = vmax.f32 %v1317_v48, 0.0 }
 0x297   : > { %v1331_v15 = vmax.f32 %v1315_v50, 0.0 }
 0x298   : > { %v2052_v16 = vpack.c.bf16 %v1333_v13, %v1332_v12 }
 0x299   : > { %v2048_v61 = vpack.c.bf16 %v1331_v15, %v1330_v14  ;;  %v1934_v17 = vpop.f32.mrb[12].mxu1 }
 0x29a   : > { %v1320_v63 = vsub.f32 %v2490_v19, %v1934_v17  ;;  %v1279_v18 = vpop.f32.mrb[13].mxu1 }
 0x29b   : > { %v1318_v20 = vsub.f32 %v2493_v21, %v1279_v18  ;;  %v1935_v22 = vpop.f32.mrb[14].mxu1  ;;  %2046 = vmatpush3.bf16.xpose.msk.msra.mxu1 %vm2472_vm3, %v2044_v0 }
 0x29c   : > { %v1321_v3 = vsub.f32 %v2496_v23, %v1935_v22  ;;  %v1282_v24 = vpop.f32.mrb[15].mxu1  ;;  %2047 = vmatprep.subr.bf16.mxu1 %v2236_v26  ;;  %v1336_v27 = vmax.f32 %v1320_v63, 0.0 }
 0x29d   : > { %v1319_v6 = vsub.f32 %v2499_v25, %v1282_v24  ;;  %v1334_v29 = vmax.f32 %v1318_v20, 0.0 }
 0x29e   : > { %v1337_v28 = vmax.f32 %v1321_v3, 0.0 }
 0x29f   : > { %v1335_v30 = vmax.f32 %v1319_v6, 0.0 }
 0x2a0   : > { %v2060_v31 = vpack.c.bf16 %v1337_v28, %v1336_v27 }
 0x2a1   : > { %v2056_v19 = vpack.c.bf16 %v1335_v30, %v1334_v29  ;;  %v1938_v32 = vpop.f32.mrb[16].mxu1 }
 0x2a2   : > { %v1324_v21 = vsub.f32 %v2509_v38, %v1938_v32  ;;  %v1295_v33 = vpop.f32.mrb[17].mxu1 }
 0x2a3   : > { %v1322_v34 = vsub.f32 %v2512_v40, %v1295_v33  ;;  %v1939_v2 = vpop.f32.mrb[18].mxu1  ;;  %2050 = vmatpush3.bf16.xpose.msk.msra.mxu1 %vm2472_vm3, %v2048_v61  ;;  %v1678_v40 = vld [vmem:[%s2713_s4 + $0x10] sm:$0xff] }
 0x2a4   : > { %v1325_v23 = vsub.f32 %v2515_v51, %v1939_v2  ;;  %v1298_v35 = vpop.f32.mrb[19].mxu1  ;;  %2051 = vmatprep.subr.bf16.mxu1 %v2236_v26  ;;  %v1340_v4 = vmax.f32 %v1324_v21, 0.0 }
 0x2a5   : > { %v1323_v25 = vsub.f32 %v2518_v53, %v1298_v35  ;;  %v1338_v36 = vmax.f32 %v1322_v34, 0.0  ;;  %v1470_v53 = vpop.permute.xlu0 %1469 }
 0x2a6   : > { %v1341_v10 = vmax.f32 %v1325_v23, 0.0 }
 0x2a7   : > { %v1339_v37 = vmax.f32 %v1323_v25, 0.0 }
 0x2a8   : > { %v2068_v38 = vpack.c.bf16 %v1341_v10, %v1340_v4 }
 0x2a9   : > { %v2064_v39 = vpack.c.bf16 %v1339_v37, %v1338_v36 }
 0x2ab   : > { %2054 = vmatpush3.bf16.xpose.msk.msra.mxu1 %vm2472_vm3, %v2052_v16 }
 0x2ac   : > { %2055 = vmatprep.subr.bf16.mxu1 %v2236_v26 }
 0x2b3   : > { %2058 = vmatpush3.bf16.xpose.msk.msra.mxu1 %vm2472_vm3, %v2056_v19 }
 0x2b4   : > { %2059 = vmatprep.subr.bf16.mxu1 %v2236_v26 }
 0x2bb   : > { %2062 = vmatpush3.bf16.xpose.msk.msra.mxu1 %vm2472_vm3, %v2060_v31 }
 0x2bc   : > { %2063 = vmatprep.subr.bf16.mxu1 %v2236_v26 }
 0x2c3   : > { %2066 = vmatpush3.bf16.xpose.msk.msra.mxu1 %vm2472_vm3, %v2064_v39 }
 0x2c4   : > { %2067 = vmatprep.subr.bf16.mxu1 %v2236_v26 }
 0x2cb   : > { %2070 = vmatpush3.bf16.xpose.msk.msra.mxu1 %vm2472_vm3, %v2068_v38 }
 0x2d2   : > { %1973 = vmatmul.mubr.msk.f32.vlgmr.msra.gmra.mrb[2].mxu1 %vm408_vm1, %v1678_v40 }
 0x3a5   : > { %v1461_v51 = vpop.f32.mrb[2].mxu1 }
 0x3a6   : > { %v1465_v41 = vadd.f32 %v1461_v51, %v2611_v54  ;;  %v1974_v52 = vpop.f32.mrb[3].mxu1 }
 0x3a8   : > { %v1472_v26 = vadd.f32 %v1470_v53, %v1465_v41 }
 0x3aa   : > { %v1473_v1 = vmax.f32 %v1472_v26, 0.0 }
 0x3ac   : > { %1474 = vst [vmem:[%s322_s18] sm:$0xff] %v1473_v1 }
 0x3ad   : > { %2168 = shalt.err (!%p2165_p5)
}
 0x3ae   : > { %s2169_s12 = scalar_lea.hbm %s2662_s22, 128  ;;  %s2173_s17 = scalar_lea.hbm %s2716_s7, 256 }
 0x3af   : > { %p2170_p6 = scmp.ne.s32.totalorder %s2662_s22, %s2169_s12  ;;  %p2174_p10 = scmp.lt.u32.totalorder %s2662_s22, %s2716_s7 }
 0x3b0   : > { %p2175_p11 = scmp.lt.u32.totalorder %s2173_s17, %s2169_s12  ;;  %p2177_p13 = scmp.lt.u32.totalorder %s2169_s12, %s2662_s22 }
 0x3b1   : > { %p2171_p7 = pnand %p2170_p6, %p2322_p4 }
 0x3b2   : > { %p2176_p12 = por %p2175_p11, %p2174_p10 }
 0x3b3   : > { %p2172_p9 = pneg %p2171_p7 }
 0x3b4   : > { %p2178_p0 = por %p2177_p13, %p2176_p12 }
 0x3b6   : > { %p2179_p1 = pnand %p2178_p0, %p2172_p9 }
 0x3b8   : > { %2182 = shalt.err (!%p2179_p1)
}
 0x3b9   : > { %2075 = dma.vmem_to_hbm [thread:$0]  (%p2322_p4), %s2664_s19, 128, %s2662_s22, %s1476_s23  }
 0x3ba PF: > { %p2081_p2 = scmp.ge.s32.totalorder %s2233_s29, 2  ;;  %s1502_s21 = sand.u32 1, %s2213_s24  }
 0x3bb   : > { %s1503_s30 = scalar_lea.sflag [#allocation3], %s1502_s21 }
 0x3bc   : > { %p2078_p3 = pnand %p2081_p2, %p2329_p8 }
 0x3be   : > { %2208 = dma.done.wait (!%p2078_p3), %s1503_s30, 128  }
 0x3bf   : > { %2210 = vsyncadd (!%p2078_p3), %s1503_s30, 4294967168  ;;  %s20_s29 = sadd.s32 1, %s2233_s29   ;;  %s2721_s24 = smov %s2217_s25 }
 0x3c0   : > { %p17_p5 = scmp.ge.s32.totalorder %s20_s29, 4   ;;  %s2722_s25 = smov %s2221_s26 }
 0x3c1   : > { %s2723_s26 = smov %s2335_s14  ;;  %s2724_s27 = smov %s2229_s28 }
 0x3c2   : > { %s2725_s28 = smov %s2727_s9  ;;  %19 = sbr.rel (!%p17_p5) target bundleno = 4 (0x4), region = 88 }
 0x3c9   :  { %1508 = vsyncpa [#allocation3], 1 }
 0x3ca   :  { %1510 = vsyncpa [#allocation3 + $0x1], 1 }

</bundles_post_ra>
